<compile_context>
chip_gen: v7x
topology: tpu7x:2x2x1
jax: 0.10.0
libtpu: 0.0.40
codegen_flags: <defaults>
</compile_context>

<pallas_src>
from functools import partial

import jax
import jax.numpy as jnp
import numpy as np
from jax.experimental import pallas as pl
from jax.experimental.pallas import tpu as pltpu


def _sigmoid(x):
    # sigmoid via tanh (EUP slot) instead of a full-precision divide.
    return 0.5 * (jnp.tanh(0.5 * x) + 1.0)


def _silu(x):
    return x * _sigmoid(x)


def _mm(a, w):
    # Cast the activation to the weight (MXU-operand) dtype right before the dot;
    # always accumulate in f32.
    return jnp.dot(a.astype(w.dtype), w, preferred_element_type=jnp.float32)


def _gated_block(x, v_axes, wv, wu0x, wu0v, bu0, wu2, bu2, scalar_act):
    """One GatedEquivariantBlock.

    x: [tm, cin] f32; v_axes: three per-spatial-axis [tm, cin] feature slabs.
    wv   = [vec1_proj | vec2_proj] fused along columns: [cin, cin + cout]
    wu0x/wu0v = update_net[0] weight split along K: [cin, inter] each
    wu2  = update_net[2] weight: [inter, 2*cout] = [x-half | v-gate-half]
    """
    cin = x.shape[-1]
    cout = wu2.shape[-1] // 2

    # Fused (vec1_proj | vec2_proj): 3 dots sharing one RHS, one per spatial axis.
    vp = [_mm(va, wv) for va in v_axes]                    # 3 x [tm, cin+cout] f32
    vb = [p[:, :cin] for p in vp]
    vec2 = [p[:, cin:] for p in vp]
    # torch.norm over the spatial dim (forward value identical to the masked version).
    vec1 = jnp.sqrt(vb[0] * vb[0] + vb[1] * vb[1] + vb[2] * vb[2])   # [tm, cin]

    # update_net[0] on cat([x, vec1], -1), computed split-K: no [tm, 2*cin] concat copy.
    h = _silu(_mm(x, wu0x) + _mm(vec1, wu0v) + bu0)        # [tm, inter]

    # update_net[2]; columns split into the scalar part and the vector gate.
    u = _mm(h, wu2) + bu2                                  # [tm, 2*cout]
    x_out, vgate = u[:, :cout], u[:, cout:]
    if scalar_act:
        x_out = _silu(x_out)

    # Per-axis gating: broadcast multiply, no 3x gate replication copy.
    v_out = [vgate * v2a for v2a in vec2]                  # 3 x [tm, cout]
    return x_out, v_out


def _head_kernel(x_ref, v_ref, batch_ref,
                 w1v, w1u0x, w1u0v, b1u0, w1u2, b1u2,
                 w2v, w2u0x, w2u0v, b2u0, w2u2, b2u2,
                 energy_ref, forces_ref, *, n_rows):
    tm, hdim = x_ref.shape
    x = x_ref[...]                                         # [tm, H]
    vf = v_ref[...]                                        # [tm, 3H] native atom-major layout
    # Lane slices (vreg-aligned when H % 128 == 0); no sublane-stacking copy.
    v_axes = [vf[:, a * hdim:(a + 1) * hdim] for a in range(3)]

    # GatedEquivariantBlock(H -> H//2, scalar_activation=True)
    x1, v1 = _gated_block(x, v_axes, w1v[...], w1u0x[...], w1u0v[...], b1u0[...],
                          w1u2[...], b1u2[...], scalar_act=True)
    # GatedEquivariantBlock(H//2 -> 1, scalar_activation=False)
    x2, v2 = _gated_block(x1, v1, w2v[...], w2u0x[...], w2u0v[...], b2u0[...],
                          w2u2[...], b2u2[...], scalar_act=False)
    # x2: [tm, 1]; v2: three [tm, 1] per-axis force columns.

    # Ragged last tile: rows >= n_rows hold unspecified HBM data; zero their scalar
    # output so the graph reduction cannot be corrupted (covers both NaN garbage and
    # garbage batch ids aliasing a valid graph).  Trace-time no-op when N % tm == 0.
    if n_rows % tm != 0:
        row = pl.program_id(0) * tm + jax.lax.broadcasted_iota(jnp.int32, (tm, 1), 0)
        x2 = jnp.where(row < n_rows, x2, 0.0)

    # reduce(x, batch, 'sum') as an MXU contraction: onehot[G, tm] @ x2[tm, 1].
    g = energy_ref.shape[0]
    gid = jax.lax.broadcasted_iota(jnp.int32, (g, tm), 0)
    onehot = (gid == batch_ref[...]).astype(jnp.float32)                        # [G, tm]
    energy_ref[...] = jnp.dot(onehot, x2, preferred_element_type=jnp.float32)   # [G, 1]

    # Forces in the PyTorch [N, 3] layout (tiny stream vs inputs, so the narrow store
    # is noise and no wrapper slice/transpose pass is needed).  Out-of-bounds rows of
    # the last partial block are dropped by the blocked out_spec.
    forces_ref[...] = jnp.concatenate(v2, axis=1)                               # [tm, 3]


def gated_equivariant_head(x, v, batch, params, num_graphs, *,
                           tile_m=1024, matmul_dtype=jnp.bfloat16):
    """x: [N, H], v: [N, 3, H] (native PyTorch layout), batch: [N] int.
    Returns (energy [num_graphs, 1] f32, forces [N, 3] f32)."""
    (w1v, w1u0, b1u0, w1u2, b1u2, w2v, w2u0, b2u0, w2u2, b2u2) = params
    n, hdim = x.shape
    assert v.shape == (n, 3, hdim)
    assert tile_m % 128 == 0, "tile_m must be a multiple of 128"

    # Keep at least two tiles when possible so dimension_semantics=("parallel",) can
    # feed both v7x TensorCores; otherwise honor the requested (large) tile size.
    half_pad = ((-(-n // 2)) + 127) // 128 * 128
    tm = max(128, min(tile_m, half_pad))
    nt = pl.cdiv(n, tm)

    # Free metadata reshapes -- no HBM pass over x / v / batch in the wrapper.
    v_flat = v.reshape(n, 3 * hdim)
    batch_2d = batch.astype(jnp.int32).reshape(1, n)

    # MXU operands in matmul_dtype (bf16 default on v5e/v6e/v7x); biases/accum stay f32.
    o1 = w1u2.shape[-1] // 2
    mw = lambda w: w.astype(matmul_dtype)
    weights = (mw(w1v), mw(w1u0[:hdim]), mw(w1u0[hdim:]), b1u0, mw(w1u2), b1u2,
               mw(w2v), mw(w2u0[:o1]), mw(w2u0[o1:]), b2u0, mw(w2u2), b2u2)

    def full_spec(a):
        # Whole (small) weight resident in VMEM; constant block index.
        return pl.BlockSpec(a.shape, lambda i, nd=a.ndim: (0,) * nd)

    grid_spec = pltpu.PrefetchScalarGridSpec(
        num_scalar_prefetch=0,
        grid=(nt,),
        in_specs=[
            pl.BlockSpec((tm, hdim), lambda i: (i, 0)),        # x tile
            pl.BlockSpec((tm, 3 * hdim), lambda i: (i, 0)),    # v tile, native layout
            pl.BlockSpec((1, tm), lambda i: (0, i)),           # graph ids (lane-major)
        ] + [full_spec(w) for w in weights],
        out_specs=(
            pl.BlockSpec((None, num_graphs, 1), lambda i: (i, 0, 0)),  # per-tile energy
            pl.BlockSpec((tm, 3), lambda i: (i, 0)),                   # forces, [N, 3]
        ),
    )

    e_parts, forces = pl.pallas_call(
        partial(_head_kernel, n_rows=n),
        grid_spec=grid_spec,
        out_shape=(jax.ShapeDtypeStruct((nt, num_graphs, 1), jnp.float32),
                   jax.ShapeDtypeStruct((n, 3), jnp.float32)),
        compiler_params=pltpu.CompilerParams(
            dimension_semantics=("parallel",),
            vmem_limit_bytes=48 * 1024 * 1024,   # v7x-safe cap (64 MiB/TC physical)
        ),
    )(x, v_flat, batch_2d, *weights)

    energy = jnp.sum(e_parts, axis=0)   # [G, 1]; tiny epilogue keeps the grid fully parallel
    return energy, forces


def _xavier(key, fan_in, fan_out):
    bound = np.sqrt(6.0 / (fan_in + fan_out))
    # stored as [in, out] (i.e. W^T relative to nn.Linear.weight)
    return jax.random.uniform(key, (fan_in, fan_out), jnp.float32, -bound, bound)


def make_params(key, hidden_channels):
    H = hidden_channels
    o1, i1 = H // 2, H        # block 1: out_channels, intermediate_channels
    o2, i2 = 1, o1            # block 2
    keys = jax.random.split(key, 8)
    w1v1 = _xavier(keys[0], H, H)
    w1v2 = _xavier(keys[1], H, o1)
    w1u0 = _xavier(keys[2], 2 * H, i1)
    w1u2 = _xavier(keys[3], i1, 2 * o1)
    w2v1 = _xavier(keys[4], o1, o1)
    w2v2 = _xavier(keys[5], o1, o2)
    w2u0 = _xavier(keys[6], 2 * o1, i2)
    w2u2 = _xavier(keys[7], i2, 2 * o2)
    b1u0 = jnp.zeros((1, i1), jnp.float32)       # reset_parameters: bias.fill_(0)
    b1u2 = jnp.zeros((1, 2 * o1), jnp.float32)
    b2u0 = jnp.zeros((1, i2), jnp.float32)
    b2u2 = jnp.zeros((1, 2 * o2), jnp.float32)
    # Fuse shared-LHS weights: vec1_proj|vec2_proj along output columns.
    w1v = jnp.concatenate([w1v1, w1v2], axis=1)  # [H, H + H//2]
    w2v = jnp.concatenate([w2v1, w2v2], axis=1)  # [H//2, H//2 + 1]
    # update_net[2] weights are already [inter, 2*cout] = [x-half | v-gate-half].
    return (w1v, w1u0, b1u0, w1u2, b1u2, w2v, w2u0, b2u0, w2u2, b2u2)


def reference(x, v, batch, params, num_graphs):
    """Pure-JAX reference matching the PyTorch forward (high-precision matmuls)."""
    (w1v, w1u0, b1u0, w1u2, b1u2, w2v, w2u0, b2u0, w2u2, b2u2) = params
    hi = jax.lax.Precision.HIGHEST

    def block(x, v, wv, wu0, bu0, wu2, bu2, scalar_act):
        cin = x.shape[-1]
        cout = wu2.shape[-1] // 2
        wv1, wv2 = wv[:, :cin], wv[:, cin:]
        vb = jnp.einsum('nah,hk->nak', v, wv1, precision=hi)
        vec1 = jnp.sqrt(jnp.sum(vb * vb, axis=-2))
        vec2 = jnp.einsum('nah,hk->nak', v, wv2, precision=hi)
        h = jnp.dot(jnp.concatenate([x, vec1], axis=-1), wu0, precision=hi) + bu0
        h = h * _sigmoid(h)
        u = jnp.dot(h, wu2, precision=hi) + bu2
        x_out, vgate = u[:, :cout], u[:, cout:]
        v_out = vgate[:, None, :] * vec2
        if scalar_act:
            x_out = x_out * _sigmoid(x_out)
        return x_out, v_out

    x1, v1 = block(x, v, w1v, w1u0, b1u0, w1u2, b1u2, True)
    x2, v2 = block(x1, v1, w2v, w2u0, b2u0, w2u2, b2u2, False)
    energy = jnp.zeros((num_graphs, 1), jnp.float32).at[batch].add(x2)
    forces = v2[..., 0]
    return energy, forces


if __name__ == "__main__":
    N, H, G = 200, 32, 2
    key = jax.random.PRNGKey(0)
    kx, kv, kp = jax.random.split(key, 3)
    x = jax.random.normal(kx, (N, H), jnp.float32)
    v = jax.random.normal(kv, (N, 3, H), jnp.float32)
    batch = jnp.concatenate(
        [jnp.zeros((120,), jnp.int32), jnp.ones((N - 120,), jnp.int32)])
    params = make_params(kp, H)
    e_ref, f_ref = reference(x, v, batch, params, G)

    # f32 MXU-operand path: strict check (tile auto-clamps to 128 -> 2 tiles,
    # ragged last tile with 72 valid rows exercises the in-kernel masking).
    energy, forces = gated_equivariant_head(x, v, batch, params, G,
                                            matmul_dtype=jnp.float32)
    jax.block_until_ready((energy, forces))
    assert energy.shape == (G, 1) and forces.shape == (N, 3)
    np.testing.assert_allclose(np.asarray(energy), np.asarray(e_ref), rtol=1e-4, atol=1e-4)
    np.testing.assert_allclose(np.asarray(forces), np.asarray(f_ref), rtol=1e-4, atol=1e-4)

    # bf16 MXU-operand path (the default): validated against the f32 reference.
    e_bf, f_bf = gated_equivariant_head(x, v, batch, params, G)
    jax.block_until_ready((e_bf, f_bf))

    def rel_l2(a, b):
        a = np.asarray(a, np.float64)
        b = np.asarray(b, np.float64)
        return float(np.linalg.norm(a - b) / (np.linalg.norm(b) + 1e-12))

    assert e_bf.shape == (G, 1) and f_bf.shape == (N, 3)
    assert rel_l2(e_bf, e_ref) < 3e-2, rel_l2(e_bf, e_ref)
    assert rel_l2(f_bf, f_ref) < 3e-2, rel_l2(f_bf, f_ref)

    print("KERNEL_OK")
</pallas_src>

<mosaic_0001>
module attributes {stable_mosaic.version = 11 : i64} {
  func.func @_head_kernel(%arg0: i32, %arg1: memref<128x32xf32, #tpu.memory_space<vmem>>, %arg2: memref<128x96xf32, #tpu.memory_space<vmem>>, %arg3: memref<1x128xi32, #tpu.memory_space<vmem>>, %arg4: memref<32x48xf32, #tpu.memory_space<vmem>>, %arg5: memref<32x32xf32, #tpu.memory_space<vmem>>, %arg6: memref<32x32xf32, #tpu.memory_space<vmem>>, %arg7: memref<1x32xf32, #tpu.memory_space<vmem>>, %arg8: memref<32x32xf32, #tpu.memory_space<vmem>>, %arg9: memref<1x32xf32, #tpu.memory_space<vmem>>, %arg10: memref<16x17xf32, #tpu.memory_space<vmem>>, %arg11: memref<16x16xf32, #tpu.memory_space<vmem>>, %arg12: memref<16x16xf32, #tpu.memory_space<vmem>>, %arg13: memref<1x16xf32, #tpu.memory_space<vmem>>, %arg14: memref<16x2xf32, #tpu.memory_space<vmem>>, %arg15: memref<1x2xf32, #tpu.memory_space<vmem>>, %arg16: memref<1x2x1xf32, #tpu.memory_space<vmem>>, %arg17: memref<128x3xf32, #tpu.memory_space<vmem>>) attributes {dimension_semantics = [#tpu.dimension_semantics<parallel>], iteration_bounds = array<i64: 2>, scalar_prefetch = 0 : i64, scratch_operands = 0 : i64, tpu.core_type = #tpu.core_type<tc>, window_params = [{transform_indices = @transform_0, window_bounds = array<i64: 128, 32>}, {transform_indices = @transform_1, window_bounds = array<i64: 128, 96>}, {transform_indices = @transform_2, window_bounds = array<i64: 1, 128>}, {pipeline_mode = #tpu.pipeline_mode<synchronous>, transform_indices = @transform_3, window_bounds = array<i64: 32, 48>}, {pipeline_mode = #tpu.pipeline_mode<synchronous>, transform_indices = @transform_4, window_bounds = array<i64: 32, 32>}, {pipeline_mode = #tpu.pipeline_mode<synchronous>, transform_indices = @transform_5, window_bounds = array<i64: 32, 32>}, {pipeline_mode = #tpu.pipeline_mode<synchronous>, transform_indices = @transform_6, window_bounds = array<i64: 1, 32>}, {pipeline_mode = #tpu.pipeline_mode<synchronous>, transform_indices = @transform_7, window_bounds = array<i64: 32, 32>}, {pipeline_mode = #tpu.pipeline_mode<synchronous>, transform_indices = @transform_8, window_bounds = array<i64: 1, 32>}, {pipeline_mode = #tpu.pipeline_mode<synchronous>, transform_indices = @transform_9, window_bounds = array<i64: 16, 17>}, {pipeline_mode = #tpu.pipeline_mode<synchronous>, transform_indices = @transform_10, window_bounds = array<i64: 16, 16>}, {pipeline_mode = #tpu.pipeline_mode<synchronous>, transform_indices = @transform_11, window_bounds = array<i64: 16, 16>}, {pipeline_mode = #tpu.pipeline_mode<synchronous>, transform_indices = @transform_12, window_bounds = array<i64: 1, 16>}, {pipeline_mode = #tpu.pipeline_mode<synchronous>, transform_indices = @transform_13, window_bounds = array<i64: 16, 2>}, {pipeline_mode = #tpu.pipeline_mode<synchronous>, transform_indices = @transform_14, window_bounds = array<i64: 1, 2>}, {transform_indices = @transform_15, window_bounds = array<i64: 1, 2, 1>}, {transform_indices = @transform_16, window_bounds = array<i64: 128, 3>}]} {
    %c0 = arith.constant 0 : index
    %c0_0 = arith.constant 0 : index
    %0 = vector.load %arg1[%c0, %c0_0] : memref<128x32xf32, #tpu.memory_space<vmem>>, vector<128x32xf32>
    %c0_1 = arith.constant 0 : index
    %c0_2 = arith.constant 0 : index
    %1 = vector.load %arg2[%c0_1, %c0_2] : memref<128x96xf32, #tpu.memory_space<vmem>>, vector<128x96xf32>
    %2 = vector.extract_strided_slice %1 {offsets = [0, 0], sizes = [128, 32], strides = [1, 1]} : vector<128x96xf32> to vector<128x32xf32>
    %3 = vector.extract_strided_slice %1 {offsets = [0, 32], sizes = [128, 32], strides = [1, 1]} : vector<128x96xf32> to vector<128x32xf32>
    %4 = vector.extract_strided_slice %1 {offsets = [0, 64], sizes = [128, 32], strides = [1, 1]} : vector<128x96xf32> to vector<128x32xf32>
    %c0_3 = arith.constant 0 : index
    %c0_4 = arith.constant 0 : index
    %5 = vector.load %arg4[%c0_3, %c0_4] : memref<32x48xf32, #tpu.memory_space<vmem>>, vector<32x48xf32>
    %c0_5 = arith.constant 0 : index
    %c0_6 = arith.constant 0 : index
    %6 = vector.load %arg5[%c0_5, %c0_6] : memref<32x32xf32, #tpu.memory_space<vmem>>, vector<32x32xf32>
    %c0_7 = arith.constant 0 : index
    %c0_8 = arith.constant 0 : index
    %7 = vector.load %arg6[%c0_7, %c0_8] : memref<32x32xf32, #tpu.memory_space<vmem>>, vector<32x32xf32>
    %c0_9 = arith.constant 0 : index
    %c0_10 = arith.constant 0 : index
    %8 = vector.load %arg7[%c0_9, %c0_10] : memref<1x32xf32, #tpu.memory_space<vmem>>, vector<1x32xf32>
    %c0_11 = arith.constant 0 : index
    %c0_12 = arith.constant 0 : index
    %9 = vector.load %arg8[%c0_11, %c0_12] : memref<32x32xf32, #tpu.memory_space<vmem>>, vector<32x32xf32>
    %c0_13 = arith.constant 0 : index
    %c0_14 = arith.constant 0 : index
    %10 = vector.load %arg9[%c0_13, %c0_14] : memref<1x32xf32, #tpu.memory_space<vmem>>, vector<1x32xf32>
    %cst = arith.constant dense<0.000000e+00> : vector<128x48xf32>
    %11 = tpu.matmul %2, %5, %cst {dimension_numbers = #tpu.dot_dimension_numbers<[1], [0], [0], [1], [0, 0, 1, 1], [], []>} : vector<128x32xf32>, vector<32x48xf32>, vector<128x48xf32> -> vector<128x48xf32>
    %cst_15 = arith.constant dense<0.000000e+00> : vector<128x48xf32>
    %12 = tpu.matmul %3, %5, %cst_15 {dimension_numbers = #tpu.dot_dimension_numbers<[1], [0], [0], [1], [0, 0, 1, 1], [], []>} : vector<128x32xf32>, vector<32x48xf32>, vector<128x48xf32> -> vector<128x48xf32>
    %cst_16 = arith.constant dense<0.000000e+00> : vector<128x48xf32>
    %13 = tpu.matmul %4, %5, %cst_16 {dimension_numbers = #tpu.dot_dimension_numbers<[1], [0], [0], [1], [0, 0, 1, 1], [], []>} : vector<128x32xf32>, vector<32x48xf32>, vector<128x48xf32> -> vector<128x48xf32>
    %14 = vector.extract_strided_slice %11 {offsets = [0, 0], sizes = [128, 32], strides = [1, 1]} : vector<128x48xf32> to vector<128x32xf32>
    %15 = vector.extract_strided_slice %12 {offsets = [0, 0], sizes = [128, 32], strides = [1, 1]} : vector<128x48xf32> to vector<128x32xf32>
    %16 = vector.extract_strided_slice %13 {offsets = [0, 0], sizes = [128, 32], strides = [1, 1]} : vector<128x48xf32> to vector<128x32xf32>
    %17 = vector.extract_strided_slice %11 {offsets = [0, 32], sizes = [128, 16], strides = [1, 1]} : vector<128x48xf32> to vector<128x16xf32>
    %18 = vector.extract_strided_slice %12 {offsets = [0, 32], sizes = [128, 16], strides = [1, 1]} : vector<128x48xf32> to vector<128x16xf32>
    %19 = vector.extract_strided_slice %13 {offsets = [0, 32], sizes = [128, 16], strides = [1, 1]} : vector<128x48xf32> to vector<128x16xf32>
    %20 = arith.mulf %14, %14 : vector<128x32xf32>
    %21 = arith.mulf %15, %15 : vector<128x32xf32>
    %22 = arith.addf %20, %21 : vector<128x32xf32>
    %23 = arith.mulf %16, %16 : vector<128x32xf32>
    %24 = arith.addf %22, %23 : vector<128x32xf32>
    %25 = math.sqrt %24 : vector<128x32xf32>
    %cst_17 = arith.constant dense<0.000000e+00> : vector<128x32xf32>
    %26 = tpu.matmul %0, %6, %cst_17 {dimension_numbers = #tpu.dot_dimension_numbers<[1], [0], [0], [1], [0, 0, 1, 1], [], []>} : vector<128x32xf32>, vector<32x32xf32>, vector<128x32xf32> -> vector<128x32xf32>
    %cst_18 = arith.constant dense<0.000000e+00> : vector<128x32xf32>
    %27 = tpu.matmul %25, %7, %cst_18 {dimension_numbers = #tpu.dot_dimension_numbers<[1], [0], [0], [1], [0, 0, 1, 1], [], []>} : vector<128x32xf32>, vector<32x32xf32>, vector<128x32xf32> -> vector<128x32xf32>
    %28 = arith.addf %26, %27 : vector<128x32xf32>
    %29 = vector.broadcast %8 : vector<1x32xf32> to vector<128x32xf32>
    %30 = arith.addf %28, %29 : vector<128x32xf32>
    %cst_19 = arith.constant 5.000000e-01 : f32
    %31 = vector.broadcast %cst_19 : f32 to vector<128x32xf32>
    %32 = arith.mulf %31, %30 : vector<128x32xf32>
    %33 = math.tanh %32 : vector<128x32xf32>
    %cst_20 = arith.constant 1.000000e+00 : f32
    %34 = vector.broadcast %cst_20 : f32 to vector<128x32xf32>
    %35 = arith.addf %33, %34 : vector<128x32xf32>
    %cst_21 = arith.constant 5.000000e-01 : f32
    %36 = vector.broadcast %cst_21 : f32 to vector<128x32xf32>
    %37 = arith.mulf %36, %35 : vector<128x32xf32>
    %38 = arith.mulf %30, %37 : vector<128x32xf32>
    %cst_22 = arith.constant dense<0.000000e+00> : vector<128x32xf32>
    %39 = tpu.matmul %38, %9, %cst_22 {dimension_numbers = #tpu.dot_dimension_numbers<[1], [0], [0], [1], [0, 0, 1, 1], [], []>} : vector<128x32xf32>, vector<32x32xf32>, vector<128x32xf32> -> vector<128x32xf32>
    %40 = vector.broadcast %10 : vector<1x32xf32> to vector<128x32xf32>
    %41 = arith.addf %39, %40 : vector<128x32xf32>
    %42 = vector.extract_strided_slice %41 {offsets = [0, 0], sizes = [128, 16], strides = [1, 1]} : vector<128x32xf32> to vector<128x16xf32>
    %43 = vector.extract_strided_slice %41 {offsets = [0, 16], sizes = [128, 16], strides = [1, 1]} : vector<128x32xf32> to vector<128x16xf32>
    %cst_23 = arith.constant 5.000000e-01 : f32
    %44 = vector.broadcast %cst_23 : f32 to vector<128x16xf32>
    %45 = arith.mulf %44, %42 : vector<128x16xf32>
    %46 = math.tanh %45 : vector<128x16xf32>
    %cst_24 = arith.constant 1.000000e+00 : f32
    %47 = vector.broadcast %cst_24 : f32 to vector<128x16xf32>
    %48 = arith.addf %46, %47 : vector<128x16xf32>
    %cst_25 = arith.constant 5.000000e-01 : f32
    %49 = vector.broadcast %cst_25 : f32 to vector<128x16xf32>
    %50 = arith.mulf %49, %48 : vector<128x16xf32>
    %51 = arith.mulf %42, %50 : vector<128x16xf32>
    %52 = arith.mulf %43, %17 : vector<128x16xf32>
    %53 = arith.mulf %43, %18 : vector<128x16xf32>
    %54 = arith.mulf %43, %19 : vector<128x16xf32>
    %c0_26 = arith.constant 0 : index
    %c0_27 = arith.constant 0 : index
    %55 = vector.load %arg10[%c0_26, %c0_27] : memref<16x17xf32, #tpu.memory_space<vmem>>, vector<16x17xf32>
    %c0_28 = arith.constant 0 : index
    %c0_29 = arith.constant 0 : index
    %56 = vector.load %arg11[%c0_28, %c0_29] : memref<16x16xf32, #tpu.memory_space<vmem>>, vector<16x16xf32>
    %c0_30 = arith.constant 0 : index
    %c0_31 = arith.constant 0 : index
    %57 = vector.load %arg12[%c0_30, %c0_31] : memref<16x16xf32, #tpu.memory_space<vmem>>, vector<16x16xf32>
    %c0_32 = arith.constant 0 : index
    %c0_33 = arith.constant 0 : index
    %58 = vector.load %arg13[%c0_32, %c0_33] : memref<1x16xf32, #tpu.memory_space<vmem>>, vector<1x16xf32>
    %c0_34 = arith.constant 0 : index
    %c0_35 = arith.constant 0 : index
    %59 = vector.load %arg14[%c0_34, %c0_35] : memref<16x2xf32, #tpu.memory_space<vmem>>, vector<16x2xf32>
    %c0_36 = arith.constant 0 : index
    %c0_37 = arith.constant 0 : index
    %60 = vector.load %arg15[%c0_36, %c0_37] : memref<1x2xf32, #tpu.memory_space<vmem>>, vector<1x2xf32>
    %cst_38 = arith.constant dense<0.000000e+00> : vector<128x17xf32>
    %61 = tpu.matmul %52, %55, %cst_38 {dimension_numbers = #tpu.dot_dimension_numbers<[1], [0], [0], [1], [0, 0, 1, 1], [], []>} : vector<128x16xf32>, vector<16x17xf32>, vector<128x17xf32> -> vector<128x17xf32>
    %cst_39 = arith.constant dense<0.000000e+00> : vector<128x17xf32>
    %62 = tpu.matmul %53, %55, %cst_39 {dimension_numbers = #tpu.dot_dimension_numbers<[1], [0], [0], [1], [0, 0, 1, 1], [], []>} : vector<128x16xf32>, vector<16x17xf32>, vector<128x17xf32> -> vector<128x17xf32>
    %cst_40 = arith.constant dense<0.000000e+00> : vector<128x17xf32>
    %63 = tpu.matmul %54, %55, %cst_40 {dimension_numbers = #tpu.dot_dimension_numbers<[1], [0], [0], [1], [0, 0, 1, 1], [], []>} : vector<128x16xf32>, vector<16x17xf32>, vector<128x17xf32> -> vector<128x17xf32>
    %64 = vector.extract_strided_slice %61 {offsets = [0, 0], sizes = [128, 16], strides = [1, 1]} : vector<128x17xf32> to vector<128x16xf32>
    %65 = vector.extract_strided_slice %62 {offsets = [0, 0], sizes = [128, 16], strides = [1, 1]} : vector<128x17xf32> to vector<128x16xf32>
    %66 = vector.extract_strided_slice %63 {offsets = [0, 0], sizes = [128, 16], strides = [1, 1]} : vector<128x17xf32> to vector<128x16xf32>
    %67 = vector.extract_strided_slice %61 {offsets = [0, 16], sizes = [128, 1], strides = [1, 1]} : vector<128x17xf32> to vector<128x1xf32>
    %68 = vector.extract_strided_slice %62 {offsets = [0, 16], sizes = [128, 1], strides = [1, 1]} : vector<128x17xf32> to vector<128x1xf32>
    %69 = vector.extract_strided_slice %63 {offsets = [0, 16], sizes = [128, 1], strides = [1, 1]} : vector<128x17xf32> to vector<128x1xf32>
    %70 = arith.mulf %64, %64 : vector<128x16xf32>
    %71 = arith.mulf %65, %65 : vector<128x16xf32>
    %72 = arith.addf %70, %71 : vector<128x16xf32>
    %73 = arith.mulf %66, %66 : vector<128x16xf32>
    %74 = arith.addf %72, %73 : vector<128x16xf32>
    %75 = math.sqrt %74 : vector<128x16xf32>
    %cst_41 = arith.constant dense<0.000000e+00> : vector<128x16xf32>
    %76 = tpu.matmul %51, %56, %cst_41 {dimension_numbers = #tpu.dot_dimension_numbers<[1], [0], [0], [1], [0, 0, 1, 1], [], []>} : vector<128x16xf32>, vector<16x16xf32>, vector<128x16xf32> -> vector<128x16xf32>
    %cst_42 = arith.constant dense<0.000000e+00> : vector<128x16xf32>
    %77 = tpu.matmul %75, %57, %cst_42 {dimension_numbers = #tpu.dot_dimension_numbers<[1], [0], [0], [1], [0, 0, 1, 1], [], []>} : vector<128x16xf32>, vector<16x16xf32>, vector<128x16xf32> -> vector<128x16xf32>
    %78 = arith.addf %76, %77 : vector<128x16xf32>
    %79 = vector.broadcast %58 : vector<1x16xf32> to vector<128x16xf32>
    %80 = arith.addf %78, %79 : vector<128x16xf32>
    %cst_43 = arith.constant 5.000000e-01 : f32
    %81 = vector.broadcast %cst_43 : f32 to vector<128x16xf32>
    %82 = arith.mulf %81, %80 : vector<128x16xf32>
    %83 = math.tanh %82 : vector<128x16xf32>
    %cst_44 = arith.constant 1.000000e+00 : f32
    %84 = vector.broadcast %cst_44 : f32 to vector<128x16xf32>
    %85 = arith.addf %83, %84 : vector<128x16xf32>
    %cst_45 = arith.constant 5.000000e-01 : f32
    %86 = vector.broadcast %cst_45 : f32 to vector<128x16xf32>
    %87 = arith.mulf %86, %85 : vector<128x16xf32>
    %88 = arith.mulf %80, %87 : vector<128x16xf32>
    %cst_46 = arith.constant dense<0.000000e+00> : vector<128x2xf32>
    %89 = tpu.matmul %88, %59, %cst_46 {dimension_numbers = #tpu.dot_dimension_numbers<[1], [0], [0], [1], [0, 0, 1, 1], [], []>} : vector<128x16xf32>, vector<16x2xf32>, vector<128x2xf32> -> vector<128x2xf32>
    %90 = vector.broadcast %60 : vector<1x2xf32> to vector<128x2xf32>
    %91 = arith.addf %89, %90 : vector<128x2xf32>
    %92 = vector.extract_strided_slice %91 {offsets = [0, 0], sizes = [128, 1], strides = [1, 1]} : vector<128x2xf32> to vector<128x1xf32>
    %93 = vector.extract_strided_slice %91 {offsets = [0, 1], sizes = [128, 1], strides = [1, 1]} : vector<128x2xf32> to vector<128x1xf32>
    %94 = arith.mulf %93, %67 : vector<128x1xf32>
    %95 = arith.mulf %93, %68 : vector<128x1xf32>
    %96 = arith.mulf %93, %69 : vector<128x1xf32>
    %c128_i32 = arith.constant 128 : i32
    %97 = arith.muli %arg0, %c128_i32 : i32
    %98 = tpu.iota {dimensions = array<i32: 0>} : vector<128x1xi32>
    %99 = vector.broadcast %97 : i32 to vector<128x1xi32>
    %100 = arith.addi %99, %98 : vector<128x1xi32>
    %c200_i32 = arith.constant 200 : i32
    %101 = vector.broadcast %c200_i32 : i32 to vector<128x1xi32>
    %102 = arith.cmpi slt, %100, %101 : vector<128x1xi32>
    %cst_47 = arith.constant 0.000000e+00 : f32
    %103 = vector.broadcast %cst_47 : f32 to vector<128x1xf32>
    %104 = arith.select %102, %92, %103 : vector<128x1xi1>, vector<128x1xf32>
    %105 = tpu.iota {dimensions = array<i32: 0>} : vector<2x128xi32>
    %c0_48 = arith.constant 0 : index
    %c0_49 = arith.constant 0 : index
    %106 = vector.load %arg3[%c0_48, %c0_49] : memref<1x128xi32, #tpu.memory_space<vmem>>, vector<1x128xi32>
    %107 = vector.broadcast %106 : vector<1x128xi32> to vector<2x128xi32>
    %108 = arith.cmpi eq, %105, %107 : vector<2x128xi32>
    %109 = arith.extui %108 : vector<2x128xi1> to vector<2x128xi32>
    %110 = arith.sitofp %109 : vector<2x128xi32> to vector<2x128xf32>
    %cst_50 = arith.constant dense<0.000000e+00> : vector<2x1xf32>
    %111 = tpu.matmul %110, %104, %cst_50 {dimension_numbers = #tpu.dot_dimension_numbers<[1], [0], [0], [1], [0, 0, 1, 1], [], []>} : vector<2x128xf32>, vector<128x1xf32>, vector<2x1xf32> -> vector<2x1xf32>
    %c0_51 = arith.constant 0 : index
    %c0_52 = arith.constant 0 : index
    %c0_53 = arith.constant 0 : index
    %112 = vector.load %arg16[%c0_51, %c0_52, %c0_53] : memref<1x2x1xf32, #tpu.memory_space<vmem>>, vector<1x2x1xf32>
    %113 = vector.shape_cast %112 : vector<1x2x1xf32> to vector<2x1xf32>
    %114 = vector.shape_cast %111 : vector<2x1xf32> to vector<1x2x1xf32>
    tpu.vector_store %arg16[%c0_51, %c0_52, %c0_53], %114 {strides = array<i32>} : memref<1x2x1xf32, #tpu.memory_space<vmem>>, vector<1x2x1xf32>,
    %115 = tpu.concatenate %94, %95, %96 in 1 : vector<128x1xf32>, vector<128x1xf32>, vector<128x1xf32> -> vector<128x3xf32>
    %c0_54 = arith.constant 0 : index
    %c0_55 = arith.constant 0 : index
    %116 = vector.load %arg17[%c0_54, %c0_55] : memref<128x3xf32, #tpu.memory_space<vmem>>, vector<128x3xf32>
    tpu.vector_store %arg17[%c0_54, %c0_55], %115 {strides = array<i32>} : memref<128x3xf32, #tpu.memory_space<vmem>>, vector<128x3xf32>,
    return
  }
  func.func @transform_0(%arg0: i32) -> (i32, i32) {
    %c0_i32 = arith.constant 0 : i32
    %c0_i32_0 = arith.constant 0 : i32
    return %arg0, %c0_i32 : i32, i32
  }
  func.func @transform_1(%arg0: i32) -> (i32, i32) {
    %c0_i32 = arith.constant 0 : i32
    %c0_i32_0 = arith.constant 0 : i32
    return %arg0, %c0_i32 : i32, i32
  }
  func.func @transform_2(%arg0: i32) -> (i32, i32) {
    %c0_i32 = arith.constant 0 : i32
    %c0_i32_0 = arith.constant 0 : i32
    return %c0_i32, %arg0 : i32, i32
  }
  func.func @transform_3(%arg0: i32) -> (i32, i32) {
    %c0_i32 = arith.constant 0 : i32
    %c0_i32_0 = arith.constant 0 : i32
    %c0_i32_1 = arith.constant 0 : i32
    return %c0_i32, %c0_i32_0 : i32, i32
  }
  func.func @transform_4(%arg0: i32) -> (i32, i32) {
    %c0_i32 = arith.constant 0 : i32
    %c0_i32_0 = arith.constant 0 : i32
    %c0_i32_1 = arith.constant 0 : i32
    return %c0_i32, %c0_i32_0 : i32, i32
  }
  func.func @transform_5(%arg0: i32) -> (i32, i32) {
    %c0_i32 = arith.constant 0 : i32
    %c0_i32_0 = arith.constant 0 : i32
    %c0_i32_1 = arith.constant 0 : i32
    return %c0_i32, %c0_i32_0 : i32, i32
  }
  func.func @transform_6(%arg0: i32) -> (i32, i32) {
    %c0_i32 = arith.constant 0 : i32
    %c0_i32_0 = arith.constant 0 : i32
    %c0_i32_1 = arith.constant 0 : i32
    return %c0_i32, %c0_i32_0 : i32, i32
  }
  func.func @transform_7(%arg0: i32) -> (i32, i32) {
    %c0_i32 = arith.constant 0 : i32
    %c0_i32_0 = arith.constant 0 : i32
    %c0_i32_1 = arith.constant 0 : i32
    return %c0_i32, %c0_i32_0 : i32, i32
  }
  func.func @transform_8(%arg0: i32) -> (i32, i32) {
    %c0_i32 = arith.constant 0 : i32
    %c0_i32_0 = arith.constant 0 : i32
    %c0_i32_1 = arith.constant 0 : i32
    return %c0_i32, %c0_i32_0 : i32, i32
  }
  func.func @transform_9(%arg0: i32) -> (i32, i32) {
    %c0_i32 = arith.constant 0 : i32
    %c0_i32_0 = arith.constant 0 : i32
    %c0_i32_1 = arith.constant 0 : i32
    return %c0_i32, %c0_i32_0 : i32, i32
  }
  func.func @transform_10(%arg0: i32) -> (i32, i32) {
    %c0_i32 = arith.constant 0 : i32
    %c0_i32_0 = arith.constant 0 : i32
    %c0_i32_1 = arith.constant 0 : i32
    return %c0_i32, %c0_i32_0 : i32, i32
  }
  func.func @transform_11(%arg0: i32) -> (i32, i32) {
    %c0_i32 = arith.constant 0 : i32
    %c0_i32_0 = arith.constant 0 : i32
    %c0_i32_1 = arith.constant 0 : i32
    return %c0_i32, %c0_i32_0 : i32, i32
  }
  func.func @transform_12(%arg0: i32) -> (i32, i32) {
    %c0_i32 = arith.constant 0 : i32
    %c0_i32_0 = arith.constant 0 : i32
    %c0_i32_1 = arith.constant 0 : i32
    return %c0_i32, %c0_i32_0 : i32, i32
  }
  func.func @transform_13(%arg0: i32) -> (i32, i32) {
    %c0_i32 = arith.constant 0 : i32
    %c0_i32_0 = arith.constant 0 : i32
    %c0_i32_1 = arith.constant 0 : i32
    return %c0_i32, %c0_i32_0 : i32, i32
  }
  func.func @transform_14(%arg0: i32) -> (i32, i32) {
    %c0_i32 = arith.constant 0 : i32
    %c0_i32_0 = arith.constant 0 : i32
    %c0_i32_1 = arith.constant 0 : i32
    return %c0_i32, %c0_i32_0 : i32, i32
  }
  func.func @transform_15(%arg0: i32) -> (i32, i32, i32) {
    %c0_i32 = arith.constant 0 : i32
    %c0_i32_0 = arith.constant 0 : i32
    %c0_i32_1 = arith.constant 0 : i32
    return %arg0, %c0_i32, %c0_i32_0 : i32, i32, i32
  }
  func.func @transform_16(%arg0: i32) -> (i32, i32) {
    %c0_i32 = arith.constant 0 : i32
    %c0_i32_0 = arith.constant 0 : i32
    return %arg0, %c0_i32 : i32, i32
  }
}

</mosaic_0001>

<bundles_post_ra>
// kernel: tpu_custom_call.1
= control target key start
LH: loop header
LB: loop body
LE: loop exit
PB: predicated region body
PF: predicated region fallthrough
CT: control target
= control target key end

     0   :  { %s8179_s0 = inlined_call_operand.vmem [shape: f32[200,32], index: 0, kind: input, shape index: {}]   ;;  %s8180_s1 = inlined_call_operand.vmem [shape: f32[200,96], index: 1, kind: input, shape index: {}]   ;;  %s8181_s2 = inlined_call_operand.vmem [shape: s32[1,200], index: 2, kind: input, shape index: {}]   ;;  %s8182_s3 = inlined_call_operand.vmem [shape: f32[32,48], index: 3, kind: input, shape index: {}]   ;;  %s8183_s4 = inlined_call_operand.vmem [shape: f32[32,32], index: 4, kind: input, shape index: {}]   ;;  %s8184_s5 = inlined_call_operand.vmem [shape: f32[32,32], index: 5, kind: input, shape index: {}]   ;;  %s8185_s6 = inlined_call_operand.vmem [shape: f32[1,32], index: 6, kind: input, shape index: {}]   ;;  %s8186_s7 = inlined_call_operand.vmem [shape: f32[32,32], index: 7, kind: input, shape index: {}]   ;;  %s8187_s8 = inlined_call_operand.vmem [shape: f32[1,32], index: 8, kind: input, shape index: {}]   ;;  %s8188_s9 = inlined_call_operand.vmem [shape: f32[16,17], index: 9, kind: input, shape index: {}]   ;;  %s8189_s10 = inlined_call_operand.vmem [shape: f32[16,16], index: 10, kind: input, shape index: {}]   ;;  %s8190_s11 = inlined_call_operand.vmem [shape: f32[16,16], index: 11, kind: input, shape index: {}]   ;;  %s8191_s12 = inlined_call_operand.vmem [shape: f32[1,16], index: 12, kind: input, shape index: {}]   ;;  %s8192_s13 = inlined_call_operand.vmem [shape: f32[16,2], index: 13, kind: input, shape index: {}]   ;;  %s8193_s14 = inlined_call_operand.vmem [shape: f32[1,2], index: 14, kind: input, shape index: {}]   ;;  %s8194_s15 = inlined_call_operand.vmem [shape: f32[2,2,1], index: 15, kind: output, shape index: {0}]   ;;  %s8195_s16 = inlined_call_operand.vmem [shape: f32[200,3], index: 16, kind: output, shape index: {1}]  }
   0x1   :  { %8203 = sst [smem:[#allocation9_spill]] %s8179_s0 }
   0x2   :  { %8204 = sst [smem:[#allocation10_spill]] %s8180_s1 }
   0x3   :  { %8205 = sst [smem:[#allocation11_spill]] %s8181_s2 }
   0x4   :  { %8206 = sst [smem:[#allocation12_spill]] %s8182_s3 }
   0x5   :  { %s6392_s21 = smov 0   ;;  %s6394_s22 = smov 0  }
   0x6   :  { %s6396_s23 = smov 0  }
   0x7 LB: > { %s6405_s24 = sadd.s32 4294967295, %s6263_s23   ;;  %s6407_s25 = sadd.s32 1, %s6263_s23   ;;  %s6263_s23 = sphi %s6396_s23, %s8229_s23   ;;  %s6259_s22 = sphi %s6394_s22, %s8228_s22   ;;  %s6255_s21 = sphi %s6392_s21, %s8227_s21  }
   0x8   : > { %s387_s26 = ssub.s32 %s6263_s23, %s6407_s25  ;;  %s390_s27 = sadd.s32 1, %s6259_s22 }
   0x9   : > { %p388_p0 = scmp.eq.s32.totalorder %s387_s26, 0  ;;  %p400_p1 = scmp.ne.s32.totalorder %s6259_s22, %s6255_s21 }
   0xa   : > { %p401_p2 = scmp.eq.s32.totalorder %s6405_s24, 1  ;;  %p4932_p3 = scmp.ge.s32.totalorder %s6263_s23, 1 }
   0xb   : > { %s6415_s28 = scalar_select %p388_p0, %s6259_s22, %s390_s27  }
   0xc   : > { %p6417_p4 = por %p401_p2, %p400_p1  ;;  %p501_p5 = scmp.lt.s32.totalorder %s6263_s23, 3 }
   0xd   : > { %8207 = sst [smem:[#allocation3_spill]] %s6415_s28 }
   0xe   : > { %p502_p6 = pnand %p4932_p3, %p501_p5 }
  0x10   : > { %505 = sbr.rel (%p502_p6) target bundleno = 2096 (0x830), region = 80 }
  0x17   : > { %s6422_s30 = sshll.u32 %s6405_s24, 4  ;;  %s8209_s3 = sld [smem:[#allocation12_spill]]  ;;  %vm660_vm0 = vcmask 261120   ;;  %v650_v54 = vld [vmem:[%s8184_s5] sm:$0xff]  ;;  %v651_v55 = vld [vmem:[%s8184_s5 + $0x8] sm:$0xff]  ;;  %v652_v59 = vld [vmem:[%s8184_s5 + $0x10] sm:$0xff] }
  0x18   : > { %p575_p7 = scmp.lt.s32.totalorder %s6422_s30, 24  ;;  %s8210_s1 = sld [smem:[#allocation10_spill]]  ;;  %v5839_v57 = vpack.c.bf16 %v651_v55, %v650_v54  ;;  %v653_v60 = vld [vmem:[%s8184_s5 + $0x18] sm:$0xff] }
  0x19   : > { %s6297_s20 = smov 64   ;;  %s6298_s26 = smov 96   ;;  %v5843_v62 = vpack.c.bf16 %v653_v60, %v652_v59 }
  0x1a   : > { %s6438_s28 = scalar_select %p575_p7, %s6422_s30, 24 }
  0x1b   : > { %s6300_s27 = smov 113   ;;  %s6305_s17 = smov 1  }
  0x1c   : > { %s4935_s0 = sshll.u32 %s6438_s28, 3  ;;  %p598_p8 = scmp.lt.s32.totalorder %s6405_s24, 1 }
  0x1d   : > { %v642_v0 = vld [vmem:[%s8209_s3] sm:$0xff]  ;;  %v643_v1 = vld [vmem:[%s8209_s3 + $0x8] sm:$0xff]  ;;  %v644_v2 = vld [vmem:[%s8209_s3 + $0x10] sm:$0xff]  ;;  %s8222_s2 = sld [smem:[#allocation11_spill]]  ;;  %s567_s23 = sand.u32 1, %s6255_s21  }
  0x1e   : > { %v5815_v3 = vpack.c.bf16 %v643_v1, %v642_v0  ;;  %v645_v4 = vld [vmem:[%s8209_s3 + $0x18] sm:$0xff]  ;;  %s6446_s19 = scalar_lea.vmem %s8210_s1, %s4935_s0 }
  0x1f   : > { %v5819_v5 = vpack.c.bf16 %v645_v4, %v644_v2  ;;  %v626_v6 = vld [vmem:[%s6446_s19] sm:$0xff]  ;;  %v627_v7 = vld [vmem:[%s6446_s19 + $0x8] sm:$0xff]  ;;  %v628_v8 = vld [vmem:[%s6446_s19 + $0x10] sm:$0xff]  ;;  %s7896_s18 = scalar_select %p598_p8, %s6405_s24, 1 }
  0x20   : > { %5816 = vmatprep.subr.bf16.mxu0 %v5815_v3  ;;  %5824 = vmatprep.subr.bf16.mxu1 %v5815_v3  ;;  %v629_v9 = vld [vmem:[%s6446_s19 + $0x18] sm:$0xff]  ;;  %v630_v10 = vld [vmem:[%s6446_s19 + $0x20] sm:$0xff]  ;;  %v631_v11 = vld [vmem:[%s6446_s19 + $0x28] sm:$0xff] }
  0x21   : > { %5818 = vmatpush3.bf16.msra.mxu0 %v5815_v3  ;;  %5826 = vmatpush3.bf16.msra.mxu1 %v5815_v3  ;;  %v632_v12 = vld [vmem:[%s6446_s19 + $0x30] sm:$0xff]  ;;  %v633_v13 = vld [vmem:[%s6446_s19 + $0x38] sm:$0xff]  ;;  %v634_v14 = vld [vmem:[%s6446_s19 + $0x40] sm:$0xff] }
  0x22   : > { %5820 = vmatprep.subr.bf16.mxu0 %v5819_v5  ;;  %5828 = vmatprep.subr.bf16.mxu1 %v5819_v5  ;;  %v635_v15 = vld [vmem:[%s6446_s19 + $0x48] sm:$0xff]  ;;  %v636_v16 = vld [vmem:[%s6446_s19 + $0x50] sm:$0xff]  ;;  %v637_v17 = vld [vmem:[%s6446_s19 + $0x58] sm:$0xff] }
  0x23   : > { %1063 = vrot.lane.b32.xlu1 %v626_v6, %s6297_s20  ;;  %854 = vrot.lane.b32.xlu0 %v626_v6, %s6298_s26  ;;  %v638_v18 = vld [vmem:[%s6446_s19 + $0x60] sm:$0xff]  ;;  %v639_v19 = vld [vmem:[%s6446_s19 + $0x68] sm:$0xff]  ;;  %s600_s28 = scalar_lea.vmem %s8222_s2, %s7896_s18 }
  0x24   : > { %5428 = vmatprep.mubr.msk.f32.mxu0 %vm660_vm0, %v626_v6  ;;  %v640_v20 = vld [vmem:[%s6446_s19 + $0x70] sm:$0xff]  ;;  %v641_v21 = vld [vmem:[%s6446_s19 + $0x78] sm:$0xff]  ;;  %s6299_s19 = smov 112  }
  0x25   : > { %5822 = vmatpush3.bf16.msra.mxu0 %v5819_v5  ;;  %5830 = vmatpush3.bf16.msra.mxu1 %v5819_v5 }
  0x26   : > { %5832 = vmatprep.subr.bf16.mxu0 %v5815_v3  ;;  %5840 = vmatprep.subr.bf16.mxu1 %v5839_v57 }
  0x27   : > { %1065 = vrot.lane.b32.xlu1 %v627_v7, %s6297_s20  ;;  %856 = vrot.lane.b32.xlu0 %v627_v7, %s6298_s26 }
  0x28   : > { %5429 = vmatmul.mubr.msk.f32.vlgmr.msra.gmra.mrb[0].mxu0 %vm660_vm0, %v627_v7 }
  0x29   : > { %5431 = vmatprep.mubr.msk.f32.mxu0 %vm660_vm0, %v628_v8  ;;  %5834 = vmatpush3.bf16.msra.mxu0 %v5815_v3 }
  0x2a   : > { %5836 = vmatprep.subr.bf16.mxu0 %v5819_v5 }
  0x2b   : > { %858 = vrot.lane.b32.xlu0 %v628_v8, %s6298_s26  ;;  %860 = vrot.lane.b32.xlu1 %v629_v9, %s6298_s26 }
  0x2c   : > { %5432 = vmatmul.mubr.msk.f32.gmra.mrb[2].mxu0 %vm660_vm0, %v629_v9 }
  0x2d   : > { %5434 = vmatprep.mubr.msk.f32.mxu0 %vm660_vm0, %v630_v10  ;;  %5838 = vmatpush3.bf16.msra.mxu0 %v5819_v5 }
  0x2f   : > { %1067 = vrot.lane.b32.xlu0 %v628_v8, %s6297_s20  ;;  %1069 = vrot.lane.b32.xlu1 %v629_v9, %s6297_s20 }
  0x30   : > { %5435 = vmatmul.mubr.msk.f32.gmra.mrb[4].mxu0 %vm660_vm0, %v631_v11 }
  0x31   : > { %5437 = vmatprep.mubr.msk.f32.mxu0 %vm660_vm0, %v632_v12 }
  0x33   : > { %862 = vrot.lane.b32.xlu0 %v630_v10, %s6298_s26  ;;  %864 = vrot.lane.b32.xlu1 %v631_v11, %s6298_s26 }
  0x34   : > { %5438 = vmatmul.mubr.msk.f32.gmra.mrb[6].mxu0 %vm660_vm0, %v633_v13 }
  0x35   : > { %5440 = vmatprep.mubr.msk.f32.mxu0 %vm660_vm0, %v634_v14 }
  0x37   : > { %1071 = vrot.lane.b32.xlu0 %v630_v10, %s6297_s20  ;;  %1073 = vrot.lane.b32.xlu1 %v631_v11, %s6297_s20 }
  0x38   : > { %5441 = vmatmul.mubr.msk.f32.gmra.mrb[8].mxu0 %vm660_vm0, %v635_v15 }
  0x39   : > { %5443 = vmatprep.mubr.msk.f32.mxu0 %vm660_vm0, %v636_v16 }
  0x3b   : > { %866 = vrot.lane.b32.xlu0 %v632_v12, %s6298_s26  ;;  %868 = vrot.lane.b32.xlu1 %v633_v13, %s6298_s26 }
  0x3c   : > { %5444 = vmatmul.mubr.msk.f32.gmra.mrb[10].mxu0 %vm660_vm0, %v637_v17 }
  0x3d   : > { %5446 = vmatprep.mubr.msk.f32.mxu0 %vm660_vm0, %v638_v18 }
  0x3f   : > { %1075 = vrot.lane.b32.xlu0 %v632_v12, %s6297_s20  ;;  %1077 = vrot.lane.b32.xlu1 %v633_v13, %s6297_s20  ;;  %v646_v12 = vld [vmem:[%s8183_s4] sm:$0xff]  ;;  %v647_v13 = vld [vmem:[%s8183_s4 + $0x8] sm:$0xff] }
  0x40   : > { %5447 = vmatmul.mubr.msk.f32.gmra.mrb[12].mxu0 %vm660_vm0, %v639_v19 }
  0x41   : > { %5449 = vmatprep.mubr.msk.f32.mxu0 %vm660_vm0, %v640_v20 }
  0x43   : > { %870 = vrot.lane.b32.xlu0 %v634_v14, %s6298_s26  ;;  %872 = vrot.lane.b32.xlu1 %v635_v15, %s6298_s26 }
  0x44   : > { %5450 = vmatmul.mubr.msk.f32.gmra.mrb[14].mxu0 %vm660_vm0, %v641_v21 }
  0x47   : > { %1079 = vrot.lane.b32.xlu0 %v634_v14, %s6297_s20  ;;  %1081 = vrot.lane.b32.xlu1 %v635_v15, %s6297_s20  ;;  %v6614_v14 = vpack.c.bf16 %v647_v13, %v646_v12 }
  0x4b   : > { %874 = vrot.lane.b32.xlu0 %v636_v16, %s6298_s26  ;;  %876 = vrot.lane.b32.xlu1 %v637_v17, %s6298_s26 }
  0x4f   : > { %1083 = vrot.lane.b32.xlu0 %v636_v16, %s6297_s20  ;;  %1085 = vrot.lane.b32.xlu1 %v637_v17, %s6297_s20 }
  0x53   : > { %878 = vrot.lane.b32.xlu0 %v638_v18, %s6298_s26  ;;  %880 = vrot.lane.b32.xlu1 %v639_v19, %s6298_s26 }
  0x57   : > { %1087 = vrot.lane.b32.xlu0 %v638_v18, %s6297_s20  ;;  %1089 = vrot.lane.b32.xlu1 %v639_v19, %s6297_s20 }
  0x5b   : > { %882 = vrot.lane.b32.xlu0 %v640_v20, %s6298_s26  ;;  %884 = vrot.lane.b32.xlu1 %v641_v21, %s6298_s26 }
  0x5f   : > { %1091 = vrot.lane.b32.xlu0 %v640_v20, %s6297_s20  ;;  %1093 = vrot.lane.b32.xlu1 %v641_v21, %s6297_s20  ;;  %s8211_s20 = sld [smem:[#allocation9_spill]] }
  0x65   : > { %s6801_s26 = scalar_lea.vmem %s8211_s20, %s4935_s0  ;;  %s5135_s0 = sshll.u32 %s6405_s24, 7 }
  0x66   : > { %s8086_s1 = scalar_lea.vmem (%p6417_p4), %s8195_s16, %s5135_s0  }
  0x95   : > { %v1064_v22 = vpop.permute.xlu1 %1063  ;;  %v855_v23 = vpop.permute.xlu0 %854 }
  0x96   : > { %5460 = vmatprep.mubr.msk.f32.mxu1 %vm660_vm0, %v855_v23  ;;  %5492 = vmatprep.mubr.msk.f32.mxu0 %vm660_vm0, %v1064_v22 }
  0x99   : > { %v1066_v24 = vpop.permute.xlu1 %1065  ;;  %v857_v25 = vpop.permute.xlu0 %856 }
  0x9a   : > { %5461 = vmatmul.mubr.msk.f32.vlgmr.msra.gmra.mrb[0].mxu1 %vm660_vm0, %v857_v25  ;;  %5493 = vmatmul.mubr.msk.f32.vlgmr.msra.gmra.mrb[16].mxu0 %vm660_vm0, %v1066_v24 }
  0x9b   : > { %5842 = vmatpush3.bf16.msra.mxu1 %v5839_v57 }
  0x9c   : > { %5844 = vmatprep.subr.bf16.mxu1 %v5843_v62 }
  0x9d   : > { %v859_v26 = vpop.permute.xlu0 %858  ;;  %v861_v27 = vpop.permute.xlu1 %860 }
  0x9e   : > { %5463 = vmatprep.mubr.msk.f32.mxu1 %vm660_vm0, %v859_v26 }
  0x9f   : > { %5464 = vmatmul.mubr.msk.f32.gmra.mrb[2].mxu1 %vm660_vm0, %v861_v27 }
  0xa0   : > { %5846 = vmatpush3.bf16.msra.mxu1 %v5843_v62 }
  0xa1   : > { %v1068_v28 = vpop.permute.xlu0 %1067  ;;  %v1070_v29 = vpop.permute.xlu1 %1069  ;;  %5848 = vmatprep.subr.bf16.mxu1 %v6614_v14 }
  0xa2   : > { %5495 = vmatprep.mubr.msk.f32.mxu0 %vm660_vm0, %v1068_v28 }
  0xa3   : > { %5496 = vmatmul.mubr.msk.f32.gmra.mrb[18].mxu0 %vm660_vm0, %v1070_v29 }
  0xa5   : > { %v863_v30 = vpop.permute.xlu0 %862  ;;  %v865_v31 = vpop.permute.xlu1 %864 }
  0xa6   : > { %5466 = vmatprep.mubr.msk.f32.mxu1 %vm660_vm0, %v863_v30 }
  0xa7   : > { %5467 = vmatmul.mubr.msk.f32.gmra.mrb[4].mxu1 %vm660_vm0, %v865_v31 }
  0xa9   : > { %v1072_v32 = vpop.permute.xlu0 %1071  ;;  %v1074_v33 = vpop.permute.xlu1 %1073 }
  0xaa   : > { %5498 = vmatprep.mubr.msk.f32.mxu0 %vm660_vm0, %v1072_v32 }
  0xab   : > { %5499 = vmatmul.mubr.msk.f32.gmra.mrb[20].mxu0 %vm660_vm0, %v1074_v33 }
  0xad   : > { %v867_v34 = vpop.permute.xlu0 %866  ;;  %v869_v35 = vpop.permute.xlu1 %868 }
  0xae   : > { %5469 = vmatprep.mubr.msk.f32.mxu1 %vm660_vm0, %v867_v34 }
  0xaf   : > { %5470 = vmatmul.mubr.msk.f32.gmra.mrb[6].mxu1 %vm660_vm0, %v869_v35 }
  0xb1   : > { %v1076_v36 = vpop.permute.xlu0 %1075  ;;  %v1078_v37 = vpop.permute.xlu1 %1077 }
  0xb2   : > { %5501 = vmatprep.mubr.msk.f32.mxu0 %vm660_vm0, %v1076_v36 }
  0xb3   : > { %5502 = vmatmul.mubr.msk.f32.gmra.mrb[22].mxu0 %vm660_vm0, %v1078_v37 }
  0xb5   : > { %v871_v38 = vpop.permute.xlu0 %870  ;;  %v873_v39 = vpop.permute.xlu1 %872 }
  0xb6   : > { %5472 = vmatprep.mubr.msk.f32.mxu1 %vm660_vm0, %v871_v38 }
  0xb7   : > { %5473 = vmatmul.mubr.msk.f32.gmra.mrb[8].mxu1 %vm660_vm0, %v873_v39 }
  0xb9   : > { %v1080_v40 = vpop.permute.xlu0 %1079  ;;  %v1082_v41 = vpop.permute.xlu1 %1081 }
  0xba   : > { %5504 = vmatprep.mubr.msk.f32.mxu0 %vm660_vm0, %v1080_v40 }
  0xbb   : > { %5505 = vmatmul.mubr.msk.f32.gmra.mrb[24].mxu0 %vm660_vm0, %v1082_v41 }
  0xbd   : > { %v875_v42 = vpop.permute.xlu0 %874  ;;  %v877_v43 = vpop.permute.xlu1 %876 }
  0xbe   : > { %5475 = vmatprep.mubr.msk.f32.mxu1 %vm660_vm0, %v875_v42 }
  0xbf   : > { %5476 = vmatmul.mubr.msk.f32.gmra.mrb[10].mxu1 %vm660_vm0, %v877_v43 }
  0xc1   : > { %v1084_v44 = vpop.permute.xlu0 %1083  ;;  %v1086_v45 = vpop.permute.xlu1 %1085 }
  0xc2   : > { %5507 = vmatprep.mubr.msk.f32.mxu0 %vm660_vm0, %v1084_v44 }
  0xc3   : > { %5508 = vmatmul.mubr.msk.f32.gmra.mrb[26].mxu0 %vm660_vm0, %v1086_v45 }
  0xc5   : > { %v879_v46 = vpop.permute.xlu0 %878  ;;  %v881_v47 = vpop.permute.xlu1 %880 }
  0xc6   : > { %5478 = vmatprep.mubr.msk.f32.mxu1 %vm660_vm0, %v879_v46 }
  0xc7   : > { %5479 = vmatmul.mubr.msk.f32.gmra.mrb[12].mxu1 %vm660_vm0, %v881_v47 }
  0xc9   : > { %v1088_v48 = vpop.permute.xlu0 %1087  ;;  %v1090_v49 = vpop.permute.xlu1 %1089 }
  0xca   : > { %5510 = vmatprep.mubr.msk.f32.mxu0 %vm660_vm0, %v1088_v48 }
  0xcb   : > { %5511 = vmatmul.mubr.msk.f32.gmra.mrb[28].mxu0 %vm660_vm0, %v1090_v49 }
  0xcd   : > { %v883_v50 = vpop.permute.xlu0 %882  ;;  %v885_v51 = vpop.permute.xlu1 %884 }
  0xce   : > { %5481 = vmatprep.mubr.msk.f32.mxu1 %vm660_vm0, %v883_v50  ;;  %v648_v50 = vld [vmem:[%s8183_s4 + $0x10] sm:$0xff] }
  0xcf   : > { %5482 = vmatmul.mubr.msk.f32.gmra.mrb[14].mxu1 %vm660_vm0, %v885_v51  ;;  %v649_v51 = vld [vmem:[%s8183_s4 + $0x18] sm:$0xff] }
  0xd0   : > { %v5851_v62 = vpack.c.bf16 %v649_v51, %v648_v50 }
  0xd1   : > { %v1092_v52 = vpop.permute.xlu0 %1091  ;;  %v1094_v53 = vpop.permute.xlu1 %1093 }
  0xd2   : > { %5513 = vmatprep.mubr.msk.f32.mxu0 %vm660_vm0, %v1092_v52 }
  0xd3   : > { %5514 = vmatmul.mubr.msk.f32.gmra.mrb[30].mxu0 %vm660_vm0, %v1094_v53 }
  0xfb   : > { %v5430_v56 = vpop.f32.mrb[0].mxu0 }
  0xfc   : > { %2249 = vrot.lane.b32.xlu1 %v5430_v56, %s6299_s19  ;;  %v775_v58 = vpop.f32.mrb[1].mxu0  ;;  %v1273_v17 = vmul.f32 %v5430_v56, %v5430_v56 }
  0xfd   : > { %2247 = vrot.lane.b32.xlu0 %v775_v58, %s6299_s19  ;;  %v1272_v22 = vmul.f32 %v775_v58, %v775_v58 }
  0xff   : > { %v5433_v61 = vpop.f32.mrb[2].mxu0 }
 0x100   : > { %2253 = vrot.lane.b32.xlu1 %v5433_v61, %s6299_s19  ;;  %v785_v63 = vpop.f32.mrb[3].mxu0  ;;  %v1275_v29 = vmul.f32 %v5433_v61, %v5433_v61 }
 0x101   : > { %2251 = vrot.lane.b32.xlu0 %v785_v63, %s6299_s19  ;;  %v1274_v33 = vmul.f32 %v785_v63, %v785_v63 }
 0x103   : > { %v6560_v0 = vpop.f32.mrb[4].mxu0 }
 0x104   : > { %2257 = vrot.lane.b32.xlu1 %v6560_v0, %s6299_s19  ;;  %v6564_v1 = vpop.f32.mrb[5].mxu0  ;;  %v1277_v44 = vmul.f32 %v6560_v0, %v6560_v0 }
 0x105   : > { %2255 = vrot.lane.b32.xlu0 %v6564_v1, %s6299_s19  ;;  %v1276_v47 = vmul.f32 %v6564_v1, %v6564_v1 }
 0x107   : > { %v6568_v2 = vpop.f32.mrb[6].mxu0 }
 0x108   : > { %2261 = vrot.lane.b32.xlu1 %v6568_v2, %s6299_s19  ;;  %v6572_v3 = vpop.f32.mrb[7].mxu0  ;;  %v1279_v56 = vmul.f32 %v6568_v2, %v6568_v2 }
 0x109   : > { %2259 = vrot.lane.b32.xlu0 %v6572_v3, %s6299_s19 }
 0x10b   : > { %v6576_v4 = vpop.f32.mrb[8].mxu0 }
 0x10c   : > { %2265 = vrot.lane.b32.xlu1 %v6576_v4, %s6299_s19  ;;  %v6580_v5 = vpop.f32.mrb[9].mxu0 }
 0x10d   : > { %2263 = vrot.lane.b32.xlu0 %v6580_v5, %s6299_s19 }
 0x10f   : > { %v6584_v6 = vpop.f32.mrb[10].mxu0 }
 0x110   : > { %2269 = vrot.lane.b32.xlu1 %v6584_v6, %s6299_s19  ;;  %v6588_v7 = vpop.f32.mrb[11].mxu0 }
 0x111   : > { %2267 = vrot.lane.b32.xlu0 %v6588_v7, %s6299_s19 }
 0x113   : > { %v6592_v8 = vpop.f32.mrb[12].mxu0 }
 0x114   : > { %2273 = vrot.lane.b32.xlu1 %v6592_v8, %s6299_s19  ;;  %v6596_v9 = vpop.f32.mrb[13].mxu0 }
 0x115   : > { %2271 = vrot.lane.b32.xlu0 %v6596_v9, %s6299_s19 }
 0x117   : > { %v6600_v10 = vpop.f32.mrb[14].mxu0 }
 0x118   : > { %2277 = vrot.lane.b32.xlu1 %v6600_v10, %s6299_s19  ;;  %v6604_v11 = vpop.f32.mrb[15].mxu0 }
 0x119   : > { %2275 = vrot.lane.b32.xlu0 %v6604_v11, %s6299_s19 }
 0x16d   : > { %v5462_v15 = vpop.f32.mrb[0].mxu1  ;;  %v5494_v16 = vpop.f32.mrb[16].mxu0 }
 0x16e   : > { %v1289_v18 = vmul.f32 %v5462_v15, %v5462_v15  ;;  %v1321_v19 = vmul.f32 %v5494_v16, %v5494_v16  ;;  %v984_v20 = vpop.f32.mrb[1].mxu1  ;;  %2329 = vrot.lane.b32.xlu1 %v5462_v15, %s6299_s19  ;;  %v1193_v21 = vpop.f32.mrb[17].mxu0 }
 0x16f   : > { %v1288_v23 = vmul.f32 %v984_v20, %v984_v20  ;;  %2327 = vrot.lane.b32.xlu0 %v984_v20, %s6299_s19  ;;  %v1320_v26 = vmul.f32 %v1193_v21, %v1193_v21 }
 0x170   : > { %v1305_v24 = vadd.f32 %v1289_v18, %v1273_v17 }
 0x171   : > { %v1304_v25 = vadd.f32 %v1288_v23, %v1272_v22 }
 0x172   : > { %v6619_v27 = vadd.f32 %v1321_v19, %v1305_v24  ;;  %v5465_v28 = vpop.f32.mrb[2].mxu1  ;;  %2409 = vrot.lane.b32.xlu1 %v5494_v16, %s6299_s19  ;;  %v1278_v19 = vmul.f32 %v6572_v3, %v6572_v3 }
 0x173   : > { %v1336_v30 = vadd.f32 %v1320_v26, %v1304_v25  ;;  %v1291_v31 = vmul.f32 %v5465_v28, %v5465_v28  ;;  %v994_v32 = vpop.f32.mrb[3].mxu1  ;;  %2407 = vrot.lane.b32.xlu0 %v1193_v21, %s6299_s19 }
 0x174   : > { %6049 = vrsqrt.f32 %v6619_v27  ;;  %v1290_v34 = vmul.f32 %v994_v32, %v994_v32  ;;  %vm1361_vm1 = vcmp.eq.f32.partialorder %v6619_v27, inf  ;;  %v1364_v15 = vand.u32 2147483648, %v6619_v27 }
 0x175   : > { %v1307_v35 = vadd.f32 %v1291_v31, %v1275_v29  ;;  %6051 = vrsqrt.f32 %v1336_v30  ;;  %vm1354_vm2 = vcmp.eq.f32.partialorder %v1336_v30, inf  ;;  %v1357_v0 = vand.u32 2147483648, %v1336_v30 }
 0x176   : > { %v1306_v36 = vadd.f32 %v1290_v34, %v1274_v33  ;;  %2333 = vrot.lane.b32.xlu1 %v5465_v28, %s6299_s19  ;;  %v5497_v37 = vpop.f32.mrb[18].mxu0  ;;  %vm1356_vm3 = vcmp.eq.f32.partialorder %v1336_v30, 0.0  ;;  %vm1363_vm4 = vcmp.eq.f32.partialorder %v6619_v27, 0.0 }
 0x177   : > { %v1323_v38 = vmul.f32 %v5497_v37, %v5497_v37  ;;  %2331 = vrot.lane.b32.xlu0 %v994_v32, %s6299_s19  ;;  %v1203_v39 = vpop.f32.mrb[19].mxu0 }
 0x178   : > { %v1322_v40 = vmul.f32 %v1203_v39, %v1203_v39 }
 0x179   : > { %v6626_v41 = vadd.f32 %v1323_v38, %v1307_v35  ;;  %v1281_v38 = vmul.f32 %v6576_v4, %v6576_v4 }
 0x17a   : > { %v6628_v42 = vadd.f32 %v1322_v40, %v1306_v36  ;;  %v5468_v43 = vpop.f32.mrb[4].mxu1  ;;  %2413 = vrot.lane.b32.xlu1 %v5497_v37, %s6299_s19 }
 0x17b   : > { %v1293_v45 = vmul.f32 %v5468_v43, %v5468_v43  ;;  %v1004_v46 = vpop.f32.mrb[5].mxu1  ;;  %2411 = vrot.lane.b32.xlu0 %v1203_v39, %s6299_s19  ;;  %6053 = vrsqrt.f32 %v6626_v41  ;;  %vm1375_vm5 = vcmp.eq.f32.partialorder %v6626_v41, inf  ;;  %v1378_v34 = vand.u32 2147483648, %v6626_v41 }
 0x17c   : > { %v1292_v48 = vmul.f32 %v1004_v46, %v1004_v46  ;;  %6055 = vrsqrt.f32 %v6628_v42  ;;  %vm1368_vm6 = vcmp.eq.f32.partialorder %v6628_v42, inf  ;;  %v1371_v31 = vand.u32 2147483648, %v6628_v42 }
 0x17d   : > { %v1309_v49 = vadd.f32 %v1293_v45, %v1277_v44  ;;  %vm1370_vm7 = vcmp.eq.f32.partialorder %v6628_v42, 0.0  ;;  %vm1377_vm8 = vcmp.eq.f32.partialorder %v6626_v41, 0.0 }
 0x17e   : > { %v6050_v52 = vpop.eup %6049  ;;  %v1308_v53 = vadd.f32 %v1292_v48, %v1276_v47  ;;  %2337 = vrot.lane.b32.xlu1 %v5468_v43, %s6299_s19  ;;  %v5500_v54 = vpop.f32.mrb[20].mxu0  ;;  %v1280_v43 = vmul.f32 %v6580_v5, %v6580_v5 }
 0x17f   : > { %v6052_v55 = vpop.eup %6051  ;;  %v1325_v57 = vmul.f32 %v5500_v54, %v5500_v54  ;;  %2335 = vrot.lane.b32.xlu0 %v1004_v46, %s6299_s19  ;;  %v1213_v58 = vpop.f32.mrb[21].mxu0  ;;  %v1360_v59 = vmul.f32 %v6050_v52, %v6619_v27 }
 0x180   : > { %v1324_v60 = vmul.f32 %v1213_v58, %v1213_v58  ;;  %v1353_v61 = vmul.f32 %v6052_v55, %v1336_v30 }
 0x181   : > { %v6650_v63 = vadd.f32 %v1325_v57, %v1309_v49  ;;  %v1362_v1 = vsel %vm1361_vm1, %v6619_v27, %v1360_v59 }
 0x182   : > { %v6653_v12 = vadd.f32 %v1324_v60, %v1308_v53  ;;  %v5471_v2 = vpop.f32.mrb[6].mxu1  ;;  %2417 = vrot.lane.b32.xlu1 %v5500_v54, %s6299_s19  ;;  %v1355_v13 = vsel %vm1354_vm2, %v1336_v30, %v1353_v61  ;;  %v1365_v21 = vsel %vm1363_vm4, %v1364_v15, %v1362_v1  ;;  %v1283_v60 = vmul.f32 %v6584_v6, %v6584_v6 }
 0x183   : > { %v1295_v16 = vmul.f32 %v5471_v2, %v5471_v2  ;;  %v1014_v17 = vpop.f32.mrb[7].mxu1  ;;  %2415 = vrot.lane.b32.xlu0 %v1213_v58, %s6299_s19  ;;  %v1358_v18 = vsel %vm1356_vm3, %v1357_v0, %v1355_v13  ;;  %6057 = vrsqrt.f32 %v6650_v63  ;;  %vm1389_vm9 = vcmp.eq.f32.partialorder %v6650_v63, inf }
 0x184   : > { %v1294_v20 = vmul.f32 %v1014_v17, %v1014_v17  ;;  %5524 = vmatprep.mubr.msk.f32.mxu1 %vm660_vm0, %v1358_v18  ;;  %6059 = vrsqrt.f32 %v6653_v12  ;;  %vm1382_vm10 = vcmp.eq.f32.partialorder %v6653_v12, inf  ;;  %v1385_v52 = vand.u32 2147483648, %v6653_v12 }
 0x185   : > { %v6054_v22 = vpop.eup %6053  ;;  %v1311_v23 = vadd.f32 %v1295_v16, %v1279_v56  ;;  %5525 = vmatmul.mubr.msk.f32.vlgmr.msra.gmra.mrb[16].mxu1 %vm660_vm0, %v1365_v21  ;;  %vm1384_vm11 = vcmp.eq.f32.partialorder %v6653_v12, 0.0  ;;  %v1392_v56 = vand.u32 2147483648, %v6650_v63  ;;  %vm1391_vm12 = vcmp.eq.f32.partialorder %v6650_v63, 0.0 }
 0x186   : > { %v6056_v24 = vpop.eup %6055  ;;  %v1310_v25 = vadd.f32 %v1294_v20, %v1278_v19  ;;  %2341 = vrot.lane.b32.xlu1 %v5471_v2, %s6299_s19  ;;  %v5503_v26 = vpop.f32.mrb[22].mxu0  ;;  %v1374_v27 = vmul.f32 %v6054_v22, %v6626_v41  ;;  %5850 = vmatpush3.bf16.msra.mxu1 %v6614_v14  ;;  %v1282_v1 = vmul.f32 %v6588_v7, %v6588_v7 }
 0x187   : > { %v1327_v3 = vmul.f32 %v5503_v26, %v5503_v26  ;;  %2339 = vrot.lane.b32.xlu0 %v1014_v17, %s6299_s19  ;;  %v1223_v28 = vpop.f32.mrb[23].mxu0  ;;  %v1367_v29 = vmul.f32 %v6056_v24, %v6628_v42  ;;  %5852 = vmatprep.subr.bf16.mxu1 %v5851_v62 }
 0x188   : > { %v1326_v30 = vmul.f32 %v1223_v28, %v1223_v28  ;;  %v1376_v32 = vsel %vm1375_vm5, %v6626_v41, %v1374_v27 }
 0x189   : > { %v6674_v33 = vadd.f32 %v1327_v3, %v1311_v23  ;;  %v1369_v14 = vsel %vm1368_vm6, %v6628_v42, %v1367_v29  ;;  %v1379_v42 = vsel %vm1377_vm8, %v1378_v34, %v1376_v32  ;;  %v1285_v3 = vmul.f32 %v6592_v8, %v6592_v8 }
 0x18a   : > { %v6679_v35 = vadd.f32 %v1326_v30, %v1310_v25  ;;  %v5474_v36 = vpop.f32.mrb[8].mxu1  ;;  %2421 = vrot.lane.b32.xlu1 %v5503_v26, %s6299_s19  ;;  %v1372_v37 = vsel %vm1370_vm7, %v1371_v31, %v1369_v14  ;;  %5854 = vmatpush3.bf16.msra.mxu1 %v5851_v62  ;;  %v1284_v31 = vmul.f32 %v6596_v9, %v6596_v9 }
 0x18b   : > { %v1297_v39 = vmul.f32 %v5474_v36, %v5474_v36  ;;  %v1024_v40 = vpop.f32.mrb[9].mxu1  ;;  %5527 = vmatprep.mubr.msk.f32.mxu1 %vm660_vm0, %v1372_v37  ;;  %2419 = vrot.lane.b32.xlu0 %v1223_v28, %s6299_s19  ;;  %6061 = vrsqrt.f32 %v6674_v33  ;;  %vm1403_vm13 = vcmp.eq.f32.partialorder %v6674_v33, inf  ;;  %v1406_v24 = vand.u32 2147483648, %v6674_v33 }
 0x18c   : > { %v1296_v44 = vmul.f32 %v1024_v40, %v1024_v40  ;;  %5528 = vmatmul.mubr.msk.f32.gmra.mrb[18].mxu1 %vm660_vm0, %v1379_v42  ;;  %6063 = vrsqrt.f32 %v6679_v35  ;;  %vm1396_vm14 = vcmp.eq.f32.partialorder %v6679_v35, inf  ;;  %v1399_v20 = vand.u32 2147483648, %v6679_v35 }
 0x18d   : > { %v6058_v41 = vpop.eup %6057  ;;  %v1313_v45 = vadd.f32 %v1297_v39, %v1281_v38  ;;  %vm1398_vm15 = vcmp.eq.f32.partialorder %v6679_v35, 0.0  ;;  %vm1405_vm1 = vcmp.eq.f32.partialorder %v6674_v33, 0.0 }
 0x18e   : > { %v6060_v4 = vpop.eup %6059  ;;  %v1312_v46 = vadd.f32 %v1296_v44, %v1280_v43  ;;  %2345 = vrot.lane.b32.xlu1 %v5474_v36, %s6299_s19  ;;  %v5506_v47 = vpop.f32.mrb[24].mxu0  ;;  %v1388_v48 = vmul.f32 %v6058_v41, %v6650_v63 }
 0x18f   : > { %v1329_v49 = vmul.f32 %v5506_v47, %v5506_v47  ;;  %2343 = vrot.lane.b32.xlu0 %v1024_v40, %s6299_s19  ;;  %v1233_v50 = vpop.f32.mrb[25].mxu0  ;;  %v1381_v5 = vmul.f32 %v6060_v4, %v6653_v12  ;;  %v656_v4 = vld [vmem:[%s8186_s7 + $0x8] sm:$0xff] }
 0x190   : > { %v1328_v51 = vmul.f32 %v1233_v50, %v1233_v50  ;;  %v1390_v53 = vsel %vm1389_vm9, %v6650_v63, %v1388_v48 }
 0x191   : > { %v6700_v54 = vadd.f32 %v1329_v49, %v1313_v45  ;;  %v1383_v55 = vsel %vm1382_vm10, %v6653_v12, %v1381_v5  ;;  %v1393_v0 = vsel %vm1391_vm12, %v1392_v56, %v1390_v53  ;;  %v655_v45 = vld [vmem:[%s8186_s7] sm:$0xff]  ;;  %v1286_v53 = vmul.f32 %v6604_v11, %v6604_v11 }
 0x192   : > { %v6705_v57 = vadd.f32 %v1328_v51, %v1312_v46  ;;  %v5477_v58 = vpop.f32.mrb[10].mxu1  ;;  %2425 = vrot.lane.b32.xlu1 %v5506_v47, %s6299_s19  ;;  %v1386_v59 = vsel %vm1384_vm11, %v1385_v52, %v1383_v55  ;;  %v5855_v49 = vpack.c.bf16 %v656_v4, %v655_v45  ;;  %v624_v45 = vld [vmem:[%s6801_s26 + $0x70] sm:$0xff]  ;;  %v625_v4 = vld [vmem:[%s6801_s26 + $0x78] sm:$0xff] }
 0x193   : > { %v1299_v61 = vmul.f32 %v5477_v58, %v5477_v58  ;;  %v1034_v62 = vpop.f32.mrb[11].mxu1  ;;  %5530 = vmatprep.mubr.msk.f32.mxu1 %vm660_vm0, %v1386_v59  ;;  %2423 = vrot.lane.b32.xlu0 %v1233_v50, %s6299_s19  ;;  %6065 = vrsqrt.f32 %v6700_v54  ;;  %vm1417_vm2 = vcmp.eq.f32.partialorder %v6700_v54, inf  ;;  %v1420_v41 = vand.u32 2147483648, %v6700_v54 }
 0x194   : > { %v1298_v12 = vmul.f32 %v1034_v62, %v1034_v62  ;;  %5531 = vmatmul.mubr.msk.f32.gmra.mrb[20].mxu1 %vm660_vm0, %v1393_v0  ;;  %6067 = vrsqrt.f32 %v6705_v57  ;;  %vm1410_vm3 = vcmp.eq.f32.partialorder %v6705_v57, inf  ;;  %v1413_v40 = vand.u32 2147483648, %v6705_v57  ;;  %5856 = vmatprep.subr.bf16.mxu0 %v5855_v49 }
 0x195   : > { %v6062_v63 = vpop.eup %6061  ;;  %v1315_v2 = vadd.f32 %v1299_v61, %v1283_v60  ;;  %vm1412_vm4 = vcmp.eq.f32.partialorder %v6705_v57, 0.0  ;;  %vm1419_vm5 = vcmp.eq.f32.partialorder %v6700_v54, 0.0  ;;  %v1287_v50 = vmul.f32 %v6600_v10, %v6600_v10  ;;  %5858 = vmatpush3.bf16.msra.mxu0 %v5855_v49  ;;  %v6846_v49 = vld [vmem:[%s8185_s6] ss:$0 sm:$0xff] }
 0x196   : > { %v6064_v6 = vpop.eup %6063  ;;  %v1314_v13 = vadd.f32 %v1298_v12, %v1282_v1  ;;  %2349 = vrot.lane.b32.xlu1 %v5477_v58, %s6299_s19  ;;  %v5509_v15 = vpop.f32.mrb[26].mxu0  ;;  %v1402_v16 = vmul.f32 %v6062_v63, %v6674_v33 }
 0x197   : > { %v1331_v17 = vmul.f32 %v5509_v15, %v5509_v15  ;;  %2347 = vrot.lane.b32.xlu0 %v1034_v62, %s6299_s19  ;;  %v1243_v18 = vpop.f32.mrb[27].mxu0  ;;  %v1395_v7 = vmul.f32 %v6064_v6, %v6679_v35 }
 0x198   : > { %v1330_v19 = vmul.f32 %v1243_v18, %v1243_v18  ;;  %v1404_v21 = vsel %vm1403_vm13, %v6674_v33, %v1402_v16 }
 0x199   : > { %v6726_v22 = vadd.f32 %v1331_v17, %v1315_v2  ;;  %v1397_v23 = vsel %vm1396_vm14, %v6679_v35, %v1395_v7  ;;  %v1407_v30 = vsel %vm1405_vm1, %v1406_v24, %v1404_v21 }
 0x19a   : > { %v6731_v25 = vadd.f32 %v1330_v19, %v1314_v13  ;;  %v5480_v26 = vpop.f32.mrb[12].mxu1  ;;  %2429 = vrot.lane.b32.xlu1 %v5509_v15, %s6299_s19  ;;  %v1400_v27 = vsel %vm1398_vm15, %v1399_v20, %v1397_v23 }
 0x19b   : > { %v1301_v28 = vmul.f32 %v5480_v26, %v5480_v26  ;;  %v1044_v29 = vpop.f32.mrb[13].mxu1  ;;  %5533 = vmatprep.mubr.msk.f32.mxu1 %vm660_vm0, %v1400_v27  ;;  %2427 = vrot.lane.b32.xlu0 %v1243_v18, %s6299_s19  ;;  %6069 = vrsqrt.f32 %v6726_v22  ;;  %vm1431_vm6 = vcmp.eq.f32.partialorder %v6726_v22, inf  ;;  %v1434_v2 = vand.u32 2147483648, %v6726_v22 }
 0x19c   : > { %v1300_v32 = vmul.f32 %v1044_v29, %v1044_v29  ;;  %5534 = vmatmul.mubr.msk.f32.gmra.mrb[22].mxu1 %vm660_vm0, %v1407_v30  ;;  %6071 = vrsqrt.f32 %v6731_v25  ;;  %vm1424_vm7 = vcmp.eq.f32.partialorder %v6731_v25, inf  ;;  %v1427_v0 = vand.u32 2147483648, %v6731_v25 }
 0x19d   : > { %v6066_v33 = vpop.eup %6065  ;;  %v1317_v14 = vadd.f32 %v1301_v28, %v1285_v3  ;;  %vm1426_vm8 = vcmp.eq.f32.partialorder %v6731_v25, 0.0  ;;  %vm1433_vm9 = vcmp.eq.f32.partialorder %v6726_v22, 0.0 }
 0x19e   : > { %v6068_v8 = vpop.eup %6067  ;;  %v1316_v34 = vadd.f32 %v1300_v32, %v1284_v31  ;;  %2353 = vrot.lane.b32.xlu1 %v5480_v26, %s6299_s19  ;;  %v5512_v35 = vpop.f32.mrb[28].mxu0  ;;  %v1416_v36 = vmul.f32 %v6066_v33, %v6700_v54  ;;  %v610_v33 = vld [vmem:[%s6801_s26] sm:$0xff] }
 0x19f   : > { %v1333_v37 = vmul.f32 %v5512_v35, %v5512_v35  ;;  %2351 = vrot.lane.b32.xlu0 %v1044_v29, %s6299_s19  ;;  %v1253_v38 = vpop.f32.mrb[29].mxu0  ;;  %v1409_v9 = vmul.f32 %v6068_v8, %v6705_v57  ;;  %v611_v8 = vld [vmem:[%s6801_s26 + $0x8] sm:$0xff] }
 0x1a0   : > { %v1332_v39 = vmul.f32 %v1253_v38, %v1253_v38  ;;  %v1418_v42 = vsel %vm1417_vm2, %v6700_v54, %v1416_v36  ;;  %v614_v36 = vld [vmem:[%s6801_s26 + $0x20] sm:$0xff] }
 0x1a1   : > { %v6752_v43 = vadd.f32 %v1333_v37, %v1317_v14  ;;  %v1411_v44 = vsel %vm1410_vm3, %v6705_v57, %v1409_v9  ;;  %v1421_v52 = vsel %vm1419_vm5, %v1420_v41, %v1418_v42  ;;  %v615_v37 = vld [vmem:[%s6801_s26 + $0x28] sm:$0xff]  ;;  %v617_v9 = vld [vmem:[%s6801_s26 + $0x38] sm:$0xff]  ;;  %v620_v42 = vld [vmem:[%s6801_s26 + $0x50] sm:$0xff] }
 0x1a2   : > { %v1348_v46 = vadd.f32 %v1332_v39, %v1316_v34  ;;  %v5483_v47 = vpop.f32.mrb[14].mxu1  ;;  %2433 = vrot.lane.b32.xlu1 %v5512_v35, %s6299_s19  ;;  %v1414_v48 = vsel %vm1412_vm4, %v1413_v40, %v1411_v44  ;;  %v612_v34 = vld [vmem:[%s6801_s26 + $0x10] sm:$0xff]  ;;  %v613_v35 = vld [vmem:[%s6801_s26 + $0x18] sm:$0xff]  ;;  %v618_v39 = vld [vmem:[%s6801_s26 + $0x40] sm:$0xff] }
 0x1a3   : > { %v1303_v5 = vmul.f32 %v5483_v47, %v5483_v47  ;;  %v1054_v51 = vpop.f32.mrb[15].mxu1  ;;  %5536 = vmatprep.mubr.msk.f32.mxu1 %vm660_vm0, %v1414_v48  ;;  %2431 = vrot.lane.b32.xlu0 %v1253_v38, %s6299_s19  ;;  %6073 = vrsqrt.f32 %v6752_v43  ;;  %vm1445_vm10 = vcmp.eq.f32.partialorder %v6752_v43, inf  ;;  %vm1447_vm13 = vcmp.eq.f32.partialorder %v6752_v43, 0.0  ;;  %v616_v38 = vld [vmem:[%s6801_s26 + $0x30] sm:$0xff]  ;;  %v619_v40 = vld [vmem:[%s6801_s26 + $0x48] sm:$0xff]  ;;  %v622_v44 = vld [vmem:[%s6801_s26 + $0x60] sm:$0xff] }
 0x1a4   : > { %v1302_v55 = vmul.f32 %v1054_v51, %v1054_v51  ;;  %5537 = vmatmul.mubr.msk.f32.gmra.mrb[24].mxu1 %vm660_vm0, %v1421_v52  ;;  %6075 = vrsqrt.f32 %v1348_v46  ;;  %vm1438_vm11 = vcmp.eq.f32.partialorder %v1348_v46, inf  ;;  %v1441_v19 = vand.u32 2147483648, %v1348_v46  ;;  %v623_v41 = vld [vmem:[%s6801_s26 + $0x68] sm:$0xff] }
 0x1a5   : > { %v6070_v54 = vpop.eup %6069  ;;  %v1319_v56 = vadd.f32 %v1303_v5, %v1287_v50  ;;  %vm1440_vm12 = vcmp.eq.f32.partialorder %v1348_v46, 0.0 }
 0x1a6   : > { %v6072_v10 = vpop.eup %6071  ;;  %v1318_v57 = vadd.f32 %v1302_v55, %v1286_v53  ;;  %2357 = vrot.lane.b32.xlu1 %v5483_v47, %s6299_s19  ;;  %v5515_v58 = vpop.f32.mrb[30].mxu0  ;;  %v1430_v59 = vmul.f32 %v6070_v54, %v6726_v22  ;;  %v658_v47 = vld [vmem:[%s8186_s7 + $0x18] sm:$0xff] }
 0x1a7   : > { %v1335_v60 = vmul.f32 %v5515_v58, %v5515_v58  ;;  %2437 = vrot.lane.b32.xlu0 %v5515_v58, %s6299_s19  ;;  %v1263_v61 = vpop.f32.mrb[31].mxu0  ;;  %v1423_v11 = vmul.f32 %v6072_v10, %v6731_v25 }
 0x1a8   : > { %v1334_v62 = vmul.f32 %v1263_v61, %v1263_v61  ;;  %v1432_v1 = vsel %vm1431_vm6, %v6726_v22, %v1430_v59  ;;  %v1448_v22 = vand.u32 2147483648, %v6752_v43 }
 0x1a9   : > { %v1351_v12 = vadd.f32 %v1335_v60, %v1319_v56  ;;  %v1425_v63 = vsel %vm1424_vm7, %v6731_v25, %v1423_v11  ;;  %v1435_v15 = vsel %vm1433_vm9, %v1434_v2, %v1432_v1 }
 0x1aa   : > { %v1350_v6 = vadd.f32 %v1334_v62, %v1318_v57  ;;  %v1428_v13 = vsel %vm1426_vm8, %v1427_v0, %v1425_v63 }
 0x1ab   : > { %5539 = vmatprep.mubr.msk.f32.mxu1 %vm660_vm0, %v1428_v13  ;;  %2355 = vrot.lane.b32.xlu0 %v1054_v51, %s6299_s19  ;;  %6077 = vrsqrt.f32 %v1351_v12  ;;  %vm1459_vm14 = vcmp.eq.f32.partialorder %v1351_v12, inf  ;;  %v1462_v31 = vand.u32 2147483648, %v1351_v12  ;;  %vm1461_vm2 = vcmp.eq.f32.partialorder %v1351_v12, 0.0 }
 0x1ac   : > { %5540 = vmatmul.mubr.msk.f32.gmra.mrb[26].mxu1 %vm660_vm0, %v1435_v15  ;;  %6079 = vrsqrt.f32 %v1350_v6  ;;  %vm1452_vm15 = vcmp.eq.f32.partialorder %v1350_v6, inf  ;;  %v1455_v28 = vand.u32 2147483648, %v1350_v6  ;;  %vm1454_vm1 = vcmp.eq.f32.partialorder %v1350_v6, 0.0 }
 0x1ad   : > { %v6074_v16 = vpop.eup %6073 }
 0x1ae   : > { %v6076_v17 = vpop.eup %6075  ;;  %v1444_v18 = vmul.f32 %v6074_v16, %v6752_v43 }
 0x1af   : > { %2435 = vrot.lane.b32.xlu0 %v1263_v61, %s6299_s19  ;;  %v1437_v7 = vmul.f32 %v6076_v17, %v1348_v46 }
 0x1b0   : > { %v1446_v20 = vsel %vm1445_vm10, %v6752_v43, %v1444_v18  ;;  %v621_v43 = vld [vmem:[%s6801_s26 + $0x58] sm:$0xff] }
 0x1b1   : > { %v1439_v21 = vsel %vm1438_vm11, %v1348_v46, %v1437_v7  ;;  %v1449_v24 = vsel %vm1447_vm13, %v1448_v22, %v1446_v20  ;;  %v657_v46 = vld [vmem:[%s8186_s7 + $0x10] sm:$0xff] }
 0x1b2   : > { %v1442_v23 = vsel %vm1440_vm12, %v1441_v19, %v1439_v21  ;;  %v5859_v48 = vpack.c.bf16 %v658_v47, %v657_v46 }
 0x1b3   : > { %5542 = vmatprep.mubr.msk.f32.mxu1 %vm660_vm0, %v1442_v23 }
 0x1b4   : > { %5543 = vmatmul.mubr.msk.f32.gmra.mrb[28].mxu1 %vm660_vm0, %v1449_v24  ;;  %5860 = vmatprep.subr.bf16.mxu0 %v5859_v48 }
 0x1b5   : > { %v6078_v25 = vpop.eup %6077  ;;  %5862 = vmatpush3.bf16.msra.mxu0 %v5859_v48 }
 0x1b6   : > { %v6080_v26 = vpop.eup %6079  ;;  %v1458_v27 = vmul.f32 %v6078_v25, %v1351_v12 }
 0x1b7   : > { %v1451_v3 = vmul.f32 %v6080_v26, %v1350_v6 }
 0x1b8   : > { %v1460_v29 = vsel %vm1459_vm14, %v1351_v12, %v1458_v27 }
 0x1b9   : > { %v1453_v30 = vsel %vm1452_vm15, %v1350_v6, %v1451_v3  ;;  %v1463_v14 = vsel %vm1461_vm2, %v1462_v31, %v1460_v29 }
 0x1ba   : > { %v1456_v32 = vsel %vm1454_vm1, %v1455_v28, %v1453_v30 }
 0x1bb   : > { %5545 = vmatprep.mubr.msk.f32.mxu1 %vm660_vm0, %v1456_v32 }
 0x1bc   : > { %5546 = vmatmul.mubr.msk.f32.gmra.mrb[30].mxu1 %vm660_vm0, %v1463_v14 }
 0x1bd   : > { %5556 = vmatprep.mubr.msk.f32.mxu1 %vm660_vm0, %v610_v33 }
 0x1c0   : > { %5557 = vmatmul.mubr.msk.f32.vlgmr.msra.gmra.mrb[16].mxu1 %vm660_vm0, %v611_v8 }
 0x1c1   : > { %5559 = vmatprep.mubr.msk.f32.mxu1 %vm660_vm0, %v612_v34 }
 0x1c4   : > { %5560 = vmatmul.mubr.msk.f32.gmra.mrb[18].mxu1 %vm660_vm0, %v613_v35 }
 0x1c5   : > { %5562 = vmatprep.mubr.msk.f32.mxu1 %vm660_vm0, %v614_v36 }
 0x1c8   : > { %5563 = vmatmul.mubr.msk.f32.gmra.mrb[20].mxu1 %vm660_vm0, %v615_v37 }
 0x1c9   : > { %5565 = vmatprep.mubr.msk.f32.mxu1 %vm660_vm0, %v616_v38 }
 0x1cc   : > { %5566 = vmatmul.mubr.msk.f32.gmra.mrb[22].mxu1 %vm660_vm0, %v617_v9 }
 0x1cd   : > { %5568 = vmatprep.mubr.msk.f32.mxu1 %vm660_vm0, %v618_v39 }
 0x1d0   : > { %5569 = vmatmul.mubr.msk.f32.gmra.mrb[24].mxu1 %vm660_vm0, %v619_v40 }
 0x1d1   : > { %5571 = vmatprep.mubr.msk.f32.mxu1 %vm660_vm0, %v620_v42 }
 0x1d4   : > { %5572 = vmatmul.mubr.msk.f32.gmra.mrb[26].mxu1 %vm660_vm0, %v621_v43 }
 0x1d5   : > { %5574 = vmatprep.mubr.msk.f32.mxu1 %vm660_vm0, %v622_v44 }
 0x1d8   : > { %5575 = vmatmul.mubr.msk.f32.gmra.mrb[28].mxu1 %vm660_vm0, %v623_v41 }
 0x1d9   : > { %5577 = vmatprep.mubr.msk.f32.mxu1 %vm660_vm0, %v624_v45 }
 0x1dc   : > { %5578 = vmatmul.mubr.msk.f32.gmra.mrb[30].mxu1 %vm660_vm0, %v625_v4 }
 0x293   : > { %v5558_v50 = vpop.f32.mrb[16].mxu1 }
 0x294   : > { %v1857_v5 = vadd.f32 %v5558_v50, %v6846_v49  ;;  %v1771_v51 = vpop.f32.mrb[17].mxu1 }
 0x295   : > { %v1856_v52 = vadd.f32 %v6846_v49, %v1771_v51 }
 0x296   : > { %v1873_v53 = vmul.f32 0.5, %v1857_v5 }
 0x297   : > { %v1872_v55 = vmul.f32 0.5, %v1856_v52  ;;  %v5561_v54 = vpop.f32.mrb[18].mxu1 }
 0x298   : > { %6081 = vtanh.f32 %v1873_v53  ;;  %v6851_v56 = vadd.f32 %v5561_v54, %v6846_v49  ;;  %v1781_v10 = vpop.f32.mrb[19].mxu1 }
 0x299   : > { %6083 = vtanh.f32 %v1872_v55  ;;  %v1858_v57 = vadd.f32 %v6846_v49, %v1781_v10 }
 0x29a   : > { %v1875_v58 = vmul.f32 0.5, %v6851_v56 }
 0x29b   : > { %v1874_v59 = vmul.f32 0.5, %v1858_v57  ;;  %v5564_v60 = vpop.f32.mrb[20].mxu1 }
 0x29c   : > { %6085 = vtanh.f32 %v1875_v58  ;;  %v6856_v61 = vadd.f32 %v5564_v60, %v6846_v49  ;;  %v1791_v11 = vpop.f32.mrb[21].mxu1 }
 0x29d   : > { %6087 = vtanh.f32 %v1874_v59  ;;  %v6859_v62 = vadd.f32 %v6846_v49, %v1791_v11 }
 0x29e   : > { %v1877_v0 = vmul.f32 0.5, %v6856_v61 }
 0x29f   : > { %v1876_v1 = vmul.f32 0.5, %v6859_v62  ;;  %v5567_v12 = vpop.f32.mrb[22].mxu1 }
 0x2a0   : > { %6089 = vtanh.f32 %v1877_v0  ;;  %v6864_v63 = vadd.f32 %v5567_v12, %v6846_v49  ;;  %v1801_v2 = vpop.f32.mrb[23].mxu1 }
 0x2a1   : > { %6091 = vtanh.f32 %v1876_v1  ;;  %v6867_v6 = vadd.f32 %v6846_v49, %v1801_v2 }
 0x2a2   : > { %v6082_v13 = vpop.eup %6081  ;;  %v1879_v15 = vmul.f32 0.5, %v6864_v63 }
 0x2a3   : > { %v6084_v16 = vpop.eup %6083  ;;  %v1905_v17 = vadd.f32 1.0, %v6082_v13  ;;  %v1878_v18 = vmul.f32 0.5, %v6867_v6  ;;  %v5570_v7 = vpop.f32.mrb[24].mxu1 }
 0x2a4   : > { %v1904_v19 = vadd.f32 1.0, %v6084_v16  ;;  %6093 = vtanh.f32 %v1879_v15  ;;  %v6872_v20 = vadd.f32 %v5570_v7, %v6846_v49  ;;  %v1811_v21 = vpop.f32.mrb[25].mxu1 }
 0x2a5   : > { %v1921_v22 = vmul.f32 0.5, %v1905_v17  ;;  %6095 = vtanh.f32 %v1878_v18  ;;  %v6875_v23 = vadd.f32 %v6846_v49, %v1811_v21 }
 0x2a6   : > { %v6086_v24 = vpop.eup %6085  ;;  %v1920_v25 = vmul.f32 0.5, %v1904_v19  ;;  %v1881_v26 = vmul.f32 0.5, %v6872_v20 }
 0x2a7   : > { %v6088_v27 = vpop.eup %6087  ;;  %v1907_v3 = vadd.f32 1.0, %v6086_v24  ;;  %v1880_v28 = vmul.f32 0.5, %v6875_v23  ;;  %v5573_v29 = vpop.f32.mrb[26].mxu1  ;;  %v1937_v14 = vmul.f32 %v1921_v22, %v1857_v5 }
 0x2a8   : > { %v1936_v30 = vmul.f32 %v1920_v25, %v1856_v52  ;;  %v1906_v31 = vadd.f32 1.0, %v6088_v27  ;;  %6097 = vtanh.f32 %v1881_v26  ;;  %v6880_v32 = vadd.f32 %v5573_v29, %v6846_v49  ;;  %v1821_v33 = vpop.f32.mrb[27].mxu1 }
 0x2a9   : > { %v1923_v8 = vmul.f32 0.5, %v1907_v3  ;;  %6099 = vtanh.f32 %v1880_v28  ;;  %v6883_v34 = vadd.f32 %v6846_v49, %v1821_v33 }
 0x2aa   : > { %v6090_v35 = vpop.eup %6089  ;;  %v1922_v36 = vmul.f32 0.5, %v1906_v31  ;;  %v1883_v37 = vmul.f32 0.5, %v6880_v32  ;;  %5588 = vmatprep.mubr.msk.f32.mxu0 %vm660_vm0, %v1936_v30 }
 0x2ab   : > { %v6092_v38 = vpop.eup %6091  ;;  %v1909_v9 = vadd.f32 1.0, %v6090_v35  ;;  %v1882_v39 = vmul.f32 0.5, %v6883_v34  ;;  %v5576_v40 = vpop.f32.mrb[28].mxu1  ;;  %5589 = vmatmul.mubr.msk.f32.vlgmr.msra.gmra.mrb[32].mxu0 %vm660_vm0, %v1937_v14  ;;  %v1939_v45 = vmul.f32 %v1923_v8, %v6851_v56 }
 0x2ac   : > { %v1938_v42 = vmul.f32 %v1922_v36, %v1858_v57  ;;  %v1908_v43 = vadd.f32 1.0, %v6092_v38  ;;  %6101 = vtanh.f32 %v1883_v37  ;;  %v6890_v44 = vadd.f32 %v5576_v40, %v6846_v49  ;;  %v1831_v41 = vpop.f32.mrb[29].mxu1  ;;  %v2248_v36 = vpop.permute.xlu0 %2247 }
 0x2ad   : > { %v1925_v4 = vmul.f32 0.5, %v1909_v9  ;;  %6103 = vtanh.f32 %v1882_v39  ;;  %v1868_v46 = vadd.f32 %v6846_v49, %v1831_v41  ;;  %v2250_v38 = vpop.permute.xlu1 %2249 }
 0x2ae   : > { %v6094_v47 = vpop.eup %6093  ;;  %v1924_v48 = vmul.f32 0.5, %v1908_v43  ;;  %v1885_v50 = vmul.f32 0.5, %v6890_v44  ;;  %5591 = vmatprep.mubr.msk.f32.mxu0 %vm660_vm0, %v1938_v42 }
 0x2af   : > { %v6096_v5 = vpop.eup %6095  ;;  %v1911_v51 = vadd.f32 1.0, %v6094_v47  ;;  %v1884_v52 = vmul.f32 0.5, %v1868_v46  ;;  %v5579_v53 = vpop.f32.mrb[30].mxu1  ;;  %5592 = vmatmul.mubr.msk.f32.gmra.mrb[34].mxu0 %vm660_vm0, %v1939_v45  ;;  %v1941_v57 = vmul.f32 %v1925_v4, %v6856_v61 }
 0x2b0   : > { %v1940_v55 = vmul.f32 %v1924_v48, %v6859_v62  ;;  %v1910_v54 = vadd.f32 1.0, %v6096_v5  ;;  %6105 = vtanh.f32 %v1885_v50  ;;  %v1871_v56 = vadd.f32 %v5579_v53, %v6846_v49  ;;  %v1841_v10 = vpop.f32.mrb[31].mxu1  ;;  %v2252_v37 = vpop.permute.xlu0 %2251  ;;  %v2471_v48 = vld [vmem:[%s8188_s9] sm:$0xff]  ;;  %v2472_v50 = vld [vmem:[%s8188_s9 + $0x8] sm:$0xff] }
 0x2b1   : > { %v1927_v58 = vmul.f32 0.5, %v1911_v51  ;;  %6107 = vtanh.f32 %v1884_v52  ;;  %v1870_v59 = vadd.f32 %v6846_v49, %v1841_v10  ;;  %v2254_v39 = vpop.permute.xlu1 %2253  ;;  %v6948_v51 = vpack.c.bf16 %v2472_v50, %v2471_v48 }
 0x2b2   : > { %v6098_v60 = vpop.eup %6097  ;;  %v1926_v11 = vmul.f32 0.5, %v1910_v54  ;;  %v1887_v0 = vmul.f32 0.5, %v1871_v56  ;;  %5594 = vmatprep.mubr.msk.f32.mxu0 %vm660_vm0, %v1940_v55  ;;  %v6960_v55 = vld [vmem:[%s8187_s8] ss:$0 sm:$0xff] }
 0x2b3   : > { %v6100_v1 = vpop.eup %6099  ;;  %v1913_v12 = vadd.f32 1.0, %v6098_v60  ;;  %v1886_v2 = vmul.f32 0.5, %v1870_v59  ;;  %5595 = vmatmul.mubr.msk.f32.gmra.mrb[36].mxu0 %vm660_vm0, %v1941_v57  ;;  %v1943_v61 = vmul.f32 %v1927_v58, %v6864_v63  ;;  %5868 = vmatprep.subr.bf16.mxu1 %v6948_v51 }
 0x2b4   : > { %v1942_v62 = vmul.f32 %v1926_v11, %v6867_v6  ;;  %v1912_v13 = vadd.f32 1.0, %v6100_v1  ;;  %6109 = vtanh.f32 %v1887_v0  ;;  %v6920_v9 = vpop.permute.xlu0 %2255  ;;  %5864 = vmatprep.subr.bf16.mxu0 %v6948_v51  ;;  %5870 = vmatpush3.bf16.msra.mxu1 %v6948_v51 }
 0x2b5   : > { %v1929_v15 = vmul.f32 0.5, %v1913_v12  ;;  %6111 = vtanh.f32 %v1886_v2  ;;  %v6924_v42 = vpop.permute.xlu1 %2257  ;;  %5866 = vmatpush3.bf16.msra.mxu0 %v6948_v51 }
 0x2b6   : > { %v6102_v16 = vpop.eup %6101  ;;  %v1928_v49 = vmul.f32 0.5, %v1912_v13  ;;  %5597 = vmatprep.mubr.msk.f32.mxu0 %vm660_vm0, %v1942_v62  ;;  %5872 = vmatprep.subr.bf16.mxu0 %v6948_v51 }
 0x2b7   : > { %v6104_v17 = vpop.eup %6103  ;;  %v1915_v18 = vadd.f32 1.0, %v6102_v16  ;;  %5598 = vmatmul.mubr.msk.f32.gmra.mrb[38].mxu0 %vm660_vm0, %v1943_v61  ;;  %v1945_v21 = vmul.f32 %v1929_v15, %v6872_v20 }
 0x2b8   : > { %v1944_v7 = vmul.f32 %v1928_v49, %v6875_v23  ;;  %v1914_v19 = vadd.f32 1.0, %v6104_v17  ;;  %v6922_v40 = vpop.permute.xlu0 %2259 }
 0x2b9   : > { %v1931_v6 = vmul.f32 0.5, %v1915_v18 }
 0x2ba   : > { %v6106_v22 = vpop.eup %6105  ;;  %v1930_v24 = vmul.f32 0.5, %v1914_v19  ;;  %5600 = vmatprep.mubr.msk.f32.mxu0 %vm660_vm0, %v1944_v7 }
 0x2bb   : > { %v6108_v63 = vpop.eup %6107  ;;  %v1917_v25 = vadd.f32 1.0, %v6106_v22  ;;  %5601 = vmatmul.mubr.msk.f32.gmra.mrb[40].mxu0 %vm660_vm0, %v1945_v21  ;;  %v1947_v3 = vmul.f32 %v1931_v6, %v6880_v32 }
 0x2bc   : > { %v1946_v26 = vmul.f32 %v1930_v24, %v6883_v34  ;;  %v1916_v27 = vadd.f32 1.0, %v6108_v63  ;;  %v6926_v43 = vpop.permute.xlu0 %2263 }
 0x2bd   : > { %v1933_v28 = vmul.f32 0.5, %v1917_v25 }
 0x2be   : > { %v6110_v29 = vpop.eup %6109  ;;  %v1932_v23 = vmul.f32 0.5, %v1916_v27  ;;  %5603 = vmatprep.mubr.msk.f32.mxu0 %vm660_vm0, %v1946_v26 }
 0x2bf   : > { %v6112_v20 = vpop.eup %6111  ;;  %v1919_v30 = vadd.f32 1.0, %v6110_v29  ;;  %5604 = vmatmul.mubr.msk.f32.gmra.mrb[42].mxu0 %vm660_vm0, %v1947_v3  ;;  %v1949_v14 = vmul.f32 %v1933_v28, %v6890_v44  ;;  %v6928_v44 = vpop.permute.xlu1 %2261 }
 0x2c0   : > { %v1948_v31 = vmul.f32 %v1932_v23, %v1868_v46  ;;  %v1918_v33 = vadd.f32 1.0, %v6112_v20  ;;  %v6930_v41 = vpop.permute.xlu0 %2267 }
 0x2c1   : > { %v1935_v8 = vmul.f32 0.5, %v1919_v30 }
 0x2c2   : > { %v1934_v35 = vmul.f32 0.5, %v1918_v33  ;;  %5606 = vmatprep.mubr.msk.f32.mxu0 %vm660_vm0, %v1948_v31 }
 0x2c3   : > { %5607 = vmatmul.mubr.msk.f32.gmra.mrb[44].mxu0 %vm660_vm0, %v1949_v14  ;;  %v1951_v34 = vmul.f32 %v1935_v8, %v1871_v56  ;;  %v6932_v45 = vpop.permute.xlu1 %2265 }
 0x2c4   : > { %v1950_v32 = vmul.f32 %v1934_v35, %v1870_v59  ;;  %v6934_v4 = vpop.permute.xlu0 %2271 }
 0x2c6   : > { %5609 = vmatprep.mubr.msk.f32.mxu0 %vm660_vm0, %v1950_v32 }
 0x2c7   : > { %5610 = vmatmul.mubr.msk.f32.gmra.mrb[46].mxu0 %vm660_vm0, %v1951_v34  ;;  %v6936_v46 = vpop.permute.xlu1 %2269  ;;  %vm2529_vm0 = vcmask 130048  }
 0x2c8   : > { %v6938_v47 = vpop.permute.xlu0 %2275 }
 0x2cb   : > { %v6946_v5 = vpop.permute.xlu1 %2273 }
 0x2cc   : > { %v2328_v52 = vpop.permute.xlu0 %2327 }
 0x2cf   : > { %v6955_v53 = vpop.permute.xlu1 %2277 }
 0x2d0   : > { %v2408_v56 = vpop.permute.xlu0 %2407 }
 0x2d3   : > { %v2330_v60 = vpop.permute.xlu1 %2329 }
 0x2d4   : > { %v2332_v12 = vpop.permute.xlu0 %2331 }
 0x2d7   : > { %v2410_v16 = vpop.permute.xlu1 %2409 }
 0x2d8   : > { %v2412_v7 = vpop.permute.xlu0 %2411 }
 0x2db   : > { %v2334_v27 = vpop.permute.xlu1 %2333 }
 0x2dc   : > { %v2336_v25 = vpop.permute.xlu0 %2335 }
 0x2df   : > { %v2414_v8 = vpop.permute.xlu1 %2413 }
 0x2e0   : > { %v2416_v33 = vpop.permute.xlu0 %2415 }
 0x2e3   : > { %v2338_v48 = vpop.permute.xlu1 %2337 }
 0x37e   : > { %v5590_v54 = vpop.f32.mrb[32].mxu0 }
 0x37f   : > { %v6963_v10 = vadd.f32 %v5590_v54, %v6960_v55  ;;  %v2072_v57 = vpop.f32.mrb[33].mxu0 }
 0x380   : > { %v6966_v58 = vadd.f32 %v6960_v55, %v2072_v57 }
 0x381   : > { %v2296_v59 = vmul.f32 %v2250_v38, %v6963_v10  ;;  %v2376_v2 = vmul.f32 %v2330_v60, %v6963_v10  ;;  %v2456_v49 = vmul.f32 %v2410_v16, %v6963_v10 }
 0x382   : > { %v5593_v11 = vpop.f32.mrb[34].mxu0  ;;  %v2375_v0 = vmul.f32 %v2328_v52, %v6966_v58  ;;  %v2455_v61 = vmul.f32 %v2408_v56, %v6966_v58  ;;  %v2295_v6 = vmul.f32 %v2248_v36, %v6966_v58 }
 0x383   : > { %2499 = vrot.lane.b32.xlu1 %v2296_v59, %s6299_s19  ;;  %v2082_v1 = vpop.f32.mrb[35].mxu0  ;;  %v6984_v21 = vadd.f32 %v5593_v11, %v6960_v55  ;;  %v2418_v59 = vpop.permute.xlu1 %2417 }
 0x384   : > { %2723 = vrot.lane.b32.xlu0 %v2375_v0, %s6299_s19  ;;  %v6974_v62 = vadd.f32 %v6960_v55, %v2082_v1 }
 0x385   : > { %8213 = vst [vmem:[#allocation5_spill] sm:$0xff] %v6984_v21  ;;  %v2298_v26 = vmul.f32 %v2254_v39, %v6984_v21  ;;  %v2378_v20 = vmul.f32 %v2334_v27, %v6984_v21  ;;  %v2458_v32 = vmul.f32 %v2414_v8, %v6984_v21 }
 0x386   : > { %8212 = vst [vmem:[#allocation4_spill] sm:$0xff] %v6974_v62  ;;  %v5596_v13 = vpop.f32.mrb[36].mxu0  ;;  %v2297_v18 = vmul.f32 %v2252_v37, %v6974_v62  ;;  %v2377_v24 = vmul.f32 %v2332_v12, %v6974_v62  ;;  %v2457_v29 = vmul.f32 %v2412_v7, %v6974_v62 }
 0x387   : > { %2725 = vrot.lane.b32.xlu1 %v2376_v2, %s6299_s19  ;;  %v2092_v15 = vpop.f32.mrb[37].mxu0  ;;  %v7003_v35 = vadd.f32 %v5596_v13, %v6960_v55  ;;  %v2342_v1 = vpop.permute.xlu1 %2341 }
 0x388   : > { %2948 = vrot.lane.b32.xlu0 %v2455_v61, %s6299_s19  ;;  %v6992_v3 = vadd.f32 %v6960_v55, %v2092_v15 }
 0x389   : > { %8214 = vst [vmem:[#allocation6_spill] sm:$0xff] %v7003_v35  ;;  %v2300_v39 = vmul.f32 %v6924_v42, %v7003_v35  ;;  %v2380_v54 = vmul.f32 %v2338_v48, %v7003_v35  ;;  %v2460_v60 = vmul.f32 %v2418_v59, %v7003_v35 }
 0x38a   : > { %v5599_v17 = vpop.f32.mrb[38].mxu0  ;;  %v2299_v31 = vmul.f32 %v6920_v9, %v6992_v3  ;;  %v2379_v36 = vmul.f32 %v2336_v25, %v6992_v3  ;;  %v2340_v9 = vpop.permute.xlu0 %2339  ;;  %v2459_v52 = vmul.f32 %v2416_v33, %v6992_v3 }
 0x38b   : > { %2950 = vrot.lane.b32.xlu1 %v2456_v49, %s6299_s19  ;;  %v2102_v19 = vpop.f32.mrb[39].mxu0  ;;  %v7026_v42 = vadd.f32 %v5599_v17, %v6960_v55 }
 0x38c   : > { %2501 = vrot.lane.b32.xlu0 %v2297_v18, %s6299_s19  ;;  %v7015_v50 = vadd.f32 %v6960_v55, %v2102_v19 }
 0x38d   : > { %v2382_v13 = vmul.f32 %v2342_v1, %v7026_v42 }
 0x38e   : > { %v5602_v22 = vpop.f32.mrb[40].mxu0  ;;  %v2301_v56 = vmul.f32 %v6922_v40, %v7015_v50  ;;  %v2420_v57 = vpop.permute.xlu0 %2419  ;;  %v2381_v11 = vmul.f32 %v2340_v9, %v7015_v50  ;;  %v2302_v40 = vmul.f32 %v6928_v44, %v7026_v42 }
 0x38f   : > { %2497 = vrot.lane.b32.xlu1 %v2295_v6, %s6299_s19  ;;  %v2112_v63 = vpop.f32.mrb[41].mxu0  ;;  %v2461_v2 = vmul.f32 %v2420_v57, %v7015_v50  ;;  %v2422_v44 = vpop.permute.xlu1 %2421  ;;  %v7049_v49 = vadd.f32 %v5602_v22, %v6960_v55 }
 0x390   : > { %2727 = vrot.lane.b32.xlu0 %v2377_v24, %s6299_s19  ;;  %v7035_v12 = vadd.f32 %v6960_v55, %v2112_v63  ;;  %v2462_v17 = vmul.f32 %v2422_v44, %v7026_v42 }
 0x391   : > { %v2304_v6 = vmul.f32 %v6932_v45, %v7049_v49 }
 0x392   : > { %v5605_v28 = vpop.f32.mrb[42].mxu0  ;;  %v2344_v0 = vpop.permute.xlu0 %2343  ;;  %v2303_v15 = vmul.f32 %v6926_v43, %v7035_v12 }
 0x393   : > { %2503 = vrot.lane.b32.xlu1 %v2298_v26, %s6299_s19  ;;  %v2122_v23 = vpop.f32.mrb[43].mxu0  ;;  %v7060_v19 = vadd.f32 %v5605_v28, %v6960_v55  ;;  %v2383_v28 = vmul.f32 %v2344_v0, %v7035_v12 }
 0x394   : > { %2952 = vrot.lane.b32.xlu0 %v2457_v29, %s6299_s19  ;;  %v7042_v61 = vadd.f32 %v6960_v55, %v2122_v23 }
 0x395   : > { %v2306_v25 = vmul.f32 %v6936_v46, %v7060_v19 }
 0x396   : > { %v5608_v30 = vpop.f32.mrb[44].mxu0  ;;  %v2424_v16 = vpop.permute.xlu0 %2423  ;;  %v2305_v7 = vmul.f32 %v6930_v41, %v7042_v61 }
 0x397   : > { %2729 = vrot.lane.b32.xlu1 %v2378_v20, %s6299_s19  ;;  %v2132_v14 = vpop.f32.mrb[45].mxu0  ;;  %v2346_v41 = vpop.permute.xlu1 %2345  ;;  %v7072_v63 = vadd.f32 %v5608_v30, %v6960_v55 }
 0x398   : > { %2505 = vrot.lane.b32.xlu0 %v2299_v31, %s6299_s19  ;;  %v7053_v18 = vadd.f32 %v6960_v55, %v2132_v14 }
 0x39a   : > { %v5611_v34 = vpop.f32.mrb[46].mxu0  ;;  %v2348_v43 = vpop.permute.xlu0 %2347  ;;  %v2307_v24 = vmul.f32 %v6934_v4, %v7053_v18  ;;  %v2308_v4 = vmul.f32 %v6946_v5, %v7072_v63  ;;  %v2384_v5 = vmul.f32 %v2346_v41, %v7049_v49 }
 0x39b   : > { %v7008_v37 = vadd.f32 %v5611_v34, %v6960_v55  ;;  %2954 = vrot.lane.b32.xlu1 %v2458_v32, %s6299_s19  ;;  %v2142_v38 = vpop.f32.mrb[47].mxu0  ;;  %v2426_v27 = vpop.permute.xlu1 %2425  ;;  %v2385_v23 = vmul.f32 %v2348_v43, %v7042_v61 }
 0x39c   : > { %2731 = vrot.lane.b32.xlu0 %v2379_v36, %s6299_s19  ;;  %v7065_v22 = vadd.f32 %v6960_v55, %v2142_v38  ;;  %v2464_v30 = vmul.f32 %v2426_v27, %v7049_v49 }
 0x39d   : > { %8215 = vst [vmem:[#allocation7_spill] sm:$0xff] %v7008_v37  ;;  %v2310_v46 = vmul.f32 %v6955_v53, %v7008_v37 }
 0x39e   : > { %8216 = vst [vmem:[#allocation8_spill] sm:$0xff] %v7065_v22  ;;  %v2309_v45 = vmul.f32 %v6938_v47, %v7065_v22  ;;  %v2428_v26 = vpop.permute.xlu0 %2427  ;;  %v2463_v47 = vmul.f32 %v2424_v16, %v7035_v12 }
 0x39f   : > { %2507 = vrot.lane.b32.xlu1 %v2300_v39, %s6299_s19  ;;  %v2350_v29 = vpop.permute.xlu1 %2349  ;;  %v2465_v53 = vmul.f32 %v2428_v26, %v7042_v61 }
 0x3a0   : > { %2956 = vrot.lane.b32.xlu0 %v2459_v52, %s6299_s19  ;;  %v2386_v14 = vmul.f32 %v2350_v29, %v7060_v19 }
 0x3a2   : > { %v2352_v55 = vpop.permute.xlu0 %2351 }
 0x3a3   : > { %2733 = vrot.lane.b32.xlu1 %v2380_v54, %s6299_s19  ;;  %v2430_v31 = vpop.permute.xlu1 %2429  ;;  %v2387_v8 = vmul.f32 %v2352_v55, %v7053_v18 }
 0x3a4   : > { %2509 = vrot.lane.b32.xlu0 %v2301_v56, %s6299_s19  ;;  %v2466_v34 = vmul.f32 %v2430_v31, %v7060_v19 }
 0x3a6   : > { %v2432_v20 = vpop.permute.xlu0 %2431 }
 0x3a7   : > { %2958 = vrot.lane.b32.xlu1 %v2460_v60, %s6299_s19  ;;  %v2354_v32 = vpop.permute.xlu1 %2353  ;;  %v2467_v36 = vmul.f32 %v2432_v20, %v7053_v18 }
 0x3a8   : > { %2735 = vrot.lane.b32.xlu0 %v2381_v11, %s6299_s19  ;;  %v2388_v9 = vmul.f32 %v2354_v32, %v7072_v63 }
 0x3aa   : > { %v2438_v33 = vpop.permute.xlu0 %2437 }
 0x3ab   : > { %2511 = vrot.lane.b32.xlu1 %v2302_v40, %s6299_s19  ;;  %v2434_v39 = vpop.permute.xlu1 %2433  ;;  %v2470_v60 = vmul.f32 %v2438_v33, %v7008_v37 }
 0x3ac   : > { %2960 = vrot.lane.b32.xlu0 %v2461_v2, %s6299_s19  ;;  %v2468_v54 = vmul.f32 %v2434_v39, %v7072_v63 }
 0x3ae   : > { %v2356_v38 = vpop.permute.xlu0 %2355 }
 0x3af   : > { %2737 = vrot.lane.b32.xlu1 %v2382_v13, %s6299_s19  ;;  %v2389_v48 = vmul.f32 %v2356_v38, %v7065_v22  ;;  %v2358_v57 = vpop.permute.xlu1 %2357 }
 0x3b0   : > { %2513 = vrot.lane.b32.xlu0 %v2303_v15, %s6299_s19  ;;  %v2390_v59 = vmul.f32 %v2358_v57, %v7008_v37 }
 0x3b2   : > { %v2436_v52 = vpop.permute.xlu0 %2435 }
 0x3b3   : > { %2962 = vrot.lane.b32.xlu1 %v2462_v17, %s6299_s19  ;;  %v2469_v56 = vmul.f32 %v2436_v52, %v7065_v22 }
 0x3b4   : > { %2517 = vrot.lane.b32.xlu0 %v2305_v7, %s6299_s19 }
 0x3b7   : > { %2515 = vrot.lane.b32.xlu1 %v2304_v6, %s6299_s19 }
 0x3b8   : > { %2521 = vrot.lane.b32.xlu0 %v2307_v24, %s6299_s19 }
 0x3bb   : > { %2519 = vrot.lane.b32.xlu1 %v2306_v25, %s6299_s19 }
 0x3bc   : > { %2525 = vrot.lane.b32.xlu0 %v2309_v45, %s6299_s19 }
 0x3bf   : > { %2523 = vrot.lane.b32.xlu1 %v2308_v4, %s6299_s19 }
 0x3c0   : > { %2739 = vrot.lane.b32.xlu0 %v2383_v28, %s6299_s19 }
 0x3c3   : > { %2527 = vrot.lane.b32.xlu1 %v2310_v46, %s6299_s19 }
 0x3c4   : > { %2964 = vrot.lane.b32.xlu0 %v2463_v47, %s6299_s19 }
 0x3c7   : > { %2741 = vrot.lane.b32.xlu1 %v2384_v5, %s6299_s19 }
 0x3c8   : > { %2743 = vrot.lane.b32.xlu0 %v2385_v23, %s6299_s19 }
 0x3cb   : > { %2966 = vrot.lane.b32.xlu1 %v2464_v30, %s6299_s19 }
 0x3cc   : > { %2968 = vrot.lane.b32.xlu0 %v2465_v53, %s6299_s19 }
 0x3cf   : > { %2745 = vrot.lane.b32.xlu1 %v2386_v14, %s6299_s19 }
 0x3d0   : > { %2747 = vrot.lane.b32.xlu0 %v2387_v8, %s6299_s19 }
 0x3d3   : > { %2970 = vrot.lane.b32.xlu1 %v2466_v34, %s6299_s19 }
 0x3d4   : > { %2972 = vrot.lane.b32.xlu0 %v2467_v36, %s6299_s19 }
 0x3d7   : > { %2749 = vrot.lane.b32.xlu1 %v2388_v9, %s6299_s19 }
 0x3d8   : > { %2751 = vrot.lane.b32.xlu0 %v2389_v48, %s6299_s19 }
 0x3db   : > { %2974 = vrot.lane.b32.xlu1 %v2468_v54, %s6299_s19 }
 0x3dc   : > { %2976 = vrot.lane.b32.xlu0 %v2469_v56, %s6299_s19 }
 0x3df   : > { %2753 = vrot.lane.b32.xlu1 %v2390_v59, %s6299_s19 }
 0x3e3   : > { %2978 = vrot.lane.b32.xlu1 %v2470_v60, %s6299_s19  ;;  %s6304_s19 = smov 127  }
 0x3f5   : > { %v2500_v11 = vpop.permute.xlu1 %2499 }
 0x3f6   : > { %v2724_v0 = vpop.permute.xlu0 %2723 }
 0x3f7   : > { %5644 = vmatprep.mubr.msk.f32.mxu1 %vm2529_vm0, %v2724_v0  ;;  %v2476_v0 = vld [vmem:[%s8190_s11 + $0x8] sm:$0xff] }
 0x3f9   : > { %v2726_v40 = vpop.permute.xlu1 %2725 }
 0x3fa   : > { %5645 = vmatmul.mubr.msk.f32.vlgmr.msra.gmra.mrb[32].mxu1 %vm2529_vm0, %v2726_v40  ;;  %v2949_v1 = vpop.permute.xlu0 %2948 }
 0x3fd   : > { %v2951_v2 = vpop.permute.xlu1 %2950 }
 0x3fe   : > { %v2502_v13 = vpop.permute.xlu0 %2501 }
 0x401   : > { %v2498_v15 = vpop.permute.xlu1 %2497 }
 0x402   : > { %v2728_v16 = vpop.permute.xlu0 %2727  ;;  %5616 = vmatprep.mubr.msk.f32.mxu0 %vm2529_vm0, %v2498_v15 }
 0x403   : > { %5617 = vmatmul.mubr.msk.f32.vlgmr.msra.gmra.mrb[48].mxu0 %vm2529_vm0, %v2500_v11  ;;  %5647 = vmatprep.mubr.msk.f32.mxu1 %vm2529_vm0, %v2728_v16  ;;  %v2475_v11 = vld [vmem:[%s8190_s11] sm:$0xff] }
 0x404   : > { %5619 = vmatprep.mubr.msk.f32.mxu0 %vm2529_vm0, %v2502_v13  ;;  %5874 = vmatpush3.bf16.msra.mxu0 %v6948_v51  ;;  %v5875_v40 = vpack.c.bf16 %v2476_v0, %v2475_v11 }
 0x405   : > { %v2504_v44 = vpop.permute.xlu1 %2503 }
 0x406   : > { %v2953_v17 = vpop.permute.xlu0 %2952  ;;  %5876 = vmatprep.subr.bf16.mxu1 %v5875_v40 }
 0x407   : > { %5620 = vmatmul.mubr.msk.f32.gmra.mrb[50].mxu0 %vm2529_vm0, %v2504_v44  ;;  %5878 = vmatpush3.bf16.msra.mxu1 %v5875_v40 }
 0x409   : > { %v2730_v7 = vpop.permute.xlu1 %2729 }
 0x40a   : > { %5648 = vmatmul.mubr.msk.f32.gmra.mrb[34].mxu1 %vm2529_vm0, %v2730_v7  ;;  %v2506_v43 = vpop.permute.xlu0 %2505 }
 0x40b   : > { %5622 = vmatprep.mubr.msk.f32.mxu0 %vm2529_vm0, %v2506_v43 }
 0x40d   : > { %v2955_v6 = vpop.permute.xlu1 %2954 }
 0x40e   : > { %v2732_v24 = vpop.permute.xlu0 %2731 }
 0x40f   : > { %5650 = vmatprep.mubr.msk.f32.mxu1 %vm2529_vm0, %v2732_v24 }
 0x411   : > { %v2508_v41 = vpop.permute.xlu1 %2507 }
 0x412   : > { %v2957_v25 = vpop.permute.xlu0 %2956  ;;  %5623 = vmatmul.mubr.msk.f32.gmra.mrb[52].mxu0 %vm2529_vm0, %v2508_v41 }
 0x415   : > { %v2734_v45 = vpop.permute.xlu1 %2733 }
 0x416   : > { %5651 = vmatmul.mubr.msk.f32.gmra.mrb[36].mxu1 %vm2529_vm0, %v2734_v45  ;;  %v2510_v51 = vpop.permute.xlu0 %2509 }
 0x417   : > { %5625 = vmatprep.mubr.msk.f32.mxu0 %vm2529_vm0, %v2510_v51 }
 0x419   : > { %v2959_v26 = vpop.permute.xlu1 %2958 }
 0x41a   : > { %v2736_v4 = vpop.permute.xlu0 %2735 }
 0x41b   : > { %5653 = vmatprep.mubr.msk.f32.mxu1 %vm2529_vm0, %v2736_v4 }
 0x41d   : > { %v2512_v27 = vpop.permute.xlu1 %2511 }
 0x41e   : > { %v2961_v28 = vpop.permute.xlu0 %2960  ;;  %5626 = vmatmul.mubr.msk.f32.gmra.mrb[54].mxu0 %vm2529_vm0, %v2512_v27 }
 0x421   : > { %v2738_v55 = vpop.permute.xlu1 %2737 }
 0x422   : > { %5654 = vmatmul.mubr.msk.f32.gmra.mrb[38].mxu1 %vm2529_vm0, %v2738_v55  ;;  %v2514_v46 = vpop.permute.xlu0 %2513 }
 0x423   : > { %5628 = vmatprep.mubr.msk.f32.mxu0 %vm2529_vm0, %v2514_v46 }
 0x425   : > { %v2963_v47 = vpop.permute.xlu1 %2962 }
 0x426   : > { %v2518_v29 = vpop.permute.xlu0 %2517 }
 0x429   : > { %v2516_v5 = vpop.permute.xlu1 %2515 }
 0x42a   : > { %v2522_v23 = vpop.permute.xlu0 %2521  ;;  %5629 = vmatmul.mubr.msk.f32.gmra.mrb[56].mxu0 %vm2529_vm0, %v2516_v5 }
 0x42b   : > { %5631 = vmatprep.mubr.msk.f32.mxu0 %vm2529_vm0, %v2518_v29 }
 0x42d   : > { %v2520_v20 = vpop.permute.xlu1 %2519 }
 0x42e   : > { %5632 = vmatmul.mubr.msk.f32.gmra.mrb[58].mxu0 %vm2529_vm0, %v2520_v20  ;;  %v2526_v30 = vpop.permute.xlu0 %2525 }
 0x42f   : > { %5634 = vmatprep.mubr.msk.f32.mxu0 %vm2529_vm0, %v2522_v23 }
 0x431   : > { %v2524_v31 = vpop.permute.xlu1 %2523 }
 0x432   : > { %5635 = vmatmul.mubr.msk.f32.gmra.mrb[60].mxu0 %vm2529_vm0, %v2524_v31  ;;  %v2740_v53 = vpop.permute.xlu0 %2739 }
 0x433   : > { %5637 = vmatprep.mubr.msk.f32.mxu0 %vm2529_vm0, %v2526_v30  ;;  %5656 = vmatprep.mubr.msk.f32.mxu1 %vm2529_vm0, %v2740_v53 }
 0x435   : > { %v2528_v33 = vpop.permute.xlu1 %2527 }
 0x436   : > { %5638 = vmatmul.mubr.msk.f32.gmra.mrb[62].mxu0 %vm2529_vm0, %v2528_v33  ;;  %v2965_v14 = vpop.permute.xlu0 %2964 }
 0x437   : > { %5672 = vmatprep.mubr.msk.f32.mxu0 %vm2529_vm0, %v2949_v1  ;;  %v2473_v1 = vld [vmem:[%s8189_s10] sm:$0xff] }
 0x439   : > { %v2742_v8 = vpop.permute.xlu1 %2741 }
 0x43a   : > { %5657 = vmatmul.mubr.msk.f32.gmra.mrb[40].mxu1 %vm2529_vm0, %v2742_v8  ;;  %5673 = vmatmul.mubr.msk.f32.vlgmr.msra.gmra.mrb[64].mxu0 %vm2529_vm0, %v2951_v2  ;;  %v2744_v32 = vpop.permute.xlu0 %2743  ;;  %v2474_v2 = vld [vmem:[%s8189_s10 + $0x8] sm:$0xff] }
 0x43b   : > { %5659 = vmatprep.mubr.msk.f32.mxu1 %vm2529_vm0, %v2744_v32  ;;  %5675 = vmatprep.mubr.msk.f32.mxu0 %vm2529_vm0, %v2953_v17  ;;  %v7179_v13 = vpack.c.bf16 %v2474_v2, %v2473_v1 }
 0x43d   : > { %v2967_v34 = vpop.permute.xlu1 %2966  ;;  %5880 = vmatprep.subr.bf16.mxu1 %v7179_v13 }
 0x43e   : > { %5676 = vmatmul.mubr.msk.f32.gmra.mrb[66].mxu0 %vm2529_vm0, %v2955_v6  ;;  %v2969_v36 = vpop.permute.xlu0 %2968 }
 0x43f   : > { %5678 = vmatprep.mubr.msk.f32.mxu0 %vm2529_vm0, %v2957_v25 }
 0x441   : > { %v2746_v38 = vpop.permute.xlu1 %2745 }
 0x442   : > { %5660 = vmatmul.mubr.msk.f32.gmra.mrb[42].mxu1 %vm2529_vm0, %v2746_v38  ;;  %5679 = vmatmul.mubr.msk.f32.gmra.mrb[68].mxu0 %vm2529_vm0, %v2959_v26  ;;  %v2748_v9 = vpop.permute.xlu0 %2747 }
 0x443   : > { %5662 = vmatprep.mubr.msk.f32.mxu1 %vm2529_vm0, %v2748_v9  ;;  %5681 = vmatprep.mubr.msk.f32.mxu0 %vm2529_vm0, %v2961_v28 }
 0x445   : > { %v2971_v39 = vpop.permute.xlu1 %2970 }
 0x446   : > { %5682 = vmatmul.mubr.msk.f32.gmra.mrb[70].mxu0 %vm2529_vm0, %v2963_v47  ;;  %v2973_v48 = vpop.permute.xlu0 %2972 }
 0x447   : > { %5684 = vmatprep.mubr.msk.f32.mxu0 %vm2529_vm0, %v2965_v14 }
 0x449   : > { %v2750_v52 = vpop.permute.xlu1 %2749 }
 0x44a   : > { %5663 = vmatmul.mubr.msk.f32.gmra.mrb[44].mxu1 %vm2529_vm0, %v2750_v52  ;;  %5685 = vmatmul.mubr.msk.f32.gmra.mrb[72].mxu0 %vm2529_vm0, %v2967_v34  ;;  %v2752_v54 = vpop.permute.xlu0 %2751 }
 0x44b   : > { %5665 = vmatprep.mubr.msk.f32.mxu1 %vm2529_vm0, %v2752_v54  ;;  %5687 = vmatprep.mubr.msk.f32.mxu0 %vm2529_vm0, %v2969_v36 }
 0x44d   : > { %v2975_v56 = vpop.permute.xlu1 %2974 }
 0x44e   : > { %5688 = vmatmul.mubr.msk.f32.gmra.mrb[74].mxu0 %vm2529_vm0, %v2971_v39  ;;  %v2977_v59 = vpop.permute.xlu0 %2976 }
 0x44f   : > { %5690 = vmatprep.mubr.msk.f32.mxu0 %vm2529_vm0, %v2973_v48 }
 0x451   : > { %v2754_v57 = vpop.permute.xlu1 %2753 }
 0x452   : > { %5666 = vmatmul.mubr.msk.f32.gmra.mrb[46].mxu1 %vm2529_vm0, %v2754_v57  ;;  %5691 = vmatmul.mubr.msk.f32.gmra.mrb[76].mxu0 %vm2529_vm0, %v2975_v56 }
 0x453   : > { %5693 = vmatprep.mubr.msk.f32.mxu0 %vm2529_vm0, %v2977_v59 }
 0x455   : > { %v2979_v60 = vpop.permute.xlu1 %2978 }
 0x456   : > { %5694 = vmatmul.mubr.msk.f32.gmra.mrb[78].mxu0 %vm2529_vm0, %v2979_v60 }
 0x4cd   : > { %v5646_v15 = vpop.f32.mrb[32].mxu1 }
 0x4ce   : > { %v2853_v16 = vpop.f32.mrb[33].mxu1  ;;  %v3174_v17 = vmul.f32 %v5646_v15, %v5646_v15 }
 0x4cf   : > { %v3173_v6 = vmul.f32 %v2853_v16, %v2853_v16 }
 0x4d6   : > { %v5618_v44 = vpop.f32.mrb[48].mxu0 }
 0x4d7   : > { %v3158_v7 = vmul.f32 %v5618_v44, %v5618_v44  ;;  %4054 = vrot.lane.b32.xlu1 %v5618_v44, %s6300_s27  ;;  %v2628_v43 = vpop.f32.mrb[49].mxu0  ;;  %v2151_v44 = vmul.f32 0.5, %v6966_v58 }
 0x4d8   : > { %v3157_v24 = vmul.f32 %v2628_v43, %v2628_v43  ;;  %4052 = vrot.lane.b32.xlu0 %v2628_v43, %s6300_s27 }
 0x4d9   : > { %v7184_v41 = vadd.f32 %v3174_v17, %v3158_v7  ;;  %v2154_v17 = vmul.f32 0.5, %v6984_v21 }
 0x4da   : > { %v7186_v25 = vadd.f32 %v3173_v6, %v3157_v24  ;;  %v5621_v45 = vpop.f32.mrb[50].mxu0 }
 0x4db   : > { %4134 = vrot.lane.b32.xlu1 %v5646_v15, %s6300_s27  ;;  %v2638_v51 = vpop.f32.mrb[51].mxu0  ;;  %v3160_v4 = vmul.f32 %v5621_v45, %v5621_v45 }
 0x4dc   : > { %4132 = vrot.lane.b32.xlu0 %v2853_v16, %s6300_s27  ;;  %v3159_v55 = vmul.f32 %v2638_v51, %v2638_v51  ;;  %v2152_v16 = vmul.f32 0.5, %v6963_v10 }
 0x4dd   : > { %v5649_v26 = vpop.f32.mrb[34].mxu1 }
 0x4de   : > { %v3176_v27 = vmul.f32 %v5649_v26, %v5649_v26  ;;  %v2863_v28 = vpop.f32.mrb[35].mxu1  ;;  %6113 = vtanh.f32 %v2152_v16 }
 0x4df   : > { %v3175_v46 = vmul.f32 %v2863_v28, %v2863_v28  ;;  %4058 = vrot.lane.b32.xlu1 %v5621_v45, %s6300_s27  ;;  %6115 = vtanh.f32 %v2151_v44 }
 0x4e0   : > { %v7191_v47 = vadd.f32 %v3176_v27, %v3160_v4  ;;  %4056 = vrot.lane.b32.xlu0 %v2638_v51, %s6300_s27  ;;  %6117 = vtanh.f32 %v2154_v17 }
 0x4e1   : > { %v7194_v29 = vadd.f32 %v3175_v46, %v3159_v55  ;;  %v2153_v55 = vmul.f32 0.5, %v6974_v62 }
 0x4e3   : > { %4138 = vrot.lane.b32.xlu1 %v5649_v26, %s6300_s27 }
 0x4e4   : > { %4136 = vrot.lane.b32.xlu0 %v2863_v28, %s6300_s27 }
 0x4e5   : > { %v5624_v5 = vpop.f32.mrb[52].mxu0 }
 0x4e6   : > { %v2648_v23 = vpop.f32.mrb[53].mxu0  ;;  %v3162_v30 = vmul.f32 %v5624_v5, %v5624_v5 }
 0x4e7   : > { %4062 = vrot.lane.b32.xlu1 %v5624_v5, %s6300_s27  ;;  %v3161_v33 = vmul.f32 %v2648_v23, %v2648_v23 }
 0x4e8   : > { %4060 = vrot.lane.b32.xlu0 %v2648_v23, %s6300_s27  ;;  %v7298_v17 = vpop.eup %6113 }
 0x4e9   : > { %v5652_v20 = vpop.f32.mrb[36].mxu1 }
 0x4ea   : > { %v3178_v31 = vmul.f32 %v5652_v20, %v5652_v20  ;;  %v2873_v53 = vpop.f32.mrb[37].mxu1 }
 0x4eb   : > { %v3177_v14 = vmul.f32 %v2873_v53, %v2873_v53  ;;  %4142 = vrot.lane.b32.xlu1 %v5652_v20, %s6300_s27 }
 0x4ec   : > { %v7201_v8 = vadd.f32 %v3178_v31, %v3162_v30  ;;  %4140 = vrot.lane.b32.xlu0 %v2873_v53, %s6300_s27 }
 0x4ed   : > { %v7204_v32 = vadd.f32 %v3177_v14, %v3161_v33  ;;  %v7264_v33 = vmul.f32 0.5, %v7003_v35 }
 0x4f1   : > { %v5627_v34 = vpop.f32.mrb[54].mxu0 }
 0x4f2   : > { %4066 = vrot.lane.b32.xlu1 %v5627_v34, %s6300_s27  ;;  %v2658_v36 = vpop.f32.mrb[55].mxu0  ;;  %v3164_v9 = vmul.f32 %v5627_v34, %v5627_v34 }
 0x4f3   : > { %4064 = vrot.lane.b32.xlu0 %v2658_v36, %s6300_s27  ;;  %v3163_v52 = vmul.f32 %v2658_v36, %v2658_v36 }
 0x4f5   : > { %v5655_v38 = vpop.f32.mrb[38].mxu1 }
 0x4f6   : > { %v3180_v39 = vmul.f32 %v5655_v38, %v5655_v38  ;;  %v2883_v48 = vpop.f32.mrb[39].mxu1  ;;  %4146 = vrot.lane.b32.xlu1 %v5655_v38, %s6300_s27 }
 0x4f7   : > { %v3179_v54 = vmul.f32 %v2883_v48, %v2883_v48  ;;  %4144 = vrot.lane.b32.xlu0 %v2883_v48, %s6300_s27 }
 0x4f8   : > { %v7210_v56 = vadd.f32 %v3180_v39, %v3164_v9 }
 0x4f9   : > { %v7212_v57 = vadd.f32 %v3179_v54, %v3163_v52 }
 0x4fd   : > { %v5630_v59 = vpop.f32.mrb[56].mxu0 }
 0x4fe   : > { %4070 = vrot.lane.b32.xlu1 %v5630_v59, %s6300_s27  ;;  %v2668_v60 = vpop.f32.mrb[57].mxu0  ;;  %v3166_v6 = vmul.f32 %v5630_v59, %v5630_v59 }
 0x4ff   : > { %4068 = vrot.lane.b32.xlu0 %v2668_v60, %s6300_s27  ;;  %v3165_v4 = vmul.f32 %v2668_v60, %v2668_v60 }
 0x501   : > { %v5633_v11 = vpop.f32.mrb[58].mxu0 }
 0x502   : > { %v2678_v0 = vpop.f32.mrb[59].mxu0  ;;  %v3168_v14 = vmul.f32 %v5633_v11, %v5633_v11 }
 0x503   : > { %v3167_v34 = vmul.f32 %v2678_v0, %v2678_v0 }
 0x505   : > { %v7216_v40 = vpop.f32.mrb[60].mxu0 }
 0x506   : > { %v7218_v1 = vpop.f32.mrb[61].mxu0  ;;  %v3170_v39 = vmul.f32 %v7216_v40, %v7216_v40 }
 0x509   : > { %v7220_v2 = vpop.f32.mrb[62].mxu0 }
 0x50a   : > { %v7222_v15 = vpop.f32.mrb[63].mxu0 }
 0x50d   : > { %v5658_v7 = vpop.f32.mrb[40].mxu1  ;;  %v7227_v43 = vpop.f32.mrb[64].mxu0 }
 0x50e   : > { %v3182_v24 = vmul.f32 %v5658_v7, %v5658_v7  ;;  %v3206_v45 = vmul.f32 %v7227_v43, %v7227_v43  ;;  %v7231_v51 = vpop.f32.mrb[65].mxu0  ;;  %4150 = vrot.lane.b32.xlu1 %v5658_v7, %s6300_s27  ;;  %v2893_v26 = vpop.f32.mrb[41].mxu1 }
 0x50f   : > { %v3205_v27 = vmul.f32 %v7231_v51, %v7231_v51  ;;  %v3181_v28 = vmul.f32 %v2893_v26, %v2893_v26  ;;  %4148 = vrot.lane.b32.xlu0 %v2893_v26, %s6300_s27 }
 0x510   : > { %v7238_v46 = vadd.f32 %v3182_v24, %v3166_v6  ;;  %v7241_v5 = vadd.f32 %v3206_v45, %v7184_v41  ;;  %v7309_v45 = vpop.eup %6115 }
 0x511   : > { %v7244_v23 = vadd.f32 %v3205_v27, %v7186_v25  ;;  %v7246_v20 = vadd.f32 %v3181_v28, %v3165_v4  ;;  %v7248_v30 = vpop.f32.mrb[66].mxu0 }
 0x512   : > { %6119 = vrsqrt.f32 %v7241_v5  ;;  %v3208_v31 = vmul.f32 %v7248_v30, %v7248_v30  ;;  %v7253_v53 = vpop.f32.mrb[67].mxu0  ;;  %4074 = vrot.lane.b32.xlu1 %v5633_v11, %s6300_s27  ;;  %v7287_v11 = vmul.f32 %v7220_v2, %v7220_v2  ;;  %vm3246_vm3 = vcmp.eq.f32.partialorder %v7241_v5, inf }
 0x513   : > { %v3207_v41 = vmul.f32 %v7253_v53, %v7253_v53  ;;  %4072 = vrot.lane.b32.xlu0 %v2678_v0, %s6300_s27  ;;  %6121 = vrsqrt.f32 %v7244_v23  ;;  %v7291_v0 = vmul.f32 %v7222_v15, %v7222_v15  ;;  %vm3248_vm4 = vcmp.eq.f32.partialorder %v7241_v5, 0.0 }
 0x514   : > { %v7261_v25 = vadd.f32 %v3208_v31, %v7191_v47  ;;  %6123 = vtanh.f32 %v2153_v55  ;;  %vm3239_vm5 = vcmp.eq.f32.partialorder %v7244_v23, inf  ;;  %vm3241_vm6 = vcmp.eq.f32.partialorder %v7244_v23, 0.0 }
 0x515   : > { %v7267_v36 = vadd.f32 %v3207_v41, %v7194_v29  ;;  %v5661_v38 = vpop.f32.mrb[42].mxu1  ;;  %v7269_v9 = vpop.f32.mrb[68].mxu0  ;;  %v3169_v29 = vmul.f32 %v7218_v1, %v7218_v1  ;;  %v3242_v27 = vand.u32 2147483648, %v7244_v23  ;;  %v3249_v28 = vand.u32 2147483648, %v7241_v5 }
 0x516   : > { %v3184_v48 = vmul.f32 %v5661_v38, %v5661_v38  ;;  %v3210_v47 = vmul.f32 %v7269_v9, %v7269_v9  ;;  %v7275_v52 = vpop.f32.mrb[69].mxu0  ;;  %4154 = vrot.lane.b32.xlu1 %v5661_v38, %s6300_s27  ;;  %v2903_v54 = vpop.f32.mrb[43].mxu1  ;;  %6125 = vrsqrt.f32 %v7261_v25  ;;  %vm3260_vm9 = vcmp.eq.f32.partialorder %v7261_v25, inf }
 0x517   : > { %v3209_v59 = vmul.f32 %v7275_v52, %v7275_v52  ;;  %v3183_v60 = vmul.f32 %v2903_v54, %v2903_v54  ;;  %4152 = vrot.lane.b32.xlu0 %v2903_v54, %s6300_s27  ;;  %6127 = vrsqrt.f32 %v7267_v36  ;;  %vm3253_vm7 = vcmp.eq.f32.partialorder %v7267_v36, inf }
 0x518   : > { %v7293_v16 = vadd.f32 %v3184_v48, %v3168_v14  ;;  %v7296_v44 = vadd.f32 %v3210_v47, %v7201_v8  ;;  %vm3255_vm8 = vcmp.eq.f32.partialorder %v7267_v36, 0.0  ;;  %v3256_v38 = vand.u32 2147483648, %v7267_v36 }
 0x519   : > { %v7301_v7 = vadd.f32 %v3209_v59, %v7204_v32  ;;  %v7303_v6 = vadd.f32 %v3183_v60, %v3167_v34  ;;  %v7305_v24 = vpop.f32.mrb[70].mxu0  ;;  %v7320_v32 = vpop.eup %6117  ;;  %vm3262_vm10 = vcmp.eq.f32.partialorder %v7261_v25, 0.0  ;;  %v3263_v21 = vand.u32 2147483648, %v7261_v25 }
 0x51a   : > { %v3212_v26 = vmul.f32 %v7305_v24, %v7305_v24  ;;  %v7313_v8 = vpop.f32.mrb[71].mxu0  ;;  %4078 = vrot.lane.b32.xlu1 %v7216_v40, %s6300_s27  ;;  %6129 = vrsqrt.f32 %v7296_v44  ;;  %vm3274_vm11 = vcmp.eq.f32.partialorder %v7296_v44, inf  ;;  %vm3276_vm13 = vcmp.eq.f32.partialorder %v7296_v44, 0.0 }
 0x51b   : > { %v3211_v4 = vmul.f32 %v7313_v8, %v7313_v8  ;;  %4076 = vrot.lane.b32.xlu0 %v7218_v1, %s6300_s27  ;;  %6131 = vrsqrt.f32 %v7301_v7  ;;  %vm3267_vm12 = vcmp.eq.f32.partialorder %v7301_v7, inf  ;;  %vm3269_vm14 = vcmp.eq.f32.partialorder %v7301_v7, 0.0 }
 0x51c   : > { %v6120_v40 = vpop.eup %6119  ;;  %v7330_v55 = vadd.f32 %v3212_v26, %v7210_v56 }
 0x51d   : > { %v6122_v31 = vpop.eup %6121  ;;  %v7336_v41 = vadd.f32 %v3211_v4, %v7212_v57  ;;  %v5664_v1 = vpop.f32.mrb[44].mxu1  ;;  %v3245_v34 = vmul.f32 %v6120_v40, %v7241_v5 }
 0x51e   : > { %v7338_v14 = vpop.f32.mrb[72].mxu0  ;;  %v7343_v56 = vpop.eup %6123  ;;  %v3186_v48 = vmul.f32 %v5664_v1, %v5664_v1  ;;  %4158 = vrot.lane.b32.xlu1 %v5664_v1, %s6300_s27  ;;  %v3238_v59 = vmul.f32 %v6122_v31, %v7244_v23  ;;  %6133 = vrsqrt.f32 %v7330_v55  ;;  %vm3288_vm1 = vcmp.eq.f32.partialorder %v7330_v55, inf }
 0x51f   : > { %v3214_v47 = vmul.f32 %v7338_v14, %v7338_v14  ;;  %v7347_v54 = vpop.f32.mrb[73].mxu0  ;;  %v2913_v57 = vpop.f32.mrb[45].mxu1  ;;  %v3247_v4 = vsel %vm3246_vm3, %v7241_v5, %v3245_v34  ;;  %6135 = vrsqrt.f32 %v7336_v41  ;;  %vm3281_vm15 = vcmp.eq.f32.partialorder %v7336_v41, inf }
 0x520   : > { %v3213_v60 = vmul.f32 %v7347_v54, %v7347_v54  ;;  %v3185_v26 = vmul.f32 %v2913_v57, %v2913_v57  ;;  %4156 = vrot.lane.b32.xlu0 %v2913_v57, %s6300_s27  ;;  %v6126_v40 = vpop.eup %6125  ;;  %v3202_v35 = vadd.f32 %v3186_v48, %v3170_v39  ;;  %v3240_v31 = vsel %vm3239_vm5, %v7244_v23, %v3238_v59 }
 0x521   : > { %v7360_v1 = vadd.f32 %v3214_v47, %v7238_v46  ;;  %v6128_v37 = vpop.eup %6127  ;;  %v7369_v22 = vpop.f32.mrb[74].mxu0  ;;  %v3243_v34 = vsel %vm3241_vm6, %v3242_v27, %v3240_v31  ;;  %v3259_v39 = vmul.f32 %v6126_v40, %v7261_v25  ;;  %v3270_v27 = vand.u32 2147483648, %v7301_v7 }
 0x522   : > { %v7367_v57 = vadd.f32 %v3213_v60, %v7246_v20  ;;  %v3201_v62 = vadd.f32 %v3185_v26, %v3169_v29  ;;  %v3216_v46 = vmul.f32 %v7369_v22, %v7369_v22  ;;  %v7376_v48 = vpop.f32.mrb[75].mxu0  ;;  %4082 = vrot.lane.b32.xlu1 %v7220_v2, %s6300_s27  ;;  %5700 = vmatprep.mubr.msk.f32.mxu1 %vm2529_vm0, %v3243_v34  ;;  %vm3283_vm2 = vcmp.eq.f32.partialorder %v7336_v41, 0.0 }
 0x523   : > { %v3250_v20 = vsel %vm3248_vm4, %v3249_v28, %v3247_v4  ;;  %v3252_v29 = vmul.f32 %v6128_v37, %v7267_v36  ;;  %v3215_v23 = vmul.f32 %v7376_v48, %v7376_v48  ;;  %v3261_v2 = vsel %vm3260_vm9, %v7261_v25, %v3259_v39 }
 0x524   : > { %4080 = vrot.lane.b32.xlu0 %v7222_v15, %s6300_s27  ;;  %5701 = vmatmul.mubr.msk.f32.vlgmr.msra.gmra.mrb[48].mxu1 %vm2529_vm0, %v3250_v20  ;;  %v6130_v5 = vpop.eup %6129  ;;  %v7396_v37 = vadd.f32 %v3216_v46, %v7293_v16  ;;  %6137 = vrsqrt.f32 %v7367_v57  ;;  %vm3290_vm3 = vcmp.eq.f32.partialorder %v7330_v55, 0.0  ;;  %vm3295_vm4 = vcmp.eq.f32.partialorder %v7367_v57, inf }
 0x525   : > { %5882 = vmatpush3.bf16.msra.mxu1 %v7179_v13  ;;  %v3254_v15 = vsel %vm3253_vm7, %v7267_v36, %v3252_v29  ;;  %v6132_v28 = vpop.eup %6131  ;;  %v7405_v47 = vadd.f32 %v3215_v23, %v7303_v6  ;;  %v5667_v59 = vpop.f32.mrb[46].mxu1  ;;  %v3264_v13 = vsel %vm3262_vm10, %v3263_v21, %v3261_v2  ;;  %v3273_v26 = vmul.f32 %v6130_v5, %v7296_v44 }
 0x526   : > { %v7407_v60 = vpop.f32.mrb[76].mxu0  ;;  %v3257_v16 = vsel %vm3255_vm8, %v3256_v38, %v3254_v15  ;;  %v3188_v4 = vmul.f32 %v5667_v59, %v5667_v59  ;;  %4162 = vrot.lane.b32.xlu1 %v5667_v59, %s6300_s27  ;;  %v2923_v6 = vpop.f32.mrb[47].mxu1  ;;  %v3266_v34 = vmul.f32 %v6132_v28, %v7301_v7  ;;  %v3277_v38 = vand.u32 2147483648, %v7296_v44 }
 0x527   : > { %v3218_v40 = vmul.f32 %v7407_v60, %v7407_v60  ;;  %v7416_v31 = vpop.f32.mrb[77].mxu0  ;;  %5703 = vmatprep.mubr.msk.f32.mxu1 %vm2529_vm0, %v3257_v16  ;;  %v3187_v25 = vmul.f32 %v2923_v6, %v2923_v6  ;;  %v3275_v36 = vsel %vm3274_vm11, %v7296_v44, %v3273_v26  ;;  %6139 = vrsqrt.f32 %v7360_v1 }
 0x528   : > { %v3217_v21 = vmul.f32 %v7416_v31, %v7416_v31  ;;  %5704 = vmatmul.mubr.msk.f32.gmra.mrb[50].mxu1 %vm2529_vm0, %v3264_v13  ;;  %4160 = vrot.lane.b32.xlu0 %v2923_v6, %s6300_s27  ;;  %v6134_v39 = vpop.eup %6133  ;;  %v3204_v46 = vadd.f32 %v3188_v4, %v7287_v11  ;;  %v3268_v29 = vsel %vm3267_vm12, %v7301_v7, %v3266_v34  ;;  %v3291_v13 = vand.u32 2147483648, %v7330_v55 }
 0x529   : > { %v7431_v20 = vadd.f32 %v3218_v40, %v3202_v35  ;;  %v6136_v23 = vpop.eup %6135  ;;  %v3203_v5 = vadd.f32 %v3187_v25, %v7291_v0  ;;  %v7440_v15 = vpop.f32.mrb[78].mxu0  ;;  %v3271_v28 = vsel %vm3269_vm14, %v3270_v27, %v3268_v29  ;;  %v3287_v11 = vmul.f32 %v6134_v39, %v7330_v55 }
 0x52a   : > { %v7437_v2 = vadd.f32 %v3217_v21, %v3201_v62  ;;  %v3220_v35 = vmul.f32 %v7440_v15, %v7440_v15  ;;  %5706 = vmatprep.mubr.msk.f32.mxu1 %vm2529_vm0, %v3271_v28  ;;  %4212 = vrot.lane.b32.xlu1 %v7231_v51, %s6300_s27  ;;  %v7450_v59 = vpop.f32.mrb[79].mxu0  ;;  %v3278_v62 = vsel %vm3276_vm13, %v3277_v38, %v3275_v36  ;;  %v3284_v27 = vand.u32 2147483648, %v7336_v41 }
 0x52b   : > { %v3280_v0 = vmul.f32 %v6136_v23, %v7336_v41  ;;  %v3219_v7 = vmul.f32 %v7450_v59, %v7450_v59  ;;  %v3289_v51 = vsel %vm3288_vm1, %v7330_v55, %v3287_v11  ;;  %6141 = vrsqrt.f32 %v7405_v47 }
 0x52c   : > { %5707 = vmatmul.mubr.msk.f32.gmra.mrb[52].mxu1 %vm2529_vm0, %v3278_v62  ;;  %4214 = vrot.lane.b32.xlu0 %v7227_v43, %s6300_s27  ;;  %v7464_v44 = vadd.f32 %v3220_v35, %v3204_v46  ;;  %v3292_v43 = vsel %vm3290_vm3, %v3291_v13, %v3289_v51  ;;  %6143 = vrsqrt.f32 %v7396_v37  ;;  %v2155_v55 = vmul.f32 0.5, %v6992_v3 }
 0x52d   : > { %v3282_v16 = vsel %vm3281_vm15, %v7336_v41, %v3280_v0  ;;  %v7471_v26 = vadd.f32 %v3219_v7, %v3203_v5  ;;  %6145 = vrsqrt.f32 %v7437_v2  ;;  %v2158_v40 = vmul.f32 0.5, %v7026_v42 }
 0x52e   : > { %v3285_v4 = vsel %vm3283_vm2, %v3284_v27, %v3282_v16  ;;  %4216 = vrot.lane.b32.xlu1 %v7253_v53, %s6300_s27  ;;  %v6138_v41 = vpop.eup %6137  ;;  %6147 = vrsqrt.f32 %v7431_v20  ;;  %v2157_v53 = vmul.f32 0.5, %v7015_v50  ;;  %v3298_v34 = vand.u32 2147483648, %v7367_v57 }
 0x52f   : > { %5709 = vmatprep.mubr.msk.f32.mxu1 %vm2529_vm0, %v3285_v4  ;;  %v3294_v6 = vmul.f32 %v6138_v41, %v7367_v57  ;;  %6149 = vtanh.f32 %v7264_v33  ;;  %vm3297_vm5 = vcmp.eq.f32.partialorder %v7367_v57, 0.0  ;;  %v7501_v25 = vadd.f32 1.0, %v7298_v17 }
 0x530   : > { %5710 = vmatmul.mubr.msk.f32.gmra.mrb[54].mxu1 %vm2529_vm0, %v3292_v43  ;;  %4218 = vrot.lane.b32.xlu0 %v7248_v30, %s6300_s27  ;;  %6151 = vrsqrt.f32 %v7471_v26  ;;  %vm3302_vm6 = vcmp.eq.f32.partialorder %v7360_v1, inf  ;;  %vm3304_vm7 = vcmp.eq.f32.partialorder %v7360_v1, 0.0  ;;  %v3305_v36 = vand.u32 2147483648, %v7360_v1 }
 0x531   : > { %v3296_v30 = vsel %vm3295_vm4, %v7367_v57, %v3294_v6  ;;  %6153 = vrsqrt.f32 %v7464_v44  ;;  %v6140_v21 = vpop.eup %6139  ;;  %v7507_v57 = vadd.f32 1.0, %v7309_v45  ;;  %vm3309_vm8 = vcmp.eq.f32.partialorder %v7405_v47, inf }
 0x532   : > { %4220 = vrot.lane.b32.xlu1 %v7275_v52, %s6300_s27  ;;  %v3299_v33 = vsel %vm3297_vm5, %v3298_v34, %v3296_v30  ;;  %6155 = vtanh.f32 %v2155_v55  ;;  %v3301_v52 = vmul.f32 %v6140_v21, %v7360_v1  ;;  %vm3311_vm9 = vcmp.eq.f32.partialorder %v7405_v47, 0.0 }
 0x533   : > { %5712 = vmatprep.mubr.msk.f32.mxu1 %vm2529_vm0, %v3299_v33  ;;  %6157 = vtanh.f32 %v2158_v40  ;;  %v3312_v45 = vand.u32 2147483648, %v7405_v47  ;;  %vm3316_vm10 = vcmp.eq.f32.partialorder %v7396_v37, inf  ;;  %v3319_v23 = vand.u32 2147483648, %v7396_v37 }
 0x534   : > { %4222 = vrot.lane.b32.xlu0 %v7269_v9, %s6300_s27  ;;  %6159 = vtanh.f32 %v2157_v53  ;;  %v3303_v38 = vsel %vm3302_vm6, %v7360_v1, %v3301_v52  ;;  %v2479_v1 = vld [vmem:[%s8192_s13 + $0x8] sm:$0xff]  ;;  %vm3323_vm11 = vcmp.eq.f32.partialorder %v7437_v2, inf  ;;  %v3326_v27 = vand.u32 2147483648, %v7437_v2 }
 0x535   : > { %v6142_v9 = vpop.eup %6141  ;;  %v3306_v46 = vsel %vm3304_vm7, %v3305_v36, %v3303_v38  ;;  %v2159_v13 = vmul.f32 0.5, %v7035_v12  ;;  %vm3318_vm12 = vcmp.eq.f32.partialorder %v7396_v37, 0.0  ;;  %vm3325_vm13 = vcmp.eq.f32.partialorder %v7437_v2, 0.0 }
 0x536   : > { %4224 = vrot.lane.b32.xlu1 %v7313_v8, %s6300_s27  ;;  %v6144_v17 = vpop.eup %6143  ;;  %v3308_v8 = vmul.f32 %v6142_v9, %v7405_v47  ;;  %5713 = vmatmul.mubr.msk.f32.gmra.mrb[56].mxu1 %vm2529_vm0, %v3306_v46  ;;  %vm3330_vm14 = vcmp.eq.f32.partialorder %v7431_v20, inf  ;;  %vm3337_vm15 = vcmp.eq.f32.partialorder %v7471_v26, inf  ;;  %v2160_v6 = vmul.f32 0.5, %v7049_v49 }
 0x537   : > { %v6146_v39 = vpop.eup %6145  ;;  %v3315_v29 = vmul.f32 %v6144_v17, %v7396_v37  ;;  %v3333_v53 = vand.u32 2147483648, %v7431_v20  ;;  %vm3339_vm1 = vcmp.eq.f32.partialorder %v7471_v26, 0.0  ;;  %v2161_v30 = vmul.f32 0.5, %v7042_v61 }
 0x538   : > { %4226 = vrot.lane.b32.xlu0 %v7305_v24, %s6300_s27  ;;  %v2478_v24 = vld [vmem:[%s8192_s13] sm:$0xff]  ;;  %v6148_v5 = vpop.eup %6147  ;;  %v3310_v28 = vsel %vm3309_vm8, %v7405_v47, %v3308_v8  ;;  %v3322_v11 = vmul.f32 %v6146_v39, %v7437_v2  ;;  %vm3332_vm2 = vcmp.eq.f32.partialorder %v7431_v20, 0.0  ;;  %6161 = vtanh.f32 %v2159_v13 }
 0x539   : > { %v5883_v35 = vpack.c.bf16 %v2479_v1, %v2478_v24  ;;  %v7536_v62 = vpop.eup %6149  ;;  %v3313_v0 = vsel %vm3311_vm9, %v3312_v45, %v3310_v28  ;;  %v3317_v7 = vsel %vm3316_vm10, %v7396_v37, %v3315_v29  ;;  %v3329_v51 = vmul.f32 %v6148_v5, %v7431_v20  ;;  %v8218_v39 = vld [vmem:[#allocation4_spill] sm:$0xff] }
 0x53a   : > { %4228 = vrot.lane.b32.xlu1 %v7347_v54, %s6300_s27  ;;  %v6152_v16 = vpop.eup %6151  ;;  %5715 = vmatprep.mubr.msk.f32.mxu1 %vm2529_vm0, %v3313_v0  ;;  %v3324_v54 = vsel %vm3323_vm11, %v7437_v2, %v3322_v11  ;;  %v3320_v4 = vsel %vm3318_vm12, %v3319_v23, %v3317_v7  ;;  %v3340_v37 = vand.u32 2147483648, %v7471_v26  ;;  %vm3344_vm3 = vcmp.eq.f32.partialorder %v7464_v44, inf }
 0x53b   : > { %5884 = vmatprep.subr.bf16.mxu0 %v5883_v35  ;;  %v6154_v47 = vpop.eup %6153  ;;  %v3327_v43 = vsel %vm3325_vm13, %v3326_v27, %v3324_v54  ;;  %v3336_v41 = vmul.f32 %v6152_v16, %v7471_v26  ;;  %5716 = vmatmul.mubr.msk.f32.gmra.mrb[58].mxu1 %vm2529_vm0, %v3320_v4  ;;  %v3331_v55 = vsel %vm3330_vm14, %v7431_v20, %v3329_v51  ;;  %v2199_v52 = vmul.f32 0.5, %v7507_v57  ;;  %v8221_v27 = vld [vmem:[#allocation6_spill] sm:$0xff] }
 0x53c   : > { %4230 = vrot.lane.b32.xlu0 %v7338_v14, %s6300_s27  ;;  %5886 = vmatpush3.bf16.msra.mxu0 %v5883_v35  ;;  %v6156_v14 = vpop.eup %6155  ;;  %v3343_v2 = vmul.f32 %v6154_v47, %v7464_v44  ;;  %v3334_v21 = vsel %vm3332_vm2, %v3333_v53, %v3331_v55  ;;  %v2185_v9 = vadd.f32 1.0, %v7343_v56  ;;  %v2162_v20 = vmul.f32 0.5, %v7060_v19 }
 0x53d   : > { %v6158_v40 = vpop.eup %6157  ;;  %5718 = vmatprep.mubr.msk.f32.mxu1 %vm2529_vm0, %v3327_v43  ;;  %v3338_v34 = vsel %vm3337_vm15, %v7471_v26, %v3336_v41  ;;  %v3347_v36 = vand.u32 2147483648, %v7464_v44  ;;  %6163 = vtanh.f32 %v2160_v6  ;;  %v2163_v56 = vmul.f32 0.5, %v7053_v18 }
 0x53e   : > { %4232 = vrot.lane.b32.xlu1 %v7376_v48, %s6300_s27  ;;  %v6160_v48 = vpop.eup %6159  ;;  %v3341_v33 = vsel %vm3339_vm1, %v3340_v37, %v3338_v34  ;;  %v3345_v26 = vsel %vm3344_vm3, %v7464_v44, %v3343_v2  ;;  %vm3346_vm4 = vcmp.eq.f32.partialorder %v7464_v44, 0.0  ;;  %v2186_v57 = vadd.f32 1.0, %v7320_v32  ;;  %v8217_v32 = vld [vmem:[#allocation8_spill] sm:$0xff] }
 0x53f   : > { %5719 = vmatmul.mubr.msk.f32.gmra.mrb[60].mxu1 %vm2529_vm0, %v3334_v21  ;;  %6165 = vtanh.f32 %v2161_v30  ;;  %v2201_v17 = vmul.f32 0.5, %v2185_v9  ;;  %v2187_v38 = vadd.f32 1.0, %v6156_v14  ;;  %v2164_v8 = vmul.f32 0.5, %v7072_v63 }
 0x540   : > { %4234 = vrot.lane.b32.xlu0 %v7369_v22, %s6300_s27  ;;  %v2200_v22 = vmul.f32 0.5, %v7501_v25  ;;  %5721 = vmatprep.mubr.msk.f32.mxu1 %vm2529_vm0, %v3341_v33  ;;  %v2215_v25 = vmul.f32 %v2199_v52, %v6966_v58  ;;  %6167 = vtanh.f32 %v2162_v20  ;;  %v2165_v44 = vmul.f32 0.5, %v8217_v32 }
 0x541   : > { %v2202_v58 = vmul.f32 0.5, %v2186_v57  ;;  %v2188_v45 = vadd.f32 1.0, %v7536_v62  ;;  %6169 = vtanh.f32 %v2163_v56  ;;  %v2217_v46 = vmul.f32 %v2201_v17, %v8218_v39 }
 0x542   : > { %4236 = vrot.lane.b32.xlu1 %v7416_v31, %s6300_s27  ;;  %v3348_v31 = vsel %vm3346_vm4, %v3347_v36, %v3345_v26  ;;  %v2203_v29 = vmul.f32 0.5, %v2187_v38  ;;  %v6162_v23 = vpop.eup %6161  ;;  %6171 = vtanh.f32 %v2164_v8  ;;  %v2190_v28 = vadd.f32 1.0, %v6158_v40 }
 0x543   : > { %5722 = vmatmul.mubr.msk.f32.gmra.mrb[62].mxu1 %vm2529_vm0, %v3348_v31  ;;  %v2204_v5 = vmul.f32 0.5, %v2188_v45  ;;  %6173 = vtanh.f32 %v2165_v44  ;;  %v2191_v0 = vadd.f32 1.0, %v6162_v23  ;;  %vm6302_vm5 = vmmov 0  }
 0x544   : > { %4238 = vrot.lane.b32.xlu0 %v7407_v60, %s6300_s27  ;;  %v2216_v60 = vmul.f32 %v2200_v22, %v6963_v10  ;;  %5728 = vmatprep.mubr.msk.f32.mxu1 %vm2529_vm0, %v2215_v25  ;;  %v8219_v10 = vld [vmem:[#allocation7_spill] sm:$0xff]  ;;  %v2219_v35 = vmul.f32 %v2203_v29, %v6992_v3  ;;  %v2206_v16 = vmul.f32 0.5, %v2190_v28 }
 0x545   : > { %v2166_v24 = vmul.f32 0.5, %v8219_v10  ;;  %v2220_v51 = vmul.f32 %v2204_v5, %v8221_v27  ;;  %v2207_v4 = vmul.f32 0.5, %v2191_v0 }
 0x546   : > { %4240 = vrot.lane.b32.xlu1 %v7450_v59, %s6300_s27  ;;  %v2189_v59 = vadd.f32 1.0, %v6160_v48  ;;  %v2222_v3 = vmul.f32 %v2206_v16, %v7026_v42 }
 0x547   : > { %5729 = vmatmul.mubr.msk.f32.vlgmr.msra.gmra.mrb[48].mxu1 %vm2529_vm0, %v2216_v60  ;;  %v6164_v11 = vpop.eup %6163  ;;  %6175 = vtanh.f32 %v2166_v24  ;;  %v2223_v2 = vmul.f32 %v2207_v4, %v7035_v12 }
 0x548   : > { %4242 = vrot.lane.b32.xlu0 %v7440_v15, %s6300_s27  ;;  %5731 = vmatprep.mubr.msk.f32.mxu1 %vm2529_vm0, %v2217_v46  ;;  %v8220_v15 = vld [vmem:[#allocation5_spill] sm:$0xff]  ;;  %v2205_v62 = vmul.f32 0.5, %v2189_v59  ;;  %v2192_v13 = vadd.f32 1.0, %v6164_v11  ;;  %s4933_s27 = sshll.u32 %s567_s23, 7 }
 0x549   : > { %v2218_v1 = vmul.f32 %v2202_v58, %v8220_v15  ;;  %v6166_v7 = vpop.eup %6165  ;;  %s7983_s21 = scalar_lea.vmem [#allocation2], %s4933_s27  }
 0x54a   : > { %v6168_v54 = vpop.eup %6167  ;;  %v2221_v47 = vmul.f32 %v2205_v62, %v7015_v50  ;;  %v2193_v43 = vadd.f32 1.0, %v6166_v7  ;;  %v2208_v14 = vmul.f32 0.5, %v2192_v13 }
 0x54b   : > { %5732 = vmatmul.mubr.msk.f32.gmra.mrb[50].mxu1 %vm2529_vm0, %v2218_v1  ;;  %v6170_v41 = vpop.eup %6169  ;;  %v2194_v55 = vadd.f32 1.0, %v6168_v54 }
 0x54c   : > { %5734 = vmatprep.mubr.msk.f32.mxu1 %vm2529_vm0, %v2219_v35  ;;  %v6172_v37 = vpop.eup %6171  ;;  %v2209_v40 = vmul.f32 0.5, %v2193_v43  ;;  %v2195_v6 = vadd.f32 1.0, %v6170_v41  ;;  %v2224_v50 = vmul.f32 %v2208_v14, %v7049_v49 }
 0x54d   : > { %v6174_v53 = vpop.eup %6173  ;;  %v2210_v34 = vmul.f32 0.5, %v2194_v55  ;;  %v2196_v48 = vadd.f32 1.0, %v6172_v37 }
 0x54e   : > { %v2225_v33 = vmul.f32 %v2209_v40, %v7042_v61  ;;  %v2211_v42 = vmul.f32 0.5, %v2195_v6  ;;  %v2197_v21 = vadd.f32 1.0, %v6174_v53 }
 0x54f   : > { %5735 = vmatmul.mubr.msk.f32.gmra.mrb[52].mxu1 %vm2529_vm0, %v2220_v51  ;;  %v2226_v12 = vmul.f32 %v2210_v34, %v7060_v19  ;;  %v2212_v52 = vmul.f32 0.5, %v2196_v48 }
 0x550   : > { %5737 = vmatprep.mubr.msk.f32.mxu1 %vm2529_vm0, %v2221_v47  ;;  %v2227_v26 = vmul.f32 %v2211_v42, %v7053_v18  ;;  %v2213_v22 = vmul.f32 0.5, %v2197_v21  ;;  %v7628_v18 = vld [vmem:[%s8191_s12] ss:$0 sm:$0xff] }
 0x551   : > { %v6176_v30 = vpop.eup %6175  ;;  %v2228_v49 = vmul.f32 %v2212_v52, %v7072_v63 }
 0x552   : > { %v2198_v9 = vadd.f32 1.0, %v6176_v30  ;;  %v2229_v20 = vmul.f32 %v2213_v22, %v8217_v32 }
 0x553   : > { %5738 = vmatmul.mubr.msk.f32.gmra.mrb[54].mxu1 %vm2529_vm0, %v2222_v3 }
 0x554   : > { %5740 = vmatprep.mubr.msk.f32.mxu1 %vm2529_vm0, %v2223_v2  ;;  %v2214_v61 = vmul.f32 0.5, %v2198_v9 }
 0x556   : > { %v2230_v19 = vmul.f32 %v2214_v61, %v8219_v10 }
 0x557   : > { %5741 = vmatmul.mubr.msk.f32.gmra.mrb[56].mxu1 %vm2529_vm0, %v2224_v50 }
 0x558   : > { %5743 = vmatprep.mubr.msk.f32.mxu1 %vm2529_vm0, %v2225_v33 }
 0x55b   : > { %5744 = vmatmul.mubr.msk.f32.gmra.mrb[58].mxu1 %vm2529_vm0, %v2226_v12 }
 0x55c   : > { %5746 = vmatprep.mubr.msk.f32.mxu1 %vm2529_vm0, %v2227_v26 }
 0x55f   : > { %5747 = vmatmul.mubr.msk.f32.gmra.mrb[60].mxu1 %vm2529_vm0, %v2228_v49 }
 0x560   : > { %5749 = vmatprep.mubr.msk.f32.mxu1 %vm2529_vm0, %v2229_v20 }
 0x563   : > { %5750 = vmatmul.mubr.msk.f32.gmra.mrb[62].mxu1 %vm2529_vm0, %v2230_v19 }
 0x61a   : > { %v5730_v36 = vpop.f32.mrb[48].mxu1 }
 0x61b   : > { %v3742_v56 = vadd.f32 %v5730_v36, %v7628_v18  ;;  %v3656_v63 = vpop.f32.mrb[49].mxu1 }
 0x61c   : > { %v3741_v57 = vadd.f32 %v7628_v18, %v3656_v63 }
 0x61d   : > { %v3758_v31 = vmul.f32 0.5, %v3742_v56 }
 0x61e   : > { %v3757_v25 = vmul.f32 0.5, %v3741_v57  ;;  %v5733_v17 = vpop.f32.mrb[50].mxu1 }
 0x61f   : > { %6177 = vtanh.f32 %v3758_v31  ;;  %v7633_v38 = vadd.f32 %v5733_v17, %v7628_v18  ;;  %v3666_v60 = vpop.f32.mrb[51].mxu1 }
 0x620   : > { %6179 = vtanh.f32 %v3757_v25  ;;  %v3743_v8 = vadd.f32 %v7628_v18, %v3666_v60 }
 0x621   : > { %v3760_v32 = vmul.f32 0.5, %v7633_v38 }
 0x622   : > { %v3759_v44 = vmul.f32 0.5, %v3743_v8  ;;  %v5736_v58 = vpop.f32.mrb[52].mxu1 }
 0x623   : > { %6181 = vtanh.f32 %v3760_v32  ;;  %v7638_v45 = vadd.f32 %v5736_v58, %v7628_v18  ;;  %v3676_v39 = vpop.f32.mrb[53].mxu1 }
 0x624   : > { %6183 = vtanh.f32 %v3759_v44  ;;  %v7641_v46 = vadd.f32 %v7628_v18, %v3676_v39 }
 0x625   : > { %v3762_v29 = vmul.f32 0.5, %v7638_v45 }
 0x626   : > { %v3761_v59 = vmul.f32 0.5, %v7641_v46  ;;  %v5739_v23 = vpop.f32.mrb[54].mxu1 }
 0x627   : > { %6185 = vtanh.f32 %v3762_v29  ;;  %v7646_v10 = vadd.f32 %v5739_v23, %v7628_v18  ;;  %v3686_v24 = vpop.f32.mrb[55].mxu1 }
 0x628   : > { %6187 = vtanh.f32 %v3761_v59  ;;  %v7649_v15 = vadd.f32 %v7628_v18, %v3686_v24 }
 0x629   : > { %v6178_v1 = vpop.eup %6177  ;;  %v3764_v5 = vmul.f32 0.5, %v7646_v10 }
 0x62a   : > { %v6180_v28 = vpop.eup %6179  ;;  %v3790_v11 = vadd.f32 1.0, %v6178_v1  ;;  %v3763_v35 = vmul.f32 0.5, %v7649_v15  ;;  %v5742_v62 = vpop.f32.mrb[56].mxu1 }
 0x62b   : > { %v3789_v0 = vadd.f32 1.0, %v6180_v28  ;;  %6189 = vtanh.f32 %v3764_v5  ;;  %v7654_v7 = vadd.f32 %v5742_v62, %v7628_v18  ;;  %v3696_v27 = vpop.f32.mrb[57].mxu1 }
 0x62c   : > { %v3806_v51 = vmul.f32 0.5, %v3790_v11  ;;  %6191 = vtanh.f32 %v3763_v35  ;;  %v7657_v16 = vadd.f32 %v7628_v18, %v3696_v27 }
 0x62d   : > { %v6182_v13 = vpop.eup %6181  ;;  %v3805_v54 = vmul.f32 0.5, %v3789_v0  ;;  %v3766_v47 = vmul.f32 0.5, %v7654_v7 }
 0x62e   : > { %v6184_v4 = vpop.eup %6183  ;;  %v3792_v43 = vadd.f32 1.0, %v6182_v13  ;;  %v3765_v41 = vmul.f32 0.5, %v7657_v16  ;;  %v5745_v3 = vpop.f32.mrb[58].mxu1  ;;  %v3822_v40 = vmul.f32 %v3806_v51, %v3742_v56 }
 0x62f   : > { %v3821_v14 = vmul.f32 %v3805_v54, %v3741_v57  ;;  %v3791_v55 = vadd.f32 1.0, %v6184_v4  ;;  %6193 = vtanh.f32 %v3766_v47  ;;  %v7662_v37 = vadd.f32 %v5745_v3, %v7628_v18  ;;  %v3706_v2 = vpop.f32.mrb[59].mxu1 }
 0x630   : > { %v3808_v6 = vmul.f32 0.5, %v3792_v43  ;;  %6195 = vtanh.f32 %v3765_v41  ;;  %v7665_v53 = vadd.f32 %v7628_v18, %v3706_v2 }
 0x631   : > { %v6186_v50 = vpop.eup %6185  ;;  %v3807_v34 = vmul.f32 0.5, %v3791_v55  ;;  %v3768_v48 = vmul.f32 0.5, %v7662_v37  ;;  %5756 = vmatprep.mubr.msk.f32.mxu0 %vm2529_vm0, %v3821_v14 }
 0x632   : > { %v6188_v30 = vpop.eup %6187  ;;  %v3794_v33 = vadd.f32 1.0, %v6186_v50  ;;  %v3767_v42 = vmul.f32 0.5, %v7665_v53  ;;  %v5748_v21 = vpop.f32.mrb[60].mxu1  ;;  %5757 = vmatmul.mubr.msk.f32.vlgmr.msra.gmra.mrb[80].mxu0 %vm2529_vm0, %v3822_v40  ;;  %v3824_v22 = vmul.f32 %v3808_v6, %v7633_v38 }
 0x633   : > { %v3823_v12 = vmul.f32 %v3807_v34, %v3743_v8  ;;  %v3793_v52 = vadd.f32 1.0, %v6188_v30  ;;  %6197 = vtanh.f32 %v3768_v48  ;;  %v7672_v9 = vadd.f32 %v5748_v21, %v7628_v18  ;;  %v3716_v26 = vpop.f32.mrb[61].mxu1  ;;  %v4053_v30 = vpop.permute.xlu0 %4052 }
 0x634   : > { %v3810_v49 = vmul.f32 0.5, %v3794_v33  ;;  %6199 = vtanh.f32 %v3767_v42  ;;  %v3753_v61 = vadd.f32 %v7628_v18, %v3716_v26  ;;  %v6301_v34 = vmov 0.0|0.0   ;;  %v4055_v33 = vpop.permute.xlu1 %4054 }
 0x635   : > { %v6190_v20 = vpop.eup %6189  ;;  %v3809_v19 = vmul.f32 0.5, %v3793_v52  ;;  %v3770_v36 = vmul.f32 0.5, %v7672_v9  ;;  %5759 = vmatprep.mubr.msk.f32.mxu0 %vm2529_vm0, %v3823_v12  ;;  %5887 = vmatprep.subr.bf16.mxu0 %v6301_v34  ;;  %v6303_v48 = vmov 0.0  }
 0x636   : > { %v6192_v56 = vpop.eup %6191  ;;  %v3796_v63 = vadd.f32 1.0, %v6190_v20  ;;  %v3769_v57 = vmul.f32 0.5, %v3753_v61  ;;  %v5751_v31 = vpop.f32.mrb[62].mxu1  ;;  %5760 = vmatmul.mubr.msk.f32.gmra.mrb[82].mxu0 %vm2529_vm0, %v3824_v22  ;;  %v3826_v8 = vmul.f32 %v3810_v49, %v7638_v45 }
 0x637   : > { %v3825_v25 = vmul.f32 %v3809_v19, %v7641_v46  ;;  %v3795_v17 = vadd.f32 1.0, %v6192_v56  ;;  %6201 = vtanh.f32 %v3770_v36  ;;  %v3756_v38 = vadd.f32 %v5751_v31, %v7628_v18  ;;  %v3726_v60 = vpop.f32.mrb[63].mxu1  ;;  %v7703_v42 = vpop.permute.xlu0 %4132 }
 0x638   : > { %v3812_v32 = vmul.f32 0.5, %v3796_v63  ;;  %6203 = vtanh.f32 %v3769_v57  ;;  %v3755_v44 = vadd.f32 %v7628_v18, %v3726_v60  ;;  %v7705_v21 = vpop.permute.xlu1 %4134 }
 0x639   : > { %v6194_v58 = vpop.eup %6193  ;;  %v3811_v39 = vmul.f32 0.5, %v3795_v17  ;;  %v3772_v29 = vmul.f32 0.5, %v3756_v38  ;;  %5762 = vmatprep.mubr.msk.f32.mxu0 %vm2529_vm0, %v3825_v25 }
 0x63a   : > { %v6196_v59 = vpop.eup %6195  ;;  %v3798_v23 = vadd.f32 1.0, %v6194_v58  ;;  %v3771_v24 = vmul.f32 0.5, %v3755_v44  ;;  %5763 = vmatmul.mubr.msk.f32.gmra.mrb[84].mxu0 %vm2529_vm0, %v3826_v8  ;;  %v3828_v45 = vmul.f32 %v3812_v32, %v7646_v10 }
 0x63b   : > { %v3827_v46 = vmul.f32 %v3811_v39, %v7649_v15  ;;  %v3797_v1 = vadd.f32 1.0, %v6196_v59  ;;  %6205 = vtanh.f32 %v3772_v29  ;;  %v7707_v12 = vpop.permute.xlu0 %4056  ;;  %v4277_v39 = vlaneseq }
 0x63c   : > { %v3814_v5 = vmul.f32 0.5, %v3798_v23  ;;  %6207 = vtanh.f32 %v3771_v24  ;;  %v7709_v52 = vpop.permute.xlu1 %4058 }
 0x63d   : > { %v6198_v28 = vpop.eup %6197  ;;  %v3813_v18 = vmul.f32 0.5, %v3797_v1  ;;  %5765 = vmatprep.mubr.msk.f32.mxu0 %vm2529_vm0, %v3827_v46  ;;  %v7753_v59 = vshrl.u32 %v4277_v39, 7  ;;  %v7761_v46 = vstv %s5135_s0 }
 0x63e   : > { %v6200_v11 = vpop.eup %6199  ;;  %v3800_v35 = vadd.f32 1.0, %v6198_v28  ;;  %5766 = vmatmul.mubr.msk.f32.gmra.mrb[86].mxu0 %vm2529_vm0, %v3828_v45  ;;  %v3830_v27 = vmul.f32 %v3814_v5, %v7654_v7 }
 0x63f   : > { %v3829_v62 = vmul.f32 %v3813_v18, %v7657_v16  ;;  %v3799_v0 = vadd.f32 1.0, %v6200_v11  ;;  %v4279_v24 = vadd.s32 8, %v7753_v59  ;;  %v4295_v5 = vadd.s32 %v7761_v46, %v7753_v59 }
 0x640   : > { %v3816_v15 = vmul.f32 0.5, %v3800_v35  ;;  %v7713_v26 = vpop.permute.xlu1 %4138  ;;  %v4280_v18 = vadd.s32 16, %v7753_v59  ;;  %v4281_v11 = vadd.s32 24, %v7753_v59  ;;  %v7775_v35 = vld [vmem:[%s8193_s14] ss:$0 sm:$0xff] }
 0x641   : > { %v6202_v51 = vpop.eup %6201  ;;  %v3815_v13 = vmul.f32 0.5, %v3799_v0  ;;  %5768 = vmatprep.mubr.msk.f32.mxu0 %vm2529_vm0, %v3829_v62  ;;  %v4296_v28 = vadd.s32 %v7761_v46, %v4279_v24  ;;  %v4282_v62 = vadd.s32 32, %v7753_v59  ;;  %v4283_v0 = vadd.s32 40, %v7753_v59 }
 0x642   : > { %v6204_v10 = vpop.eup %6203  ;;  %v3802_v54 = vadd.f32 1.0, %v6202_v51  ;;  %5769 = vmatmul.mubr.msk.f32.gmra.mrb[88].mxu0 %vm2529_vm0, %v3830_v27  ;;  %v3832_v43 = vmul.f32 %v3816_v15, %v7662_v37  ;;  %v4297_v51 = vadd.s32 %v7761_v46, %v4280_v18  ;;  %v4287_v18 = vadd.s32 72, %v7753_v59 }
 0x643   : > { %v3831_v47 = vmul.f32 %v3815_v13, %v7665_v53  ;;  %v3801_v4 = vadd.f32 1.0, %v6204_v10  ;;  %vm4312_vm6 = vcmp.lt.s32.totalorder %v4296_v28, 200  ;;  %v4298_v13 = vadd.s32 %v7761_v46, %v4281_v11 }
 0x644   : > { %v3818_v41 = vmul.f32 0.5, %v3802_v54  ;;  %v7717_v49 = vpop.permute.xlu1 %4062  ;;  %vm4313_vm8 = vcmp.lt.s32.totalorder %v4297_v51, 200  ;;  %v4286_v28 = vadd.s32 64, %v7753_v59 }
 0x645   : > { %v6206_v3 = vpop.eup %6205  ;;  %v3817_v16 = vmul.f32 0.5, %v3801_v4  ;;  %5771 = vmatprep.mubr.msk.f32.mxu0 %vm2529_vm0, %v3831_v47  ;;  %vm4314_vm9 = vcmp.lt.s32.totalorder %v4298_v13, 200  ;;  %v4289_v13 = vadd.s32 88, %v7753_v59 }
 0x646   : > { %v6208_v7 = vpop.eup %6207  ;;  %v3804_v14 = vadd.f32 1.0, %v6206_v3  ;;  %5772 = vmatmul.mubr.msk.f32.gmra.mrb[90].mxu0 %vm2529_vm0, %v3832_v43  ;;  %v3834_v40 = vmul.f32 %v3818_v41, %v7672_v9  ;;  %v7711_v9 = vpop.permute.xlu0 %4136  ;;  %v4299_v43 = vadd.s32 %v7761_v46, %v4282_v62  ;;  %v4300_v3 = vadd.s32 %v7761_v46, %v4283_v0  ;;  %vm5893_vm11 = vmpackc.low %vm4314_vm9, %vm4313_vm8 }
 0x647   : > { %v3833_v55 = vmul.f32 %v3817_v16, %v3753_v61  ;;  %v3803_v2 = vadd.f32 1.0, %v6208_v7  ;;  %v4284_v16 = vadd.s32 48, %v7753_v59  ;;  %v4285_v7 = vadd.s32 56, %v7753_v59 }
 0x648   : > { %v3820_v6 = vmul.f32 0.5, %v3804_v14  ;;  %v7721_v20 = vpop.permute.xlu1 %4142  ;;  %vm4315_vm10 = vcmp.lt.s32.totalorder %v4299_v43, 200  ;;  %vm4316_vm12 = vcmp.lt.s32.totalorder %v4300_v3, 200 }
 0x649   : > { %v3819_v50 = vmul.f32 0.5, %v3803_v2  ;;  %5774 = vmatprep.mubr.msk.f32.mxu0 %vm2529_vm0, %v3833_v55  ;;  %vm5897_vm13 = vmpackc.low %vm4316_vm12, %vm4315_vm10 }
 0x64a   : > { %5775 = vmatmul.mubr.msk.f32.gmra.mrb[92].mxu0 %vm2529_vm0, %v3834_v40  ;;  %v3836_v53 = vmul.f32 %v3820_v6, %v3756_v38  ;;  %v7715_v22 = vpop.permute.xlu0 %4060 }
 0x64b   : > { %v3835_v37 = vmul.f32 %v3819_v50, %v3755_v44 }
 0x64c   : > { %v7725_v36 = vpop.permute.xlu1 %4066 }
 0x64d   : > { %5777 = vmatprep.mubr.msk.f32.mxu0 %vm2529_vm0, %v3835_v37 }
 0x64e   : > { %5778 = vmatmul.mubr.msk.f32.gmra.mrb[94].mxu0 %vm2529_vm0, %v3836_v53  ;;  %v7719_v61 = vpop.permute.xlu0 %4140  ;;  %vm4311_vm0 = vcmp.lt.s32.totalorder %v4295_v5, 200 }
 0x64f   : > { %5812 = vmatprep.mubr.msk.f32.mxu0 %vm6302_vm5, %v6303_v48  ;;  %vm5889_vm7 = vmpackc.low %vm4312_vm6, %vm4311_vm0 }
 0x650   : > { %v7729_v63 = vpop.permute.xlu1 %4146 }
 0x652   : > { %v7723_v19 = vpop.permute.xlu0 %4064 }
 0x654   : > { %v7733_v31 = vpop.permute.xlu1 %4070 }
 0x656   : > { %v7727_v56 = vpop.permute.xlu0 %4144 }
 0x658   : > { %v7737_v17 = vpop.permute.xlu1 %4150 }
 0x65a   : > { %v7731_v57 = vpop.permute.xlu0 %4068 }
 0x65c   : > { %v7741_v60 = vpop.permute.xlu1 %4074 }
 0x65e   : > { %v7735_v25 = vpop.permute.xlu0 %4148 }
 0x660   : > { %v7745_v32 = vpop.permute.xlu1 %4154 }
 0x662   : > { %v7739_v38 = vpop.permute.xlu0 %4072 }
 0x664   : > { %v7749_v58 = vpop.permute.xlu1 %4078 }
 0x666   : > { %v7743_v8 = vpop.permute.xlu0 %4152 }
 0x668   : > { %v7755_v23 = vpop.permute.xlu1 %4158 }
 0x66a   : > { %v7747_v44 = vpop.permute.xlu0 %4076 }
 0x66c   : > { %v7765_v45 = vpop.permute.xlu1 %4082 }
 0x66e   : > { %v7751_v29 = vpop.permute.xlu0 %4156 }
 0x670   : > { %v7783_v10 = vpop.permute.xlu1 %4162 }
 0x672   : > { %v7763_v1 = vpop.permute.xlu0 %4080 }
 0x674   : > { %v4213_v53 = vpop.permute.xlu1 %4212 }
 0x676   : > { %v7779_v27 = vpop.permute.xlu0 %4160 }
 0x67a   : > { %v4215_v50 = vpop.permute.xlu0 %4214 }
 0x67e   : > { %v4219_v3 = vpop.permute.xlu0 %4218 }
 0x705   : > { %v5758_v15 = vpop.f32.mrb[80].mxu0 }
 0x706   : > { %v7786_v54 = vadd.f32 %v5758_v15, %v7775_v35  ;;  %v3957_v47 = vpop.f32.mrb[81].mxu0  ;;  %v4288_v15 = vadd.s32 80, %v7753_v59 }
 0x707   : > { %v7789_v4 = vadd.f32 %v7775_v35, %v3957_v47 }
 0x708   : > { %v4101_v41 = vmul.f32 %v4055_v33, %v7786_v54  ;;  %v4261_v48 = vmul.f32 %v4215_v50, %v7786_v54  ;;  %v4302_v33 = vadd.s32 %v7761_v46, %v4285_v7  ;;  %v4303_v7 = vadd.s32 %v7761_v46, %v4286_v28 }
 0x709   : > { %v5888_v14 = vpack.c.bf16 %v7786_v54, %v7789_v4  ;;  %v5761_v55 = vpop.f32.mrb[82].mxu0  ;;  %v4100_v2 = vmul.f32 %v4053_v30, %v7789_v4  ;;  %v4301_v30 = vadd.s32 %v7761_v46, %v4284_v16  ;;  %v4260_v5 = vmul.f32 %v4213_v53, %v7789_v4 }
 0x70a   : > { %v7800_v40 = vadd.f32 %v5761_v55, %v7775_v35  ;;  %4441 = vrot.lane.b32.xlu1 %v4101_v41, %s6304_s19  ;;  %v3967_v6 = vpop.f32.mrb[83].mxu0  ;;  %vm4318_vm15 = vcmp.lt.s32.totalorder %v4302_v33, 200  ;;  %v4306_v50 = vadd.s32 %v7761_v46, %v4289_v13  ;;  %v4290_v53 = vadd.s32 96, %v7753_v59 }
 0x70b   : > { %v7804_v37 = vadd.f32 %v7775_v35, %v3967_v6  ;;  %5890 = vmatpush3.bf16.msk.msra.mxu0 %vm5889_vm7, %v5888_v14  ;;  %4439 = vrot.lane.b32.xlu0 %v4100_v2, %s6304_s19  ;;  %vm4317_vm14 = vcmp.lt.s32.totalorder %v4301_v30, 200  ;;  %v4304_v14 = vadd.s32 %v7761_v46, %v4287_v18  ;;  %v4305_v2 = vadd.s32 %v7761_v46, %v4288_v15 }
 0x70c   : > { %5891 = vmatprep.subr.bf16.mxu0 %v6301_v34  ;;  %v4103_v51 = vmul.f32 %v7709_v52, %v7800_v40  ;;  %v4263_v6 = vmul.f32 %v4219_v3, %v7800_v40  ;;  %vm5901_vm1 = vmpackc.low %vm4318_vm15, %vm4317_vm14  ;;  %vm4319_vm2 = vcmp.lt.s32.totalorder %v4303_v7, 200  ;;  %vm4322_vm0 = vcmp.lt.s32.totalorder %v4306_v50, 200 }
 0x70d   : > { %v5892_v39 = vpack.c.bf16 %v7800_v40, %v7804_v37  ;;  %v5764_v24 = vpop.f32.mrb[84].mxu0  ;;  %v4102_v16 = vmul.f32 %v7707_v12, %v7804_v37  ;;  %v4217_v12 = vpop.permute.xlu1 %4216  ;;  %vm4320_vm3 = vcmp.lt.s32.totalorder %v4304_v14, 200  ;;  %vm4321_vm4 = vcmp.lt.s32.totalorder %v4305_v2, 200 }
 0x70e   : > { %v7817_v11 = vadd.f32 %v5764_v24, %v7775_v35  ;;  %v3977_v62 = vpop.f32.mrb[85].mxu0  ;;  %4505 = vrot.lane.b32.xlu1 %v4261_v48, %s6305_s17  ;;  %v4291_v48 = vadd.s32 104, %v7753_v59  ;;  %vm5905_vm5 = vmpackc.low %vm4320_vm3, %vm4319_vm2  ;;  %v4223_v14 = vpop.permute.xlu0 %4222  ;;  %vm4551_vm14 = vcmask 7168   ;;  %vm4568_vm15 = vcmask 15360  }
 0x70f   : > { %v7821_v0 = vadd.f32 %v7775_v35, %v3977_v62  ;;  %5894 = vmatpush3.bf16.msk.msra.mxu0 %vm5893_vm11, %v5892_v39  ;;  %4503 = vrot.lane.b32.xlu0 %v4260_v5, %s6305_s17  ;;  %v4262_v5 = vmul.f32 %v4217_v12, %v7804_v37  ;;  %v4307_v62 = vadd.s32 %v7761_v46, %v4290_v53  ;;  %vm5909_vm6 = vmpackc.low %vm4322_vm0, %vm4321_vm4  ;;  %vm4421_vm2 = vcmask 1024  }
 0x710   : > { %5895 = vmatprep.subr.bf16.mxu0 %v6301_v34  ;;  %v4105_v18 = vmul.f32 %v7717_v49, %v7817_v11  ;;  %v4308_v15 = vadd.s32 %v7761_v46, %v4291_v48  ;;  %v4265_v3 = vmul.f32 %v4223_v14, %v7817_v11 }
 0x711   : > { %v5896_v47 = vpack.c.bf16 %v7817_v11, %v7821_v0  ;;  %v5767_v41 = vpop.f32.mrb[86].mxu0  ;;  %vm4323_vm7 = vcmp.lt.s32.totalorder %v4307_v62, 200 }
 0x712   : > { %v7838_v52 = vadd.f32 %v5767_v41, %v7775_v35  ;;  %v3987_v43 = vpop.f32.mrb[87].mxu0  ;;  %4445 = vrot.lane.b32.xlu1 %v4103_v51, %s6304_s19  ;;  %v4292_v41 = vadd.s32 112, %v7753_v59  ;;  %vm4324_vm8 = vcmp.lt.s32.totalorder %v4308_v15, 200  ;;  %v4227_v62 = vpop.permute.xlu0 %4226 }
 0x713   : > { %v7842_v55 = vadd.f32 %v7775_v35, %v3987_v43  ;;  %5898 = vmatpush3.bf16.msk.msra.mxu0 %vm5897_vm13, %v5896_v47  ;;  %4443 = vrot.lane.b32.xlu0 %v4102_v16, %s6304_s19  ;;  %v4104_v47 = vmul.f32 %v7715_v22, %v7821_v0  ;;  %v4293_v16 = vadd.s32 120, %v7753_v59  ;;  %v4221_v22 = vpop.permute.xlu1 %4220  ;;  %vm5913_vm9 = vmpackc.low %vm4324_vm8, %vm4323_vm7 }
 0x714   : > { %5899 = vmatprep.subr.bf16.mxu0 %v6301_v34  ;;  %v4264_v53 = vmul.f32 %v4221_v22, %v7821_v0  ;;  %v4309_v48 = vadd.s32 %v7761_v46, %v4292_v41 }
 0x715   : > { %v5900_v39 = vpack.c.bf16 %v7838_v52, %v7842_v55  ;;  %v5770_v24 = vpop.f32.mrb[88].mxu0 }
 0x716   : > { %v7857_v28 = vadd.f32 %v5770_v24, %v7775_v35  ;;  %v3997_v30 = vpop.f32.mrb[89].mxu0  ;;  %4509 = vrot.lane.b32.xlu1 %v4263_v6, %s6305_s17  ;;  %vm4325_vm10 = vcmp.lt.s32.totalorder %v4309_v48, 200  ;;  %v4231_v14 = vpop.permute.xlu0 %4230 }
 0x717   : > { %v7861_v33 = vadd.f32 %v7775_v35, %v3997_v30  ;;  %5902 = vmatpush3.bf16.msk.msra.mxu0 %vm5901_vm1, %v5900_v39  ;;  %4507 = vrot.lane.b32.xlu0 %v4262_v5, %s6305_s17  ;;  %v4310_v39 = vadd.s32 %v7761_v46, %v4293_v16  ;;  %v4107_v46 = vmul.f32 %v7725_v36, %v7838_v52  ;;  %vm4585_vm1 = vcmask 23552  }
 0x718   : > { %5903 = vmatprep.subr.bf16.mxu0 %v6301_v34 }
 0x719   : > { %v5904_v51 = vpack.c.bf16 %v7857_v28, %v7861_v33  ;;  %v5773_v13 = vpop.f32.mrb[90].mxu0  ;;  %vm4326_vm11 = vcmp.lt.s32.totalorder %v4310_v39, 200 }
 0x71a   : > { %v7877_v49 = vadd.f32 %v5773_v13, %v7775_v35  ;;  %v4007_v7 = vpop.f32.mrb[91].mxu0  ;;  %4449 = vrot.lane.b32.xlu1 %v4105_v18, %s6304_s19  ;;  %v4106_v18 = vmul.f32 %v7723_v19, %v7842_v55  ;;  %v4225_v19 = vpop.permute.xlu1 %4224  ;;  %v4267_v13 = vmul.f32 %v4227_v62, %v7838_v52  ;;  %vm5917_vm12 = vmpackc.low %vm4326_vm11, %vm4325_vm10 }
 0x71b   : > { %v7881_v43 = vadd.f32 %v7775_v35, %v4007_v7  ;;  %5906 = vmatpush3.bf16.msk.msra.mxu0 %vm5905_vm5, %v5904_v51  ;;  %4447 = vrot.lane.b32.xlu0 %v4104_v47, %s6304_s19  ;;  %v5136_v47 = vld [vmem:[%s600_s28] ss:$0 sm:$0xff]  ;;  %v4266_v16 = vmul.f32 %v4225_v19, %v7842_v55  ;;  %v6306_v7 = vmov 1.0   ;;  %s4617_s28 = ssub.s32 (%p6417_p4), 25, %s6422_s30 }
 0x71c   : > { %5907 = vmatprep.subr.bf16.mxu0 %v6301_v34  ;;  %vm4348_vm13 = vcmp.eq.s32.totalorder %v7753_v59, %v5136_v47  ;;  %v4235_v59 = vpop.permute.xlu0 %4234  ;;  %p4618_p9 = scmp.lt.s32.totalorder (%p6417_p4), %s4617_s28, 16 }
 0x71d   : > { %v5908_v12 = vpack.c.bf16 %v7877_v49, %v7881_v43  ;;  %v5776_v6 = vpop.f32.mrb[92].mxu0 }
 0x71e   : > { %v7899_v2 = vadd.f32 %v5776_v6, %v7775_v35  ;;  %v4017_v50 = vpop.f32.mrb[93].mxu0  ;;  %4513 = vrot.lane.b32.xlu1 %v4265_v3, %s6305_s17  ;;  %v4229_v22 = vpop.permute.xlu1 %4228  ;;  %v4269_v3 = vmul.f32 %v4231_v14, %v7857_v28 }
 0x71f   : > { %v7903_v24 = vadd.f32 %v7775_v35, %v4017_v50  ;;  %5910 = vmatpush3.bf16.msk.msra.mxu0 %vm5909_vm6, %v5908_v12  ;;  %4511 = vrot.lane.b32.xlu0 %v4264_v53, %s6305_s17  ;;  %v4268_v12 = vmul.f32 %v4229_v22, %v7861_v33  ;;  %v4271_v53 = vmul.f32 %v4235_v59, %v7877_v49 }
 0x720   : > { %5911 = vmatprep.subr.bf16.mxu0 %v6301_v34  ;;  %v4239_v39 = vpop.permute.xlu0 %4238 }
 0x721   : > { %v5912_v5 = vpack.c.bf16 %v7899_v2, %v7903_v24  ;;  %v5779_v30 = vpop.f32.mrb[94].mxu0 }
 0x722   : > { %v7920_v51 = vadd.f32 %v5779_v30, %v7775_v35  ;;  %4453 = vrot.lane.b32.xlu1 %v4107_v46, %s6304_s19  ;;  %v4027_v36 = vpop.f32.mrb[95].mxu0  ;;  %v4233_v6 = vpop.permute.xlu1 %4232  ;;  %v4273_v46 = vmul.f32 %v4239_v39, %v7899_v2 }
 0x723   : > { %v7924_v15 = vadd.f32 %v7775_v35, %v4027_v36  ;;  %5914 = vmatpush3.bf16.msk.msra.mxu0 %vm5913_vm9, %v5912_v5  ;;  %4451 = vrot.lane.b32.xlu0 %v4106_v18, %s6304_s19  ;;  %v4109_v35 = vmul.f32 %v7733_v31, %v7857_v28  ;;  %v4111_v31 = vmul.f32 %v7741_v60, %v7877_v49 }
 0x724   : > { %5915 = vmatprep.subr.bf16.mxu0 %v6301_v34  ;;  %v4108_v34 = vmul.f32 %v7731_v57, %v7861_v33  ;;  %v4110_v57 = vmul.f32 %v7739_v38, %v7881_v43  ;;  %v4270_v48 = vmul.f32 %v4233_v6, %v7881_v43  ;;  %v4113_v60 = vmul.f32 %v7749_v58, %v7899_v2  ;;  %v4243_v30 = vpop.permute.xlu0 %4242 }
 0x725   : > { %v5916_v41 = vpack.c.bf16 %v7920_v51, %v7924_v15  ;;  %v4112_v38 = vmul.f32 %v7747_v44, %v7903_v24  ;;  %v4115_v58 = vmul.f32 %v7765_v45, %v7920_v51  ;;  %v4114_v44 = vmul.f32 %v7763_v1, %v7924_v15 }
 0x726   : > { %4517 = vrot.lane.b32.xlu1 %v4267_v13, %s6305_s17  ;;  %v4237_v50 = vpop.permute.xlu1 %4236  ;;  %v4275_v36 = vmul.f32 %v4243_v30, %v7920_v51  ;;  %v4181_v1 = vmul.f32 %v7705_v21, %v7786_v54  ;;  %v4180_v13 = vmul.f32 %v7703_v42, %v7789_v4  ;;  %v4183_v4 = vmul.f32 %v7713_v26, %v7800_v40 }
 0x727   : > { %4515 = vrot.lane.b32.xlu0 %v4266_v16, %s6305_s17  ;;  %5918 = vmatpush3.bf16.msk.msra.mxu0 %vm5917_vm12, %v5916_v41  ;;  %v4272_v5 = vmul.f32 %v4237_v50, %v7903_v24 }
 0x72a   : > { %4457 = vrot.lane.b32.xlu1 %v4109_v35, %s6304_s19  ;;  %5813 = vmatmul.mubr.msk.f32.vlgmr.msra.gmra.mrb[96].mxu0 %vm4348_vm13, %v6306_v7  ;;  %v4241_v18 = vpop.permute.xlu1 %4240  ;;  %v4182_v7 = vmul.f32 %v7711_v9, %v7804_v37  ;;  %v4185_v9 = vmul.f32 %v7721_v20, %v7817_v11  ;;  %v4184_v37 = vmul.f32 %v7719_v61, %v7821_v0 }
 0x72b   : > { %4455 = vrot.lane.b32.xlu0 %v4108_v34, %s6304_s19  ;;  %v4274_v62 = vmul.f32 %v4241_v18, %v7924_v15  ;;  %v4187_v61 = vmul.f32 %v7729_v63, %v7838_v52  ;;  %v4186_v0 = vmul.f32 %v7727_v56, %v7842_v55  ;;  %v4189_v56 = vmul.f32 %v7737_v17, %v7857_v28 }
 0x72c   : > { %v4188_v55 = vmul.f32 %v7735_v25, %v7861_v33  ;;  %v4191_v25 = vmul.f32 %v7745_v32, %v7877_v49  ;;  %v4190_v33 = vmul.f32 %v7743_v8, %v7881_v43  ;;  %v4193_v8 = vmul.f32 %v7755_v23, %v7899_v2 }
 0x72d   : > { %v4192_v43 = vmul.f32 %v7751_v29, %v7903_v24  ;;  %v4195_v29 = vmul.f32 %v7783_v10, %v7920_v51  ;;  %v4194_v24 = vmul.f32 %v7779_v27, %v7924_v15 }
 0x72e   : > { %4521 = vrot.lane.b32.xlu1 %v4269_v3, %s6305_s17 }
 0x72f   : > { %4519 = vrot.lane.b32.xlu0 %v4268_v12, %s6305_s17 }
 0x732   : > { %4461 = vrot.lane.b32.xlu1 %v4111_v31, %s6304_s19 }
 0x733   : > { %4459 = vrot.lane.b32.xlu0 %v4110_v57, %s6304_s19 }
 0x736   : > { %4525 = vrot.lane.b32.xlu1 %v4271_v53, %s6305_s17 }
 0x737   : > { %4523 = vrot.lane.b32.xlu0 %v4270_v48, %s6305_s17 }
 0x73a   : > { %4465 = vrot.lane.b32.xlu1 %v4113_v60, %s6304_s19 }
 0x73b   : > { %4463 = vrot.lane.b32.xlu0 %v4112_v38, %s6304_s19 }
 0x73e   : > { %4529 = vrot.lane.b32.xlu1 %v4273_v46, %s6305_s17 }
 0x73f   : > { %4527 = vrot.lane.b32.xlu0 %v4272_v5, %s6305_s17 }
 0x742   : > { %4469 = vrot.lane.b32.xlu1 %v4115_v58, %s6304_s19 }
 0x743   : > { %4467 = vrot.lane.b32.xlu0 %v4114_v44, %s6304_s19  ;;  %s4938_s19 = sshll.u32 %s7896_s18, 1 }
 0x744   : > { %s604_s26 = scalar_lea.vmem %s8194_s15, %s4938_s19 }
 0x746   : > { %4533 = vrot.lane.b32.xlu1 %v4275_v36, %s6305_s17 }
 0x747   : > { %4531 = vrot.lane.b32.xlu0 %v4274_v62, %s6305_s17 }
 0x77c   : > { %v4442_v19 = vpop.permute.xlu1 %4441 }
 0x77d   : > { %v4440_v45 = vpop.permute.xlu0 %4439  ;;  %v4553_v47 = vsel %vm4551_vm14, %v4442_v19, %v4181_v1 }
 0x77e   : > { %v4552_v16 = vsel %vm4551_vm14, %v4440_v45, %v4180_v13 }
 0x780   : > { %v4506_v41 = vpop.permute.xlu1 %4505 }
 0x781   : > { %v4570_v35 = vsel %vm4568_vm15, %v4553_v47, %v4506_v41  ;;  %v4504_v34 = vpop.permute.xlu0 %4503 }
 0x782   : > { %4587 = vst.msk [vmem:[%s7983_s21 + $0x8] sm:$0xff] %vm4585_vm1, %v4570_v35  ;;  %v4569_v21 = vsel %vm4568_vm15, %v4552_v16, %v4504_v34 }
 0x783   : > { %4586 = vst.msk [vmem:[%s7983_s21] sm:$0xff] %vm4585_vm1, %v4569_v21 }
 0x784   : > { %v4446_v42 = vpop.permute.xlu1 %4445 }
 0x785   : > { %v4444_v54 = vpop.permute.xlu0 %4443  ;;  %v4555_v14 = vsel %vm4551_vm14, %v4446_v42, %v4183_v4 }
 0x786   : > { %v4554_v3 = vsel %vm4551_vm14, %v4444_v54, %v4182_v7 }
 0x788   : > { %v4510_v22 = vpop.permute.xlu1 %4509 }
 0x789   : > { %v4572_v12 = vsel %vm4568_vm15, %v4555_v14, %v4510_v22  ;;  %v4508_v31 = vpop.permute.xlu0 %4507 }
 0x78a   : > { %4589 = vst.msk [vmem:[%s7983_s21 + $0x18] sm:$0xff] %vm4585_vm1, %v4572_v12  ;;  %v4571_v57 = vsel %vm4568_vm15, %v4554_v3, %v4508_v31 }
 0x78b   : > { %4588 = vst.msk [vmem:[%s7983_s21 + $0x10] sm:$0xff] %vm4585_vm1, %v4571_v57 }
 0x78c   : > { %v4450_v26 = vpop.permute.xlu1 %4449 }
 0x78d   : > { %v4448_v40 = vpop.permute.xlu0 %4447  ;;  %v4557_v59 = vsel %vm4551_vm14, %v4450_v26, %v4185_v9 }
 0x78e   : > { %v4556_v53 = vsel %vm4551_vm14, %v4448_v40, %v4184_v37 }
 0x790   : > { %v4514_v6 = vpop.permute.xlu1 %4513 }
 0x791   : > { %v4574_v48 = vsel %vm4568_vm15, %v4557_v59, %v4514_v6  ;;  %v4512_v60 = vpop.permute.xlu0 %4511 }
 0x792   : > { %4591 = vst.msk [vmem:[%s7983_s21 + $0x28] sm:$0xff] %vm4585_vm1, %v4574_v48  ;;  %v4573_v38 = vsel %vm4568_vm15, %v4556_v53, %v4512_v60 }
 0x793   : > { %4590 = vst.msk [vmem:[%s7983_s21 + $0x20] sm:$0xff] %vm4585_vm1, %v4573_v38 }
 0x794   : > { %v4454_v20 = vpop.permute.xlu1 %4453 }
 0x795   : > { %v4452_v11 = vpop.permute.xlu0 %4451  ;;  %v4559_v39 = vsel %vm4551_vm14, %v4454_v20, %v4187_v61 }
 0x796   : > { %v4558_v46 = vsel %vm4551_vm14, %v4452_v11, %v4186_v0 }
 0x798   : > { %v4518_v50 = vpop.permute.xlu1 %4517 }
 0x799   : > { %v4576_v5 = vsel %vm4568_vm15, %v4559_v39, %v4518_v50  ;;  %v4516_v58 = vpop.permute.xlu0 %4515 }
 0x79a   : > { %4593 = vst.msk [vmem:[%s7983_s21 + $0x38] sm:$0xff] %vm4585_vm1, %v4576_v5  ;;  %v4575_v44 = vsel %vm4568_vm15, %v4558_v46, %v4516_v58 }
 0x79b   : > { %4592 = vst.msk [vmem:[%s7983_s21 + $0x30] sm:$0xff] %vm4585_vm1, %v4575_v44 }
 0x79c   : > { %v4458_v63 = vpop.permute.xlu1 %4457 }
 0x79d   : > { %v4456_v52 = vpop.permute.xlu0 %4455  ;;  %v4561_v30 = vsel %vm4551_vm14, %v4458_v63, %v4189_v56 }
 0x79e   : > { %v4560_v36 = vsel %vm4551_vm14, %v4456_v52, %v4188_v55 }
 0x7a0   : > { %v4522_v18 = vpop.permute.xlu1 %4521 }
 0x7a1   : > { %v4578_v62 = vsel %vm4568_vm15, %v4561_v30, %v4522_v18  ;;  %v4520_v19 = vpop.permute.xlu0 %4519 }
 0x7a2   : > { %4595 = vst.msk [vmem:[%s7983_s21 + $0x48] sm:$0xff] %vm4585_vm1, %v4578_v62  ;;  %v4577_v45 = vsel %vm4568_vm15, %v4560_v36, %v4520_v19 }
 0x7a3   : > { %4594 = vst.msk [vmem:[%s7983_s21 + $0x40] sm:$0xff] %vm4585_vm1, %v4577_v45 }
 0x7a4   : > { %v4462_v17 = vpop.permute.xlu1 %4461 }
 0x7a5   : > { %v4460_v28 = vpop.permute.xlu0 %4459  ;;  %v4563_v1 = vsel %vm4551_vm14, %v4462_v17, %v4191_v25 }
 0x7a6   : > { %v4562_v47 = vsel %vm4551_vm14, %v4460_v28, %v4190_v33 }
 0x7a8   : > { %v4526_v13 = vpop.permute.xlu1 %4525 }
 0x7a9   : > { %v4580_v41 = vsel %vm4568_vm15, %v4563_v1, %v4526_v13  ;;  %v4524_v16 = vpop.permute.xlu0 %4523 }
 0x7aa   : > { %4597 = vst.msk [vmem:[%s7983_s21 + $0x58] sm:$0xff] %vm4585_vm1, %v4580_v41  ;;  %v4579_v35 = vsel %vm4568_vm15, %v4562_v47, %v4524_v16 }
 0x7ab   : > { %4596 = vst.msk [vmem:[%s7983_s21 + $0x50] sm:$0xff] %vm4585_vm1, %v4579_v35 }
 0x7ac   : > { %v4466_v32 = vpop.permute.xlu1 %4465 }
 0x7ad   : > { %v4464_v49 = vpop.permute.xlu0 %4463  ;;  %v4565_v34 = vsel %vm4551_vm14, %v4466_v32, %v4193_v8 }
 0x7ae   : > { %v4564_v42 = vsel %vm4551_vm14, %v4464_v49, %v4192_v43 }
 0x7b0   : > { %v4530_v21 = vpop.permute.xlu1 %4529 }
 0x7b1   : > { %v4582_v54 = vsel %vm4568_vm15, %v4565_v34, %v4530_v21  ;;  %v4528_v4 = vpop.permute.xlu0 %4527 }
 0x7b2   : > { %4599 = vst.msk [vmem:[%s7983_s21 + $0x68] sm:$0xff] %vm4585_vm1, %v4582_v54  ;;  %v4581_v7 = vsel %vm4568_vm15, %v4564_v42, %v4528_v4 }
 0x7b3   : > { %4598 = vst.msk [vmem:[%s7983_s21 + $0x60] sm:$0xff] %vm4585_vm1, %v4581_v7 }
 0x7b4   : > { %v4470_v23 = vpop.permute.xlu1 %4469 }
 0x7b5   : > { %v4468_v2 = vpop.permute.xlu0 %4467  ;;  %v4567_v14 = vsel %vm4551_vm14, %v4470_v23, %v4195_v29 }
 0x7b6   : > { %v4566_v3 = vsel %vm4551_vm14, %v4468_v2, %v4194_v24 }
 0x7b8   : > { %v4534_v22 = vpop.permute.xlu1 %4533 }
 0x7b9   : > { %v4584_v12 = vsel %vm4568_vm15, %v4567_v14, %v4534_v22  ;;  %v4532_v31 = vpop.permute.xlu0 %4531 }
 0x7ba   : > { %4601 = vst.msk [vmem:[%s7983_s21 + $0x78] sm:$0xff] %vm4585_vm1, %v4584_v12  ;;  %v4583_v57 = vsel %vm4568_vm15, %v4566_v3, %v4532_v31 }
 0x7bb   : > { %4600 = vst.msk [vmem:[%s7983_s21 + $0x70] sm:$0xff] %vm4585_vm1, %v4583_v57 }
 0x7f8   : > { %4615 = sbr.rel (!%p6417_p4) target bundleno = 2096 (0x830), region = 88 }
 0x7fd   : > { %v4417_v27 = vpop.f32.mrb[96].mxu0 }
 0x7fe   : > { %4422 = vst.msk [vmem:[%s604_s26] sm:$0x3] %vm4421_vm2, %v4417_v27  ;;  %v5814_v10 = vpop.f32.mrb[97].mxu0 }
 0x7ff   : > { %s8231_s28 = smov (!%p4618_p9, %s4617_s28), 16 }
 0x800   : > { %s5157_s18 = sshll.u32 %s8231_s28, 7 }
 0x801   : > { %p5160_p10 = scmp.eq.s32.totalorder %s5157_s18, 0 }
 0x802   : > { %s8092_s19 = sshrl.u32 (!%p5160_p10), %s8231_s28, 4 }
 0x803   : > { %4626 = sbr.rel (%p5160_p10) target bundleno = 2096 (0x830), region = 92  ;;  %p5161_p11 = scmp.le.s32.totalorder (!%p5160_p10), %s8092_s19, 0 }
 0x80a   : > { %4864 = sbr.rel (%p5161_p11) target bundleno = 2075 (0x81b), region = 182  ;;  %s8223_s24 = smov (!%p5161_p11), %s8086_s1 }
 0x80b   : > { %s8224_s29 = smov (!%p5161_p11), %s7983_s21  ;;  %s8101_s30 = smov (!%p5161_p11), 0  }
 0x80c   : > { %s8103_s0 = smov (!%p5161_p11), 0  }
 0x811 LB: >> { %v4718_v51 = vld [vmem:[%s6271_s29] sm:$0xff]  ;;  %v4720_v15 = vld [vmem:[%s6271_s29 + $0x8] sm:$0xff]  ;;  %v4722_v26 = vld [vmem:[%s6271_s29 + $0x10] sm:$0xff]  ;;  %s4750_s17 = sadd.s32 1, %s6275_s30  ;;  %s4712_s0 = sadd.s32 1, %s6279_s0   ;;  %s6279_s0 = sphi %s8103_s0, %s4712_s0   ;;  %s6275_s30 = sphi %s8101_s30, %s8225_s30   ;;  %s6271_s29 = sphi %s8224_s29, %s4755_s29   ;;  %s6267_s24 = sphi %s8223_s24, %s4756_s24  }
 0x812   : >> { %4719 = vst [vmem:[%s6267_s24] sm:$0xff] %v4718_v51  ;;  %4721 = vst [vmem:[%s6267_s24 + $0x8] sm:$0xff] %v4720_v15  ;;  %v4724_v40 = vld [vmem:[%s6271_s29 + $0x18] sm:$0xff]  ;;  %v4726_v9 = vld [vmem:[%s6271_s29 + $0x20] sm:$0xff]  ;;  %p4751_p12 = scmp.ge.s32.totalorder %s4750_s17, %s8092_s19  ;;  %p4711_p13 = scmp.ge.s32.totalorder %s4712_s0, %s8092_s19 }
 0x813   : >> { %4723 = vst [vmem:[%s6267_s24 + $0x10] sm:$0xff] %v4722_v26  ;;  %v4728_v37 = vld [vmem:[%s6271_s29 + $0x28] sm:$0xff]  ;;  %4725 = vst [vmem:[%s6267_s24 + $0x18] sm:$0xff] %v4724_v40  ;;  %v4730_v59 = vld [vmem:[%s6271_s29 + $0x30] sm:$0xff] }
 0x814   : >> { %4727 = vst [vmem:[%s6267_s24 + $0x20] sm:$0xff] %v4726_v9  ;;  %4729 = vst [vmem:[%s6267_s24 + $0x28] sm:$0xff] %v4728_v37  ;;  %v4732_v6 = vld [vmem:[%s6271_s29 + $0x38] sm:$0xff]  ;;  %v4734_v53 = vld [vmem:[%s6271_s29 + $0x40] sm:$0xff]  ;;  %s8233_s17 = smov (%p4751_p12, %s4750_s17), 0  ;;  %4714 = sbr.rel (!%p4711_p13) target bundleno = 2065 (0x811), region = 188 }
 0x815   : >> { %4731 = vst [vmem:[%s6267_s24 + $0x30] sm:$0xff] %v4730_v59  ;;  %4733 = vst [vmem:[%s6267_s24 + $0x38] sm:$0xff] %v4732_v6  ;;  %v4736_v48 = vld [vmem:[%s6271_s29 + $0x48] sm:$0xff]  ;;  %v4738_v60 = vld [vmem:[%s6271_s29 + $0x50] sm:$0xff]  ;;  %s5162_s20 = sshll.u32 %s8233_s17, 7  ;;  %s8225_s30 = smov %s8233_s17 }
 0x816   : >> { %4735 = vst [vmem:[%s6267_s24 + $0x40] sm:$0xff] %v4734_v53  ;;  %v4740_v38 = vld [vmem:[%s6271_s29 + $0x58] sm:$0xff]  ;;  %4737 = vst [vmem:[%s6267_s24 + $0x48] sm:$0xff] %v4736_v48  ;;  %v4742_v20 = vld [vmem:[%s6271_s29 + $0x60] sm:$0xff] }
 0x817   : >> { %4739 = vst [vmem:[%s6267_s24 + $0x50] sm:$0xff] %v4738_v60  ;;  %4741 = vst [vmem:[%s6267_s24 + $0x58] sm:$0xff] %v4740_v38  ;;  %v4744_v11 = vld [vmem:[%s6271_s29 + $0x68] sm:$0xff]  ;;  %v4746_v61 = vld [vmem:[%s6271_s29 + $0x70] sm:$0xff] }
 0x818   : >> { %4743 = vst [vmem:[%s6267_s24 + $0x60] sm:$0xff] %v4742_v20  ;;  %4745 = vst [vmem:[%s6267_s24 + $0x68] sm:$0xff] %v4744_v11  ;;  %v4748_v0 = vld [vmem:[%s6271_s29 + $0x78] sm:$0xff]  ;;  %s4755_s29 = scalar_lea.vmem %s7983_s21, %s5162_s20 [#allocation2]  }
 0x819   : >> { %4747 = vst [vmem:[%s6267_s24 + $0x70] sm:$0xff] %v4746_v61  ;;  %4749 = vst [vmem:[%s6267_s24 + $0x78] sm:$0xff] %v4748_v0  ;;  %s4756_s24 = scalar_lea.vmem %s8086_s1, %s5162_s20  }
 0x81b PF: > { %s8161_s26 = sand.u32 15, %s8231_s28   ;;  %s5173_s23 = sshll.u32 %s8092_s19, 7 }
 0x81c   : > { %s4761_s27 = scalar_lea.vmem %s7983_s21, %s5173_s23 [#allocation2]   ;;  %s4763_s18 = scalar_lea.vmem %s8086_s1, %s5173_s23  }
 0x81d   : > { %p5167_p0 = scmp.le.s32.totalorder %s8161_s26, 0 }
 0x81e   : > { %s6281_s20 = smov (!%p5167_p0), %s4763_s18   ;;  %s6285_s2 = smov (!%p5167_p0), %s4761_s27  }
 0x81f   : > { %4878 = sbr.rel (%p5167_p0) target bundleno = 2096 (0x830), region = 193  ;;  %s6289_s3 = smov (!%p5167_p0), 0  }
 0x820   : > { %s6293_s17 = smov (!%p5167_p0), 0  }
 0x826 LB: >> { %v4773_v39 = vld [vmem:[%s6287_s2] sm:$0xff]  ;;  %s4775_s28 = sadd.s32 1, %s6291_s3  ;;  %s4767_s17 = sadd.s32 1, %s6295_s17   ;;  %s6295_s17 = sphi %s6293_s17, %s4767_s17   ;;  %s6291_s3 = sphi %s6289_s3, %s6290_s3   ;;  %s6287_s2 = sphi %s6285_s2, %s4780_s2   ;;  %s6283_s20 = sphi %s6281_s20, %s4781_s20  }
 0x827   : >> { %4774 = vst [vmem:[%s6283_s20] sm:$0xff] %v4773_v39  ;;  %p4776_p1 = scmp.ge.s32.totalorder %s4775_s28, %s8161_s26  ;;  %p4766_p2 = scmp.ge.s32.totalorder %s4767_s17, %s8161_s26 }
 0x829   : >> { %s8235_s28 = smov (%p4776_p1, %s4775_s28), 0  ;;  %4769 = sbr.rel (!%p4766_p2) target bundleno = 2086 (0x826), region = 199 }
 0x82a   : >> { %s5168_s1 = sshll.u32 %s8235_s28, 3  ;;  %s6290_s3 = smov %s8235_s28  }
 0x82b   : >> { %s4780_s2 = scalar_lea.vmem %s4761_s27, %s5168_s1 [#allocation2]   ;;  %s4781_s20 = scalar_lea.vmem %s4763_s18, %s5168_s1  }
 0x830 PF: > { %s8226_s3 = sld [smem:[#allocation3_spill]]  ;;  %p24_p3 = scmp.ge.s32.totalorder %s6407_s25, 4  }
 0x831   : > { %s8227_s21 = smov %s6259_s22  ;;  %s8229_s23 = smov %s6407_s25 }
 0x832   :  { %26 = sbr.rel (!%p24_p3) target bundleno = 7 (0x7), region = 210 }
 0x836   : > { %s8228_s22 = smov %s8226_s3 }

</bundles_post_ra>
